<compile_context>
chip_gen: v6e
topology: v6e:2x2x1
jax: 0.10.0
libtpu: 0.0.40
codegen_flags: <defaults>
</compile_context>

<pallas_src>
import math
import functools

import jax
import jax.numpy as jnp
from jax.experimental import pallas as pl
from jax.experimental.pallas import tpu as pltpu


def _vmem_limit_bytes():
    # 3/4 of physical VMEM (48 MiB on v7x, 96 MiB on v5e/v6e), with a safe
    # fallback if the query is unavailable.
    try:
        cap = pltpu.get_tpu_info().vmem_capacity_bytes
    except Exception:
        cap = 64 * 1024 * 1024
    return min(int(cap) * 3 // 4, 96 * 1024 * 1024)


def _row_tile(n):
    # Prefer larger row tiles (amortizes ~0.35us per-grid-step overhead).
    for t in (512, 256, 128, 64, 32, 16, 8):
        if n % t == 0:
            return t
    return n  # TODO(synk): masked tail handling for non-divisible row counts


# ----------------------------------------------------------------------------
# Kernel 1: qkv projection with LoRA folded into the weights.
#   q = x @ Wq_eff + bq_eff   (Wq_eff already includes the 1/sqrt(hd) scale)
# ----------------------------------------------------------------------------
def _qkv_proj_kernel(x_ref, wq_ref, wk_ref, wv_ref, bq_ref, bk_ref, bv_ref,
                     q_out, k_out, v_out):
    x = x_ref[...].astype(jnp.bfloat16)            # (TM, C), cast once

    def proj(w_ref, b_ref, o_ref):
        y = jnp.dot(x, w_ref[...], preferred_element_type=jnp.float32)
        o_ref[...] = (y + b_ref[...]).astype(o_ref.dtype)

    proj(wq_ref, bq_ref, q_out)
    proj(wk_ref, bk_ref, k_out)
    proj(wv_ref, bv_ref, v_out)


def qkv_proj(x2d, fp):
    n, c = x2d.shape
    tm = _row_tile(n)
    row_spec = pl.BlockSpec((tm, c), lambda i: (i, 0))
    # TODO(synk): single-buffer the constant weight/bias blocks
    # (pipeline_mode=pl.Buffered(1)) once confirmed supported, to save VMEM
    # headroom on v7x.
    w_spec = pl.BlockSpec((c, c), lambda i: (0, 0))
    b_spec = pl.BlockSpec((1, c), lambda i: (0, 0))
    out_sd = jax.ShapeDtypeStruct((n, c), jnp.bfloat16)
    return pl.pallas_call(
        _qkv_proj_kernel,
        out_shape=(out_sd, out_sd, out_sd),
        grid=(n // tm,),
        in_specs=[row_spec, w_spec, w_spec, w_spec, b_spec, b_spec, b_spec],
        out_specs=(row_spec, row_spec, row_spec),
        compiler_params=pltpu.CompilerParams(
            dimension_semantics=("parallel",),
            vmem_limit_bytes=_vmem_limit_bytes()),
    )(x2d, fp["wq"], fp["wk"], fp["wv"], fp["bq"], fp["bk"], fp["bv"])


# ----------------------------------------------------------------------------
# Kernel 2: causal flash attention.
#   Head axis on the grid; only lower-triangular (qi, ki) tiles are visited,
#   driven by scalar-prefetched qi/ki tables.  q is pre-scaled (kernel 1).
# ----------------------------------------------------------------------------
def _flash_attn_kernel(qt_ref, kt_ref, q_ref, k_ref, v_ref, o_ref,
                       acc_ref, m_ref, l_ref, *, tq, tkv):
    s_idx = pl.program_id(1)
    qi = qt_ref[s_idx]
    ki = kt_ref[s_idx]

    @pl.when(ki == 0)
    def _init():
        m_ref[...] = jnp.full_like(m_ref, -jnp.inf)
        l_ref[...] = jnp.zeros_like(l_ref)
        acc_ref[...] = jnp.zeros_like(acc_ref)

    q = q_ref[0]                                   # (TQ, hd)  bf16, pre-scaled
    k = k_ref[0]                                   # (TKV, hd) bf16
    v = v_ref[0]                                   # (TKV, hd) bf16

    s = jax.lax.dot_general(q, k, (((1,), (1,)), ((), ())),
                            preferred_element_type=jnp.float32)   # (TQ, TKV)

    # Causal mask.  Only the diagonal tile has masked entries; off-diagonal
    # lower-triangular tiles are all-visible so the select is a cheap no-op.
    row = qi * tq + jax.lax.broadcasted_iota(jnp.int32, (tq, tkv), 0)
    col = ki * tkv + jax.lax.broadcasted_iota(jnp.int32, (tq, tkv), 1)
    s = jnp.where(col <= row, s, -1e30)            # finite fill: NaN-safe

    m_prev = m_ref[...]                            # (TQ, 1) f32
    m_new = jnp.maximum(m_prev, jnp.max(s, axis=-1, keepdims=True))
    alpha = jnp.exp(m_prev - m_new)
    p = jnp.exp(s - m_new)                         # f32 softmax statistics
    l_ref[...] = alpha * l_ref[...] + jnp.sum(p, axis=-1, keepdims=True)
    acc_ref[...] = alpha * acc_ref[...] + jnp.dot(
        p.astype(jnp.bfloat16), v, preferred_element_type=jnp.float32)
    m_ref[...] = m_new

    @pl.when(ki == qi)   # diagonal tile is the last causal block for this qi
    def _finalize():
        o_ref[0] = (acc_ref[...] / l_ref[...]).astype(o_ref.dtype)


def flash_attention(q, k, v, *, tq=256, tkv=256):
    bh, t, hd = q.shape
    tq = min(tq, t)
    tkv = min(tkv, t)
    assert tq == tkv, "triangular tile enumeration assumes TQ == TKV"
    assert t % tq == 0
    nq = t // tq

    # Lower-triangular (qi, ki) enumeration, ki innermost so the output tile
    # for a given qi is finalized on its last (diagonal) step.
    pairs = [(i, j) for i in range(nq) for j in range(i + 1)]
    qi_tab = jnp.asarray([p[0] for p in pairs], dtype=jnp.int32)
    ki_tab = jnp.asarray([p[1] for p in pairs], dtype=jnp.int32)
    n_tri = len(pairs)

    grid_spec = pltpu.PrefetchScalarGridSpec(
        num_scalar_prefetch=2,
        grid=(bh, n_tri),
        in_specs=[
            pl.BlockSpec((1, tq, hd), lambda b, s, qt, kt: (b, qt[s], 0)),
            pl.BlockSpec((1, tkv, hd), lambda b, s, qt, kt: (b, kt[s], 0)),
            pl.BlockSpec((1, tkv, hd), lambda b, s, qt, kt: (b, kt[s], 0)),
        ],
        out_specs=pl.BlockSpec((1, tq, hd), lambda b, s, qt, kt: (b, qt[s], 0)),
        scratch_shapes=[
            pltpu.VMEM((tq, hd), jnp.float32),     # acc
            pltpu.VMEM((tq, 1), jnp.float32),      # running max
            pltpu.VMEM((tq, 1), jnp.float32),      # running sum
        ],
    )

    return pl.pallas_call(
        functools.partial(_flash_attn_kernel, tq=tq, tkv=tkv),
        out_shape=jax.ShapeDtypeStruct((bh, t, hd), q.dtype),
        grid_spec=grid_spec,
        compiler_params=pltpu.CompilerParams(
            dimension_semantics=("parallel", "arbitrary"),
            vmem_limit_bytes=_vmem_limit_bytes()),
    )(qi_tab, ki_tab, q, k, v)


# ----------------------------------------------------------------------------
# Kernel 3: output projection with output-LoRA folded into the weight.
# ----------------------------------------------------------------------------
def _out_proj_kernel(y_ref, w_ref, b_ref, o_ref):
    out = jnp.dot(y_ref[...], w_ref[...], preferred_element_type=jnp.float32)
    o_ref[...] = (out + b_ref[...]).astype(o_ref.dtype)


def out_proj(y2d, w, b):
    n, c = y2d.shape
    tm = _row_tile(n)
    return pl.pallas_call(
        _out_proj_kernel,
        out_shape=jax.ShapeDtypeStruct((n, c), jnp.float32),
        grid=(n // tm,),
        in_specs=[pl.BlockSpec((tm, c), lambda i: (i, 0)),
                  pl.BlockSpec((c, c), lambda i: (0, 0)),
                  pl.BlockSpec((1, c), lambda i: (0, 0))],
        out_specs=pl.BlockSpec((tm, c), lambda i: (i, 0)),
        compiler_params=pltpu.CompilerParams(
            dimension_semantics=("parallel",),
            vmem_limit_bytes=_vmem_limit_bytes()),
    )(y2d, w, b)


# ----------------------------------------------------------------------------
# One-time parameter preparation (outside the jitted forward):
#   fold LoRA adapters and the attention scale into effective weights.
# ----------------------------------------------------------------------------
def fold_lora_params(params, n_head):
    C = params["proj_w"].shape[0]
    hd = C // n_head
    scale = 1.0 / math.sqrt(hd)      # F.scaled_dot_product_attention default

    w, b = params["attn_w"], params["attn_b"]
    wq, wk, wv = w[:, :C], w[:, C:2 * C], w[:, 2 * C:]
    bq, bk, bv = b[:C], b[C:2 * C], b[2 * C:]

    def fold_qkv(wx, bx, A, Bm):
        # y' = (xW + b)(I + A B)  ->  W_eff = W + (W A) B,  b_eff = b + (b A) B
        return wx + (wx @ A) @ Bm, bx + (bx @ A) @ Bm

    wq_e, bq_e = fold_qkv(wq, bq, params["q_A"], params["q_B"])
    wk_e, bk_e = fold_qkv(wk, bk, params["k_A"], params["k_B"])
    wv_e, bv_e = fold_qkv(wv, bv, params["v_A"], params["v_B"])
    wq_e, bq_e = wq_e * scale, bq_e * scale        # fold attention scale into q

    wo_e = params["proj_w"] + params["o_A"] @ params["o_B"]
    bo_e = params["proj_b"]

    return {
        "wq": wq_e.astype(jnp.bfloat16), "bq": bq_e.reshape(1, C),
        "wk": wk_e.astype(jnp.bfloat16), "bk": bk_e.reshape(1, C),
        "wv": wv_e.astype(jnp.bfloat16), "bv": bv_e.reshape(1, C),
        "wo": wo_e.astype(jnp.bfloat16), "bo": bo_e.reshape(1, C),
    }


# ----------------------------------------------------------------------------
# CausalSelfAttention forward (n_head is a static Python int)
# ----------------------------------------------------------------------------
def causal_self_attention_forward(folded, x, *, n_head, tq=256):
    B, T, C = x.shape
    hd = C // n_head
    x2 = x.reshape(B * T, C)

    # Fused qkv projection (LoRA + scale already folded); outputs bf16.
    q2, k2, v2 = qkv_proj(x2, folded)

    def to_heads(t2):
        return (t2.reshape(B, T, n_head, hd)
                  .transpose(0, 2, 1, 3)
                  .reshape(B * n_head, T, hd))

    t_tile = min(tq, T)
    yh = flash_attention(to_heads(q2), to_heads(k2), to_heads(v2),
                         tq=t_tile, tkv=t_tile)

    y2 = (yh.reshape(B, n_head, T, hd)
            .transpose(0, 2, 1, 3)
            .reshape(B * T, C))

    out = out_proj(y2, folded["wo"], folded["bo"])
    return out.reshape(B, T, C)


# ----------------------------------------------------------------------------
# Pure-JAX f32 reference (same math as the PyTorch module forward)
# ----------------------------------------------------------------------------
def reference_forward(params, x, n_head):
    B, T, C = x.shape
    hd = C // n_head
    x2 = x.reshape(B * T, C)
    qkv = x2 @ params["attn_w"] + params["attn_b"]
    q, k, v = jnp.split(qkv, 3, axis=-1)
    q = q + (q @ params["q_A"]) @ params["q_B"]
    k = k + (k @ params["k_A"]) @ params["k_B"]
    v = v + (v @ params["v_A"]) @ params["v_B"]

    def heads(t2d):
        return t2d.reshape(B, T, n_head, hd).transpose(0, 2, 1, 3)

    qh, kh, vh = heads(q), heads(k), heads(v)
    s = jnp.einsum("bhqd,bhkd->bhqk", qh, kh) / math.sqrt(hd)
    mask = jnp.tril(jnp.ones((T, T), bool))
    s = jnp.where(mask[None, None], s, -jnp.inf)
    p = jax.nn.softmax(s, axis=-1)
    y = jnp.einsum("bhqk,bhkd->bhqd", p, vh)
    y = y.transpose(0, 2, 1, 3).reshape(B * T, C)
    out = (y @ params["proj_w"] + params["proj_b"]
           + (y @ params["o_A"]) @ params["o_B"])
    return out.reshape(B, T, C)


# ----------------------------------------------------------------------------
# Deterministic parameter init
# ----------------------------------------------------------------------------
def init_params(key, n_embd, lora_r):
    C, R = n_embd, lora_r
    ks = jax.random.split(key, 12)
    normal = lambda k, shape, s=0.02: s * jax.random.normal(k, shape, jnp.float32)
    # NOTE: the PyTorch module zero-inits every LoRA "B" matrix; small random
    # values are used here so the LoRA path is numerically exercised.
    return {
        "attn_w": normal(ks[0], (C, 3 * C)),
        "attn_b": normal(ks[1], (3 * C,)),
        "proj_w": normal(ks[2], (C, C)),
        "proj_b": normal(ks[3], (C,)),
        "q_A": normal(ks[4], (C, R)), "q_B": normal(ks[5], (R, C)),
        "k_A": normal(ks[6], (C, R)), "k_B": normal(ks[7], (R, C)),
        "v_A": normal(ks[8], (C, R)), "v_B": normal(ks[9], (R, C)),
        "o_A": normal(ks[10], (C, R)), "o_B": normal(ks[11], (R, C)),
    }


if __name__ == "__main__":
    # small config: batch=2, seq=512, n_embd=64, n_head=4 (head_dim=16), lora_r=8
    # (seq=512 with tq=256 exercises the triangular tile enumeration: 3 tiles/row)
    B_, T_, C_, H_, R_ = 2, 512, 64, 4, 8
    key = jax.random.PRNGKey(0)
    kx, kp = jax.random.split(key)
    params = init_params(kp, C_, R_)
    x = jax.random.normal(kx, (B_, T_, C_), jnp.float32)

    folded = fold_lora_params(params, H_)     # one-time prep, outside jit
    fwd = jax.jit(functools.partial(causal_self_attention_forward, n_head=H_))
    out = fwd(folded, x)
    jax.block_until_ready(out)

    assert out.shape == (B_, T_, C_) and out.dtype == jnp.float32
    assert bool(jnp.all(jnp.isfinite(out)))

    ref = reference_forward(params, x, H_)
    max_err = float(jnp.max(jnp.abs(out - ref)))
    # bf16 MXU operands vs. f32 reference: observed error is ~1e-4..1e-3.
    assert max_err < 3e-3, f"max abs err vs reference: {max_err}"

    print("KERNEL_OK")
</pallas_src>

<mosaic_0001>
module attributes {stable_mosaic.version = 11 : i64} {
  func.func @_qkv_proj_kernel(%arg0: i32, %arg1: memref<512x64xf32, #tpu.memory_space<vmem>>, %arg2: memref<64x64xbf16, #tpu.memory_space<vmem>>, %arg3: memref<64x64xbf16, #tpu.memory_space<vmem>>, %arg4: memref<64x64xbf16, #tpu.memory_space<vmem>>, %arg5: memref<1x64xf32, #tpu.memory_space<vmem>>, %arg6: memref<1x64xf32, #tpu.memory_space<vmem>>, %arg7: memref<1x64xf32, #tpu.memory_space<vmem>>, %arg8: memref<512x64xbf16, #tpu.memory_space<vmem>>, %arg9: memref<512x64xbf16, #tpu.memory_space<vmem>>, %arg10: memref<512x64xbf16, #tpu.memory_space<vmem>>) attributes {dimension_semantics = [#tpu.dimension_semantics<parallel>], iteration_bounds = array<i64: 2>, scalar_prefetch = 0 : i64, scratch_operands = 0 : i64, tpu.core_type = #tpu.core_type<tc>, window_params = [{transform_indices = @transform_0, window_bounds = array<i64: 512, 64>}, {pipeline_mode = #tpu.pipeline_mode<synchronous>, transform_indices = @transform_1, window_bounds = array<i64: 64, 64>}, {pipeline_mode = #tpu.pipeline_mode<synchronous>, transform_indices = @transform_2, window_bounds = array<i64: 64, 64>}, {pipeline_mode = #tpu.pipeline_mode<synchronous>, transform_indices = @transform_3, window_bounds = array<i64: 64, 64>}, {pipeline_mode = #tpu.pipeline_mode<synchronous>, transform_indices = @transform_4, window_bounds = array<i64: 1, 64>}, {pipeline_mode = #tpu.pipeline_mode<synchronous>, transform_indices = @transform_5, window_bounds = array<i64: 1, 64>}, {pipeline_mode = #tpu.pipeline_mode<synchronous>, transform_indices = @transform_6, window_bounds = array<i64: 1, 64>}, {transform_indices = @transform_7, window_bounds = array<i64: 512, 64>}, {transform_indices = @transform_8, window_bounds = array<i64: 512, 64>}, {transform_indices = @transform_9, window_bounds = array<i64: 512, 64>}]} {
    %c0 = arith.constant 0 : index
    %c0_0 = arith.constant 0 : index
    %0 = vector.load %arg1[%c0, %c0_0] : memref<512x64xf32, #tpu.memory_space<vmem>>, vector<512x64xf32>
    %1 = arith.truncf %0 : vector<512x64xf32> to vector<512x64xbf16>
    %c0_1 = arith.constant 0 : index
    %c0_2 = arith.constant 0 : index
    %2 = vector.load %arg2[%c0_1, %c0_2] : memref<64x64xbf16, #tpu.memory_space<vmem>>, vector<64x64xbf16>
    %cst = arith.constant dense<0.000000e+00> : vector<512x64xf32>
    %3 = tpu.matmul %1, %2, %cst {dimension_numbers = #tpu.dot_dimension_numbers<[1], [0], [0], [1], [0, 0, 1, 1], [], []>} : vector<512x64xbf16>, vector<64x64xbf16>, vector<512x64xf32> -> vector<512x64xf32>
    %c0_3 = arith.constant 0 : index
    %c0_4 = arith.constant 0 : index
    %4 = vector.load %arg5[%c0_3, %c0_4] : memref<1x64xf32, #tpu.memory_space<vmem>>, vector<1x64xf32>
    %5 = vector.broadcast %4 : vector<1x64xf32> to vector<512x64xf32>
    %6 = arith.addf %3, %5 : vector<512x64xf32>
    %7 = arith.truncf %6 : vector<512x64xf32> to vector<512x64xbf16>
    %c0_5 = arith.constant 0 : index
    %c0_6 = arith.constant 0 : index
    %8 = vector.load %arg8[%c0_5, %c0_6] : memref<512x64xbf16, #tpu.memory_space<vmem>>, vector<512x64xbf16>
    tpu.vector_store %arg8[%c0_5, %c0_6], %7 {strides = array<i32>} : memref<512x64xbf16, #tpu.memory_space<vmem>>, vector<512x64xbf16>,
    %c0_7 = arith.constant 0 : index
    %c0_8 = arith.constant 0 : index
    %9 = vector.load %arg3[%c0_7, %c0_8] : memref<64x64xbf16, #tpu.memory_space<vmem>>, vector<64x64xbf16>
    %cst_9 = arith.constant dense<0.000000e+00> : vector<512x64xf32>
    %10 = tpu.matmul %1, %9, %cst_9 {dimension_numbers = #tpu.dot_dimension_numbers<[1], [0], [0], [1], [0, 0, 1, 1], [], []>} : vector<512x64xbf16>, vector<64x64xbf16>, vector<512x64xf32> -> vector<512x64xf32>
    %c0_10 = arith.constant 0 : index
    %c0_11 = arith.constant 0 : index
    %11 = vector.load %arg6[%c0_10, %c0_11] : memref<1x64xf32, #tpu.memory_space<vmem>>, vector<1x64xf32>
    %12 = vector.broadcast %11 : vector<1x64xf32> to vector<512x64xf32>
    %13 = arith.addf %10, %12 : vector<512x64xf32>
    %14 = arith.truncf %13 : vector<512x64xf32> to vector<512x64xbf16>
    %c0_12 = arith.constant 0 : index
    %c0_13 = arith.constant 0 : index
    %15 = vector.load %arg9[%c0_12, %c0_13] : memref<512x64xbf16, #tpu.memory_space<vmem>>, vector<512x64xbf16>
    tpu.vector_store %arg9[%c0_12, %c0_13], %14 {strides = array<i32>} : memref<512x64xbf16, #tpu.memory_space<vmem>>, vector<512x64xbf16>,
    %c0_14 = arith.constant 0 : index
    %c0_15 = arith.constant 0 : index
    %16 = vector.load %arg4[%c0_14, %c0_15] : memref<64x64xbf16, #tpu.memory_space<vmem>>, vector<64x64xbf16>
    %cst_16 = arith.constant dense<0.000000e+00> : vector<512x64xf32>
    %17 = tpu.matmul %1, %16, %cst_16 {dimension_numbers = #tpu.dot_dimension_numbers<[1], [0], [0], [1], [0, 0, 1, 1], [], []>} : vector<512x64xbf16>, vector<64x64xbf16>, vector<512x64xf32> -> vector<512x64xf32>
    %c0_17 = arith.constant 0 : index
    %c0_18 = arith.constant 0 : index
    %18 = vector.load %arg7[%c0_17, %c0_18] : memref<1x64xf32, #tpu.memory_space<vmem>>, vector<1x64xf32>
    %19 = vector.broadcast %18 : vector<1x64xf32> to vector<512x64xf32>
    %20 = arith.addf %17, %19 : vector<512x64xf32>
    %21 = arith.truncf %20 : vector<512x64xf32> to vector<512x64xbf16>
    %c0_19 = arith.constant 0 : index
    %c0_20 = arith.constant 0 : index
    %22 = vector.load %arg10[%c0_19, %c0_20] : memref<512x64xbf16, #tpu.memory_space<vmem>>, vector<512x64xbf16>
    tpu.vector_store %arg10[%c0_19, %c0_20], %21 {strides = array<i32>} : memref<512x64xbf16, #tpu.memory_space<vmem>>, vector<512x64xbf16>,
    return
  }
  func.func @transform_0(%arg0: i32) -> (i32, i32) {
    %c0_i32 = arith.constant 0 : i32
    %c0_i32_0 = arith.constant 0 : i32
    return %arg0, %c0_i32 : i32, i32
  }
  func.func @transform_1(%arg0: i32) -> (i32, i32) {
    %c0_i32 = arith.constant 0 : i32
    %c0_i32_0 = arith.constant 0 : i32
    %c0_i32_1 = arith.constant 0 : i32
    return %c0_i32, %c0_i32_0 : i32, i32
  }
  func.func @transform_2(%arg0: i32) -> (i32, i32) {
    %c0_i32 = arith.constant 0 : i32
    %c0_i32_0 = arith.constant 0 : i32
    %c0_i32_1 = arith.constant 0 : i32
    return %c0_i32, %c0_i32_0 : i32, i32
  }
  func.func @transform_3(%arg0: i32) -> (i32, i32) {
    %c0_i32 = arith.constant 0 : i32
    %c0_i32_0 = arith.constant 0 : i32
    %c0_i32_1 = arith.constant 0 : i32
    return %c0_i32, %c0_i32_0 : i32, i32
  }
  func.func @transform_4(%arg0: i32) -> (i32, i32) {
    %c0_i32 = arith.constant 0 : i32
    %c0_i32_0 = arith.constant 0 : i32
    %c0_i32_1 = arith.constant 0 : i32
    return %c0_i32, %c0_i32_0 : i32, i32
  }
  func.func @transform_5(%arg0: i32) -> (i32, i32) {
    %c0_i32 = arith.constant 0 : i32
    %c0_i32_0 = arith.constant 0 : i32
    %c0_i32_1 = arith.constant 0 : i32
    return %c0_i32, %c0_i32_0 : i32, i32
  }
  func.func @transform_6(%arg0: i32) -> (i32, i32) {
    %c0_i32 = arith.constant 0 : i32
    %c0_i32_0 = arith.constant 0 : i32
    %c0_i32_1 = arith.constant 0 : i32
    return %c0_i32, %c0_i32_0 : i32, i32
  }
  func.func @transform_7(%arg0: i32) -> (i32, i32) {
    %c0_i32 = arith.constant 0 : i32
    %c0_i32_0 = arith.constant 0 : i32
    return %arg0, %c0_i32 : i32, i32
  }
  func.func @transform_8(%arg0: i32) -> (i32, i32) {
    %c0_i32 = arith.constant 0 : i32
    %c0_i32_0 = arith.constant 0 : i32
    return %arg0, %c0_i32 : i32, i32
  }
  func.func @transform_9(%arg0: i32) -> (i32, i32) {
    %c0_i32 = arith.constant 0 : i32
    %c0_i32_0 = arith.constant 0 : i32
    return %arg0, %c0_i32 : i32, i32
  }
}

module attributes {stable_mosaic.version = 11 : i64} {
  func.func @_flash_attn_kernel(%arg0: i32, %arg1: i32, %arg2: memref<3xi32, #tpu.memory_space<smem>>, %arg3: memref<3xi32, #tpu.memory_space<smem>>, %arg4: memref<1x256x16xbf16, #tpu.memory_space<vmem>>, %arg5: memref<1x256x16xbf16, #tpu.memory_space<vmem>>, %arg6: memref<1x256x16xbf16, #tpu.memory_space<vmem>>, %arg7: memref<1x256x16xbf16, #tpu.memory_space<vmem>>, %arg8: memref<256x16xf32, #tpu.memory_space<vmem>>, %arg9: memref<256x1xf32, #tpu.memory_space<vmem>>, %arg10: memref<256x1xf32, #tpu.memory_space<vmem>>) attributes {dimension_semantics = [#tpu.dimension_semantics<parallel>, #tpu.dimension_semantics<arbitrary>], iteration_bounds = array<i64: 8, 3>, scalar_prefetch = 2 : i64, scratch_operands = 3 : i64, tpu.core_type = #tpu.core_type<tc>, window_params = [{transform_indices = @transform_0, window_bounds = array<i64: 1, 256, 16>}, {transform_indices = @transform_1, window_bounds = array<i64: 1, 256, 16>}, {transform_indices = @transform_2, window_bounds = array<i64: 1, 256, 16>}, {transform_indices = @transform_3, window_bounds = array<i64: 1, 256, 16>}]} {
    %0 = arith.index_cast %arg1 : i32 to index
    %1 = memref.load %arg2[%0] : memref<3xi32, #tpu.memory_space<smem>>
    %2 = arith.index_cast %arg1 : i32 to index
    %3 = memref.load %arg3[%2] : memref<3xi32, #tpu.memory_space<smem>>
    %c0_i32 = arith.constant 0 : i32
    %4 = arith.cmpi eq, %3, %c0_i32 : i32
    %5 = arith.extui %4 : i1 to i32
    %c0_i32_0 = arith.constant 0 : i32
    %6 = arith.cmpi ne, %5, %c0_i32_0 : i32
    scf.if %6 {
      %cst_27 = arith.constant 0xFF800000 : f32
      %51 = vector.broadcast %cst_27 : f32 to vector<256x1xf32>
      %c0_28 = arith.constant 0 : index
      %c0_29 = arith.constant 0 : index
      %52 = vector.load %arg9[%c0_28, %c0_29] : memref<256x1xf32, #tpu.memory_space<vmem>>, vector<256x1xf32>
      tpu.vector_store %arg9[%c0_28, %c0_29], %51 {strides = array<i32>} : memref<256x1xf32, #tpu.memory_space<vmem>>, vector<256x1xf32>,
      %cst_30 = arith.constant 0.000000e+00 : f32
      %53 = vector.broadcast %cst_30 : f32 to vector<256x1xf32>
      %c0_31 = arith.constant 0 : index
      %c0_32 = arith.constant 0 : index
      %54 = vector.load %arg10[%c0_31, %c0_32] : memref<256x1xf32, #tpu.memory_space<vmem>>, vector<256x1xf32>
      tpu.vector_store %arg10[%c0_31, %c0_32], %53 {strides = array<i32>} : memref<256x1xf32, #tpu.memory_space<vmem>>, vector<256x1xf32>,
      %cst_33 = arith.constant 0.000000e+00 : f32
      %55 = vector.broadcast %cst_33 : f32 to vector<256x16xf32>
      %c0_34 = arith.constant 0 : index
      %c0_35 = arith.constant 0 : index
      %56 = vector.load %arg8[%c0_34, %c0_35] : memref<256x16xf32, #tpu.memory_space<vmem>>, vector<256x16xf32>
      tpu.vector_store %arg8[%c0_34, %c0_35], %55 {strides = array<i32>} : memref<256x16xf32, #tpu.memory_space<vmem>>, vector<256x16xf32>,
    } else {
    }
    %c0 = arith.constant 0 : index
    %c0_1 = arith.constant 0 : index
    %c0_2 = arith.constant 0 : index
    %7 = vector.load %arg4[%c0, %c0_1, %c0_2] : memref<1x256x16xbf16, #tpu.memory_space<vmem>>, vector<1x256x16xbf16>
    %8 = vector.shape_cast %7 : vector<1x256x16xbf16> to vector<256x16xbf16>
    %c0_3 = arith.constant 0 : index
    %c0_4 = arith.constant 0 : index
    %c0_5 = arith.constant 0 : index
    %9 = vector.load %arg5[%c0_3, %c0_4, %c0_5] : memref<1x256x16xbf16, #tpu.memory_space<vmem>>, vector<1x256x16xbf16>
    %10 = vector.shape_cast %9 : vector<1x256x16xbf16> to vector<256x16xbf16>
    %c0_6 = arith.constant 0 : index
    %c0_7 = arith.constant 0 : index
    %c0_8 = arith.constant 0 : index
    %11 = vector.load %arg6[%c0_6, %c0_7, %c0_8] : memref<1x256x16xbf16, #tpu.memory_space<vmem>>, vector<1x256x16xbf16>
    %12 = vector.shape_cast %11 : vector<1x256x16xbf16> to vector<256x16xbf16>
    %cst = arith.constant dense<0.000000e+00> : vector<256x256xf32>
    %13 = tpu.matmul %8, %10, %cst {dimension_numbers = #tpu.dot_dimension_numbers<[1], [1], [0], [0], [0, 0, 1, 0], [], []>} : vector<256x16xbf16>, vector<256x16xbf16>, vector<256x256xf32> -> vector<256x256xf32>
    %c256_i32 = arith.constant 256 : i32
    %14 = arith.muli %1, %c256_i32 : i32
    %15 = tpu.iota {dimensions = array<i32: 0>} : vector<256x256xi32>
    %16 = vector.broadcast %14 : i32 to vector<256x256xi32>
    %17 = arith.addi %16, %15 : vector<256x256xi32>
    %c256_i32_9 = arith.constant 256 : i32
    %18 = arith.muli %3, %c256_i32_9 : i32
    %19 = tpu.iota {dimensions = array<i32: 1>} : vector<256x256xi32>
    %20 = vector.broadcast %18 : i32 to vector<256x256xi32>
    %21 = arith.addi %20, %19 : vector<256x256xi32>
    %22 = arith.cmpi sle, %21, %17 : vector<256x256xi32>
    %cst_10 = arith.constant -1.000000e+30 : f32
    %23 = vector.broadcast %cst_10 : f32 to vector<256x256xf32>
    %24 = arith.select %22, %13, %23 : vector<256x256xi1>, vector<256x256xf32>
    %c0_11 = arith.constant 0 : index
    %c0_12 = arith.constant 0 : index
    %25 = vector.load %arg9[%c0_11, %c0_12] : memref<256x1xf32, #tpu.memory_space<vmem>>, vector<256x1xf32>
    %cst_13 = arith.constant dense<0xFF800000> : vector<256xf32>
    %26 = vector.multi_reduction <maximumf>, %24, %cst_13 [1] : vector<256x256xf32> to vector<256xf32>
    %27 = vector.shape_cast %26 : vector<256xf32> to vector<256x1xf32>
    %28 = arith.maximumf %25, %27 : vector<256x1xf32>
    %29 = arith.subf %25, %28 : vector<256x1xf32>
    %30 = math.exp %29 : vector<256x1xf32>
    %31 = vector.broadcast %28 : vector<256x1xf32> to vector<256x256xf32>
    %32 = arith.subf %24, %31 : vector<256x256xf32>
    %33 = math.exp %32 : vector<256x256xf32>
    %c0_14 = arith.constant 0 : index
    %c0_15 = arith.constant 0 : index
    %34 = vector.load %arg10[%c0_14, %c0_15] : memref<256x1xf32, #tpu.memory_space<vmem>>, vector<256x1xf32>
    %35 = arith.mulf %30, %34 : vector<256x1xf32>
    %cst_16 = arith.constant dense<0.000000e+00> : vector<256xf32>
    %36 = vector.multi_reduction <add>, %33, %cst_16 [1] : vector<256x256xf32> to vector<256xf32>
    %37 = vector.shape_cast %36 : vector<256xf32> to vector<256x1xf32>
    %38 = arith.addf %35, %37 : vector<256x1xf32>
    %c0_17 = arith.constant 0 : index
    %c0_18 = arith.constant 0 : index
    %39 = vector.load %arg10[%c0_17, %c0_18] : memref<256x1xf32, #tpu.memory_space<vmem>>, vector<256x1xf32>
    tpu.vector_store %arg10[%c0_17, %c0_18], %38 {strides = array<i32>} : memref<256x1xf32, #tpu.memory_space<vmem>>, vector<256x1xf32>,
    %c0_19 = arith.constant 0 : index
    %c0_20 = arith.constant 0 : index
    %40 = vector.load %arg8[%c0_19, %c0_20] : memref<256x16xf32, #tpu.memory_space<vmem>>, vector<256x16xf32>
    %41 = vector.broadcast %30 : vector<256x1xf32> to vector<256x16xf32>
    %42 = arith.mulf %41, %40 : vector<256x16xf32>
    %43 = arith.truncf %33 : vector<256x256xf32> to vector<256x256xbf16>
    %cst_21 = arith.constant dense<0.000000e+00> : vector<256x16xf32>
    %44 = tpu.matmul %43, %12, %cst_21 {dimension_numbers = #tpu.dot_dimension_numbers<[1], [0], [0], [1], [0, 0, 1, 1], [], []>} : vector<256x256xbf16>, vector<256x16xbf16>, vector<256x16xf32> -> vector<256x16xf32>
    %45 = arith.addf %42, %44 : vector<256x16xf32>
    %c0_22 = arith.constant 0 : index
    %c0_23 = arith.constant 0 : index
    %46 = vector.load %arg8[%c0_22, %c0_23] : memref<256x16xf32, #tpu.memory_space<vmem>>, vector<256x16xf32>
    tpu.vector_store %arg8[%c0_22, %c0_23], %45 {strides = array<i32>} : memref<256x16xf32, #tpu.memory_space<vmem>>, vector<256x16xf32>,
    %c0_24 = arith.constant 0 : index
    %c0_25 = arith.constant 0 : index
    %47 = vector.load %arg9[%c0_24, %c0_25] : memref<256x1xf32, #tpu.memory_space<vmem>>, vector<256x1xf32>
    tpu.vector_store %arg9[%c0_24, %c0_25], %28 {strides = array<i32>} : memref<256x1xf32, #tpu.memory_space<vmem>>, vector<256x1xf32>,
    %48 = arith.cmpi eq, %3, %1 : i32
    %49 = arith.extui %48 : i1 to i32
    %c0_i32_26 = arith.constant 0 : i32
    %50 = arith.cmpi ne, %49, %c0_i32_26 : i32
    scf.if %50 {
      %c0_27 = arith.constant 0 : index
      %c0_28 = arith.constant 0 : index
      %51 = vector.load %arg8[%c0_27, %c0_28] : memref<256x16xf32, #tpu.memory_space<vmem>>, vector<256x16xf32>
      %c0_29 = arith.constant 0 : index
      %c0_30 = arith.constant 0 : index
      %52 = vector.load %arg10[%c0_29, %c0_30] : memref<256x1xf32, #tpu.memory_space<vmem>>, vector<256x1xf32>
      %53 = vector.broadcast %52 : vector<256x1xf32> to vector<256x16xf32>
      %54 = arith.divf %51, %53 : vector<256x16xf32>
      %55 = arith.truncf %54 : vector<256x16xf32> to vector<256x16xbf16>
      %c0_31 = arith.constant 0 : index
      %c0_32 = arith.constant 0 : index
      %c0_33 = arith.constant 0 : index
      %56 = vector.load %arg7[%c0_31, %c0_32, %c0_33] : memref<1x256x16xbf16, #tpu.memory_space<vmem>>, vector<1x256x16xbf16>
      %57 = vector.shape_cast %56 : vector<1x256x16xbf16> to vector<256x16xbf16>
      %58 = vector.shape_cast %55 : vector<256x16xbf16> to vector<1x256x16xbf16>
      tpu.vector_store %arg7[%c0_31, %c0_32, %c0_33], %58 {strides = array<i32>} : memref<1x256x16xbf16, #tpu.memory_space<vmem>>, vector<1x256x16xbf16>,
    } else {
    }
    return
  }
  func.func @transform_0(%arg0: i32, %arg1: i32, %arg2: memref<3xi32, #tpu.memory_space<smem>>, %arg3: memref<3xi32, #tpu.memory_space<smem>>) -> (i32, i32, i32) {
    %0 = arith.index_cast %arg1 : i32 to index
    %1 = memref.load %arg2[%0] : memref<3xi32, #tpu.memory_space<smem>>
    %c0_i32 = arith.constant 0 : i32
    %c0_i32_0 = arith.constant 0 : i32
    return %arg0, %1, %c0_i32 : i32, i32, i32
  }
  func.func @transform_1(%arg0: i32, %arg1: i32, %arg2: memref<3xi32, #tpu.memory_space<smem>>, %arg3: memref<3xi32, #tpu.memory_space<smem>>) -> (i32, i32, i32) {
    %0 = arith.index_cast %arg1 : i32 to index
    %1 = memref.load %arg3[%0] : memref<3xi32, #tpu.memory_space<smem>>
    %c0_i32 = arith.constant 0 : i32
    %c0_i32_0 = arith.constant 0 : i32
    return %arg0, %1, %c0_i32 : i32, i32, i32
  }
  func.func @transform_2(%arg0: i32, %arg1: i32, %arg2: memref<3xi32, #tpu.memory_space<smem>>, %arg3: memref<3xi32, #tpu.memory_space<smem>>) -> (i32, i32, i32) {
    %0 = arith.index_cast %arg1 : i32 to index
    %1 = memref.load %arg3[%0] : memref<3xi32, #tpu.memory_space<smem>>
    %c0_i32 = arith.constant 0 : i32
    %c0_i32_0 = arith.constant 0 : i32
    return %arg0, %1, %c0_i32 : i32, i32, i32
  }
  func.func @transform_3(%arg0: i32, %arg1: i32, %arg2: memref<3xi32, #tpu.memory_space<smem>>, %arg3: memref<3xi32, #tpu.memory_space<smem>>) -> (i32, i32, i32) {
    %0 = arith.index_cast %arg1 : i32 to index
    %1 = memref.load %arg2[%0] : memref<3xi32, #tpu.memory_space<smem>>
    %c0_i32 = arith.constant 0 : i32
    %c0_i32_0 = arith.constant 0 : i32
    return %arg0, %1, %c0_i32 : i32, i32, i32
  }
}

module attributes {stable_mosaic.version = 11 : i64} {
  func.func @_out_proj_kernel(%arg0: i32, %arg1: memref<512x64xbf16, #tpu.memory_space<vmem>>, %arg2: memref<64x64xbf16, #tpu.memory_space<vmem>>, %arg3: memref<1x64xf32, #tpu.memory_space<vmem>>, %arg4: memref<512x64xf32, #tpu.memory_space<vmem>>) attributes {dimension_semantics = [#tpu.dimension_semantics<parallel>], iteration_bounds = array<i64: 2>, scalar_prefetch = 0 : i64, scratch_operands = 0 : i64, tpu.core_type = #tpu.core_type<tc>, window_params = [{transform_indices = @transform_0, window_bounds = array<i64: 512, 64>}, {pipeline_mode = #tpu.pipeline_mode<synchronous>, transform_indices = @transform_1, window_bounds = array<i64: 64, 64>}, {pipeline_mode = #tpu.pipeline_mode<synchronous>, transform_indices = @transform_2, window_bounds = array<i64: 1, 64>}, {transform_indices = @transform_3, window_bounds = array<i64: 512, 64>}]} {
    %c0 = arith.constant 0 : index
    %c0_0 = arith.constant 0 : index
    %0 = vector.load %arg1[%c0, %c0_0] : memref<512x64xbf16, #tpu.memory_space<vmem>>, vector<512x64xbf16>
    %c0_1 = arith.constant 0 : index
    %c0_2 = arith.constant 0 : index
    %1 = vector.load %arg2[%c0_1, %c0_2] : memref<64x64xbf16, #tpu.memory_space<vmem>>, vector<64x64xbf16>
    %cst = arith.constant dense<0.000000e+00> : vector<512x64xf32>
    %2 = tpu.matmul %0, %1, %cst {dimension_numbers = #tpu.dot_dimension_numbers<[1], [0], [0], [1], [0, 0, 1, 1], [], []>} : vector<512x64xbf16>, vector<64x64xbf16>, vector<512x64xf32> -> vector<512x64xf32>
    %c0_3 = arith.constant 0 : index
    %c0_4 = arith.constant 0 : index
    %3 = vector.load %arg3[%c0_3, %c0_4] : memref<1x64xf32, #tpu.memory_space<vmem>>, vector<1x64xf32>
    %4 = vector.broadcast %3 : vector<1x64xf32> to vector<512x64xf32>
    %5 = arith.addf %2, %4 : vector<512x64xf32>
    %c0_5 = arith.constant 0 : index
    %c0_6 = arith.constant 0 : index
    %6 = vector.load %arg4[%c0_5, %c0_6] : memref<512x64xf32, #tpu.memory_space<vmem>>, vector<512x64xf32>
    tpu.vector_store %arg4[%c0_5, %c0_6], %5 {strides = array<i32>} : memref<512x64xf32, #tpu.memory_space<vmem>>, vector<512x64xf32>,
    return
  }
  func.func @transform_0(%arg0: i32) -> (i32, i32) {
    %c0_i32 = arith.constant 0 : i32
    %c0_i32_0 = arith.constant 0 : i32
    return %arg0, %c0_i32 : i32, i32
  }
  func.func @transform_1(%arg0: i32) -> (i32, i32) {
    %c0_i32 = arith.constant 0 : i32
    %c0_i32_0 = arith.constant 0 : i32
    %c0_i32_1 = arith.constant 0 : i32
    return %c0_i32, %c0_i32_0 : i32, i32
  }
  func.func @transform_2(%arg0: i32) -> (i32, i32) {
    %c0_i32 = arith.constant 0 : i32
    %c0_i32_0 = arith.constant 0 : i32
    %c0_i32_1 = arith.constant 0 : i32
    return %c0_i32, %c0_i32_0 : i32, i32
  }
  func.func @transform_3(%arg0: i32) -> (i32, i32) {
    %c0_i32 = arith.constant 0 : i32
    %c0_i32_0 = arith.constant 0 : i32
    return %arg0, %c0_i32 : i32, i32
  }
}

</mosaic_0001>

<bundles_post_ra>
// kernel: causal_self_attention_forward.3
= control target key start
LH: loop header
LB: loop body
LE: loop exit
PB: predicated region body
PF: predicated region fallthrough
CT: control target
= control target key end

     0   :  { %s3548_s30 = smov 0   ;;  %s4512_s0 = inlined_call_operand.vmem [shape: f32[1024,64], index: 0, kind: input, shape index: {}]   ;;  %s4513_s1 = inlined_call_operand.vmem [shape: bf16[64,64], index: 1, kind: input, shape index: {}]   ;;  %s4514_s2 = inlined_call_operand.vmem [shape: bf16[64,64], index: 2, kind: input, shape index: {}]   ;;  %s4515_s3 = inlined_call_operand.vmem [shape: bf16[64,64], index: 3, kind: input, shape index: {}]   ;;  %s4516_s4 = inlined_call_operand.vmem [shape: f32[1,64], index: 4, kind: input, shape index: {}]   ;;  %s4517_s5 = inlined_call_operand.vmem [shape: f32[1,64], index: 5, kind: input, shape index: {}]   ;;  %s4518_s6 = inlined_call_operand.vmem [shape: f32[1,64], index: 6, kind: input, shape index: {}]   ;;  %s4519_s7 = inlined_call_operand.vmem [shape: bf16[1024,64], index: 7, kind: output, shape index: {0}]   ;;  %s4520_s8 = inlined_call_operand.vmem [shape: bf16[1024,64], index: 8, kind: output, shape index: {1}]   ;;  %s4521_s9 = inlined_call_operand.vmem [shape: bf16[1024,64], index: 9, kind: output, shape index: {2}]  }
   0x1 LB: > { %s2626_s10 = sadd.s32 4294967295, %s3496_s30   ;;  %p2630_p0 = scmp.ge.s32.totalorder %s3496_s30, 1  ;;  %s3496_s30 = sphi %s3548_s30, %s20_s30  }
   0x2   : > { %p293_p1 = scmp.lt.s32.totalorder %s3496_s30, 3 }
   0x4   : > { %p294_p2 = pnand %p2630_p0, %p293_p1 }
   0x5   : > { %s2631_s13 = sshll.u32 (!%p294_p2), %s2626_s10, 6 }
   0x6   : > { %297 = sbr.rel (%p294_p2) target bundleno = 417 (0x1a1), region = 48  ;;  %p340_p3 = scmp.lt.s32.totalorder (!%p294_p2), %s2631_s13, 127 }
   0xb   : > { %v3476_v0 = vld [vmem:[%s4513_s1 + $0x18] sm:$0xff]   ;;  %v3477_v1 = vld [vmem:[%s4513_s1 + $0x10] sm:$0xff]   ;;  %s4523_s13 = smov (!%p340_p3, %s2631_s13), 127  ;;  %v3478_v2 = vld [vmem:[%s4513_s1 + $0x8] sm:$0xff]   ;;  %vm499_vm0 = vcmask 523264   ;;  %vm1141_vm1 = vcmask 519168  }
   0xc   : > { %3244 = vmatprep.subr.bf16.mxu0 %v3476_v0  ;;  %3460 = vmatprep.subr.bf16.mxu1 %v3476_v0  ;;  %s2632_s18 = sshll.u32 %s4523_s13, 3  ;;  %v3479_v6 = vld [vmem:[%s4513_s1] sm:$0xff]   ;;  %v3480_v14 = vld [vmem:[%s4514_s2 + $0x18] sm:$0xff]   ;;  %v3482_v24 = vld [vmem:[%s4514_s2 + $0x10] sm:$0xff]   ;;  %s3901_s23 = sshll.u32 %s4523_s13, 2 }
   0xd   : > { %3245 = vmatpush3.bf16.msra.mxu0 %v3476_v0  ;;  %3464 = vmatpush3.bf16.msra.mxu1 %v3476_v0  ;;  %s3571_s21 = scalar_lea.vmem %s4512_s0, %s2632_s18  ;;  %v3481_v15 = vld [vmem:[%s4515_s3 + $0x18] sm:$0xff]   ;;  %v3483_v25 = vld [vmem:[%s4515_s3 + $0x10] sm:$0xff]   ;;  %v3484_v36 = vld [vmem:[%s4514_s2 + $0x8] sm:$0xff]   ;;  %s3909_s26 = scalar_lea.vmem %s4519_s7, %s3901_s23 }
   0xe   : > { %3246 = vmatprep.subr.bf16.mxu0 %v3477_v1  ;;  %3461 = vmatprep.subr.bf16.mxu1 %v3477_v1  ;;  %v364_v3 = vld [vmem:[%s3571_s21] sm:$0xff]  ;;  %v365_v4 = vld [vmem:[%s3571_s21 + $0x8] sm:$0xff]  ;;  %v366_v10 = vld [vmem:[%s3571_s21 + $0x10] sm:$0xff]  ;;  %s4113_s12 = scalar_lea.vmem %s4520_s8, %s3901_s23  ;;  %s4119_s16 = scalar_lea.vmem %s4521_s9, %s3901_s23 }
   0xf   : > { %v396_v5 = vld [vmem:[%s3571_s21 + $0x100] sm:$0xff]  ;;  %v3579_v7 = vpack.c.bf16 %v365_v4, %v364_v3  ;;  %v397_v8 = vld [vmem:[%s3571_s21 + $0x108] sm:$0xff]  ;;  %v367_v11 = vld [vmem:[%s3571_s21 + $0x18] sm:$0xff] }
  0x10   : > { %v3582_v9 = vpack.c.bf16 %v397_v8, %v396_v5  ;;  %v398_v12 = vld [vmem:[%s3571_s21 + $0x110] sm:$0xff]  ;;  %v399_v13 = vld [vmem:[%s3571_s21 + $0x118] sm:$0xff]  ;;  %v368_v16 = vld [vmem:[%s3571_s21 + $0x20] sm:$0xff]  ;;  %v3602_v20 = vpack.c.bf16 %v367_v11, %v366_v10 }
  0x11   : > { %3247 = vmatpush3.bf16.msra.mxu0 %v3477_v1  ;;  %3465 = vmatpush3.bf16.msra.mxu1 %v3477_v1  ;;  %v369_v17 = vld [vmem:[%s3571_s21 + $0x28] sm:$0xff]  ;;  %v400_v18 = vld [vmem:[%s3571_s21 + $0x120] sm:$0xff]  ;;  %v3604_v21 = vpack.c.bf16 %v399_v13, %v398_v12  ;;  %v370_v26 = vld [vmem:[%s3571_s21 + $0x30] sm:$0xff] }
  0x12   : > { %3248 = vmatprep.subr.bf16.mxu0 %v3478_v2  ;;  %3462 = vmatprep.subr.bf16.mxu1 %v3478_v2  ;;  %v401_v19 = vld [vmem:[%s3571_s21 + $0x128] sm:$0xff]  ;;  %v3606_v22 = vpack.c.bf16 %v369_v17, %v368_v16  ;;  %v371_v27 = vld [vmem:[%s3571_s21 + $0x38] sm:$0xff]  ;;  %v402_v28 = vld [vmem:[%s3571_s21 + $0x130] sm:$0xff] }
  0x13   : > { %3252 = vmatprep.mubr.msk.bf16.mxu0 %vm499_vm0, %v3579_v7  ;;  %3284 = vmatprep.mubr.msk.bf16.mxu1 %vm499_vm0, %v3582_v9  ;;  %v3608_v23 = vpack.c.bf16 %v401_v19, %v400_v18  ;;  %v403_v29 = vld [vmem:[%s3571_s21 + $0x138] sm:$0xff]  ;;  %v372_v30 = vld [vmem:[%s3571_s21 + $0x40] sm:$0xff]  ;;  %v373_v31 = vld [vmem:[%s3571_s21 + $0x48] sm:$0xff]  ;;  %v3632_v34 = vpack.c.bf16 %v371_v27, %v370_v26 }
  0x14   : > { %v404_v32 = vld [vmem:[%s3571_s21 + $0x140] sm:$0xff]  ;;  %v405_v33 = vld [vmem:[%s3571_s21 + $0x148] sm:$0xff]  ;;  %v3634_v35 = vpack.c.bf16 %v403_v29, %v402_v28  ;;  %v3639_v37 = vpack.c.bf16 %v373_v31, %v372_v30  ;;  %v374_v40 = vld [vmem:[%s3571_s21 + $0x50] sm:$0xff] }
  0x15   : > { %3249 = vmatpush3.bf16.msra.mxu0 %v3478_v2  ;;  %3466 = vmatpush3.bf16.msra.mxu1 %v3478_v2  ;;  %v3641_v38 = vpack.c.bf16 %v405_v33, %v404_v32  ;;  %v3485_v39 = vld [vmem:[%s4515_s3 + $0x8] sm:$0xff]   ;;  %v375_v41 = vld [vmem:[%s3571_s21 + $0x58] sm:$0xff]  ;;  %v406_v42 = vld [vmem:[%s3571_s21 + $0x150] sm:$0xff] }
  0x16   : > { %3250 = vmatprep.subr.bf16.mxu0 %v3479_v6  ;;  %3463 = vmatprep.subr.bf16.mxu1 %v3479_v6  ;;  %v407_v43 = vld [vmem:[%s3571_s21 + $0x158] sm:$0xff]  ;;  %v376_v44 = vld [vmem:[%s3571_s21 + $0x60] sm:$0xff]  ;;  %v377_v45 = vld [vmem:[%s3571_s21 + $0x68] sm:$0xff]  ;;  %v3665_v49 = vpack.c.bf16 %v375_v41, %v374_v40 }
  0x17   : > { %v408_v46 = vld [vmem:[%s3571_s21 + $0x160] sm:$0xff]  ;;  %v409_v47 = vld [vmem:[%s3571_s21 + $0x168] sm:$0xff]  ;;  %v3667_v50 = vpack.c.bf16 %v407_v43, %v406_v42  ;;  %v3672_v52 = vpack.c.bf16 %v377_v45, %v376_v44  ;;  %v378_v54 = vld [vmem:[%s3571_s21 + $0x70] sm:$0xff] }
  0x18   : > { %v3486_v48 = vld [vmem:[%s4514_s2] sm:$0xff]   ;;  %v3674_v53 = vpack.c.bf16 %v409_v47, %v408_v46  ;;  %v379_v55 = vld [vmem:[%s3571_s21 + $0x78] sm:$0xff]  ;;  %v410_v56 = vld [vmem:[%s3571_s21 + $0x170] sm:$0xff] }
  0x19   : > { %3251 = vmatpush3.bf16.msra.mxu0 %v3479_v6  ;;  %3467 = vmatpush3.bf16.msra.mxu1 %v3479_v6  ;;  %v3487_v51 = vld [vmem:[%s4515_s3] sm:$0xff]   ;;  %v411_v57 = vld [vmem:[%s3571_s21 + $0x178] sm:$0xff]  ;;  %v381_v59 = vld [vmem:[%s3571_s21 + $0x88] sm:$0xff]  ;;  %v3692_v62 = vpack.c.bf16 %v379_v55, %v378_v54 }
  0x1a   : > { %3316 = vmatprep.subr.bf16.mxu1 %v3480_v14  ;;  %3388 = vmatprep.subr.bf16.mxu0 %v3481_v15  ;;  %v380_v58 = vld [vmem:[%s3571_s21 + $0x80] sm:$0xff]  ;;  %v413_v61 = vld [vmem:[%s3571_s21 + $0x188] sm:$0xff]  ;;  %v3694_v63 = vpack.c.bf16 %v411_v57, %v410_v56  ;;  %v382_v2 = vld [vmem:[%s3571_s21 + $0x90] sm:$0xff] }
  0x1b   : > { %v412_v60 = vld [vmem:[%s3571_s21 + $0x180] sm:$0xff]  ;;  %v3696_v0 = vpack.c.bf16 %v381_v59, %v380_v58  ;;  %v383_v3 = vld [vmem:[%s3571_s21 + $0x98] sm:$0xff]  ;;  %v414_v4 = vld [vmem:[%s3571_s21 + $0x190] sm:$0xff] }
  0x1c   : > { %3253 = vmatmul.mubr.msk.bf16.vlgmr.msra.gmra.mxu0 %vm499_vm0, %v3602_v20  ;;  %3285 = vmatmul.mubr.msk.bf16.vlgmr.msra.gmra.mxu1 %vm499_vm0, %v3604_v21  ;;  %v3698_v1 = vpack.c.bf16 %v413_v61, %v412_v60  ;;  %v415_v5 = vld [vmem:[%s3571_s21 + $0x198] sm:$0xff]  ;;  %v384_v6 = vld [vmem:[%s3571_s21 + $0xa0] sm:$0xff]  ;;  %v385_v8 = vld [vmem:[%s3571_s21 + $0xa8] sm:$0xff]  ;;  %v3716_v12 = vpack.c.bf16 %v383_v3, %v382_v2 }
  0x1d   : > { %3317 = vmatpush3.bf16.msra.mxu1 %v3480_v14  ;;  %3389 = vmatpush3.bf16.msra.mxu0 %v3481_v15  ;;  %v416_v10 = vld [vmem:[%s3571_s21 + $0x1a0] sm:$0xff]  ;;  %v417_v11 = vld [vmem:[%s3571_s21 + $0x1a8] sm:$0xff]  ;;  %v3718_v13 = vpack.c.bf16 %v415_v5, %v414_v4  ;;  %v3720_v14 = vpack.c.bf16 %v385_v8, %v384_v6  ;;  %v386_v16 = vld [vmem:[%s3571_s21 + $0xb0] sm:$0xff] }
  0x1e   : > { %3256 = vmatprep.mubr.msk.bf16.mxu0 %vm499_vm0, %v3606_v22  ;;  %3288 = vmatprep.mubr.msk.bf16.mxu1 %vm499_vm0, %v3608_v23  ;;  %v3722_v15 = vpack.c.bf16 %v417_v11, %v416_v10  ;;  %v387_v17 = vld [vmem:[%s3571_s21 + $0xb8] sm:$0xff]  ;;  %v418_v18 = vld [vmem:[%s3571_s21 + $0x1b0] sm:$0xff]  ;;  %v420_v26 = vld [vmem:[%s3571_s21 + $0x1c0] sm:$0xff] }
  0x1f   : > { %3318 = vmatprep.subr.bf16.mxu1 %v3482_v24  ;;  %3390 = vmatprep.subr.bf16.mxu0 %v3483_v25  ;;  %v419_v19 = vld [vmem:[%s3571_s21 + $0x1b8] sm:$0xff]  ;;  %v421_v27 = vld [vmem:[%s3571_s21 + $0x1c8] sm:$0xff]  ;;  %v439_v28 = vpack.c.bf16 %v387_v17, %v386_v16  ;;  %v390_v32 = vld [vmem:[%s3571_s21 + $0xd0] sm:$0xff] }
  0x20   : > { %v3740_v29 = vpack.c.bf16 %v419_v19, %v418_v18  ;;  %v3742_v31 = vpack.c.bf16 %v421_v27, %v420_v26  ;;  %v391_v33 = vld [vmem:[%s3571_s21 + $0xd8] sm:$0xff]  ;;  %v392_v40 = vld [vmem:[%s3571_s21 + $0xe0] sm:$0xff]  ;;  %v393_v41 = vld [vmem:[%s3571_s21 + $0xe8] sm:$0xff] }
  0x21   : > { %3319 = vmatpush3.bf16.msra.mxu1 %v3482_v24  ;;  %3391 = vmatpush3.bf16.msra.mxu0 %v3483_v25  ;;  %v388_v24 = vld [vmem:[%s3571_s21 + $0xc0] sm:$0xff]  ;;  %v389_v25 = vld [vmem:[%s3571_s21 + $0xc8] sm:$0xff]  ;;  %v441_v44 = vpack.c.bf16 %v391_v33, %v390_v32  ;;  %v442_v46 = vpack.c.bf16 %v393_v41, %v392_v40  ;;  %v426_v54 = vld [vmem:[%s3571_s21 + $0x1f0] sm:$0xff] }
  0x22   : > { %3320 = vmatprep.subr.bf16.mxu1 %v3484_v36  ;;  %3392 = vmatprep.subr.bf16.mxu0 %v3485_v39  ;;  %v440_v30 = vpack.c.bf16 %v389_v25, %v388_v24  ;;  %v424_v42 = vld [vmem:[%s3571_s21 + $0x1e0] sm:$0xff]  ;;  %v425_v43 = vld [vmem:[%s3571_s21 + $0x1e8] sm:$0xff]  ;;  %v427_v55 = vld [vmem:[%s3571_s21 + $0x1f8] sm:$0xff] }
  0x23   : > { %v3760_v47 = vpack.c.bf16 %v425_v43, %v424_v42  ;;  %v3772_v57 = vpack.c.bf16 %v427_v55, %v426_v54 }
  0x24   : > { %3257 = vmatmul.mubr.msk.bf16.gmra.mxu0 %vm499_vm0, %v3632_v34  ;;  %3289 = vmatmul.mubr.msk.bf16.gmra.mxu1 %vm499_vm0, %v3634_v35 }
  0x25   : > { %3260 = vmatprep.mubr.msk.bf16.mxu0 %vm499_vm0, %v3639_v37  ;;  %3292 = vmatprep.mubr.msk.bf16.mxu1 %vm499_vm0, %v3641_v38 }
  0x26   : > { %3321 = vmatpush3.bf16.msra.mxu1 %v3484_v36  ;;  %3393 = vmatpush3.bf16.msra.mxu0 %v3485_v39  ;;  %v422_v36 = vld [vmem:[%s3571_s21 + $0x1d0] sm:$0xff]  ;;  %v423_v39 = vld [vmem:[%s3571_s21 + $0x1d8] sm:$0xff] }
  0x27   : > { %3322 = vmatprep.subr.bf16.mxu1 %v3486_v48  ;;  %3394 = vmatprep.subr.bf16.mxu0 %v3487_v51  ;;  %v3758_v45 = vpack.c.bf16 %v423_v39, %v422_v36 }
  0x2a   : > { %3323 = vmatpush3.bf16.msra.mxu1 %v3486_v48  ;;  %3395 = vmatpush3.bf16.msra.mxu0 %v3487_v51  ;;  %v394_v48 = vld [vmem:[%s3571_s21 + $0xf0] sm:$0xff]  ;;  %v395_v51 = vld [vmem:[%s3571_s21 + $0xf8] sm:$0xff] }
  0x2b   : > { %v443_v56 = vpack.c.bf16 %v395_v51, %v394_v48 }
  0x2c   : > { %3261 = vmatmul.mubr.msk.bf16.gmra.mxu0 %vm499_vm0, %v3665_v49  ;;  %3293 = vmatmul.mubr.msk.bf16.gmra.mxu1 %vm499_vm0, %v3667_v50 }
  0x2d   : > { %3264 = vmatprep.mubr.msk.bf16.mxu0 %vm499_vm0, %v3672_v52  ;;  %3296 = vmatprep.mubr.msk.bf16.mxu1 %vm499_vm0, %v3674_v53 }
  0x34   : > { %3265 = vmatmul.mubr.msk.bf16.gmra.mxu0 %vm499_vm0, %v3692_v62  ;;  %3297 = vmatmul.mubr.msk.bf16.gmra.mxu1 %vm499_vm0, %v3694_v63 }
  0x35   : > { %3268 = vmatprep.mubr.msk.bf16.mxu0 %vm499_vm0, %v3696_v0  ;;  %3300 = vmatprep.mubr.msk.bf16.mxu1 %vm499_vm0, %v3698_v1 }
  0x3c   : > { %3269 = vmatmul.mubr.msk.bf16.gmra.mxu0 %vm499_vm0, %v3716_v12  ;;  %3301 = vmatmul.mubr.msk.bf16.gmra.mxu1 %vm499_vm0, %v3718_v13 }
  0x3d   : > { %3272 = vmatprep.mubr.msk.bf16.mxu0 %vm499_vm0, %v3720_v14  ;;  %3304 = vmatprep.mubr.msk.bf16.mxu1 %vm499_vm0, %v3722_v15 }
  0x44   : > { %3273 = vmatmul.mubr.msk.bf16.gmra.mxu0 %vm499_vm0, %v439_v28  ;;  %3305 = vmatmul.mubr.msk.bf16.gmra.mxu1 %vm499_vm0, %v3740_v29 }
  0x45   : > { %3276 = vmatprep.mubr.msk.bf16.mxu0 %vm499_vm0, %v440_v30  ;;  %3308 = vmatprep.mubr.msk.bf16.mxu1 %vm499_vm0, %v3742_v31 }
  0x4c   : > { %3277 = vmatmul.mubr.msk.bf16.gmra.mxu0 %vm499_vm0, %v441_v44  ;;  %3309 = vmatmul.mubr.msk.bf16.gmra.mxu1 %vm499_vm0, %v3758_v45 }
  0x4d   : > { %3280 = vmatprep.mubr.msk.bf16.mxu0 %vm499_vm0, %v442_v46  ;;  %3312 = vmatprep.mubr.msk.bf16.mxu1 %vm499_vm0, %v3760_v47 }
  0x54   : > { %3281 = vmatmul.mubr.msk.bf16.gmra.mxu0 %vm499_vm0, %v443_v56  ;;  %3313 = vmatmul.mubr.msk.bf16.gmra.mxu1 %vm499_vm0, %v3772_v57 }
  0x55   : > { %3324 = vmatprep.mubr.msk.bf16.mxu1 %vm499_vm0, %v3579_v7  ;;  %3396 = vmatprep.mubr.msk.bf16.mxu0 %vm499_vm0, %v3579_v7  ;;  %v3898_v7 = vld [vmem:[%s4516_s4] ss:$0 sm:$0xff] }
  0x5c   : > { %3325 = vmatmul.mubr.msk.bf16.vlgmr.msra.gmra.mxu1 %vm499_vm0, %v3602_v20  ;;  %3397 = vmatmul.mubr.msk.bf16.vlgmr.msra.gmra.mxu0 %vm499_vm0, %v3602_v20 }
  0x5d   : > { %3328 = vmatprep.mubr.msk.bf16.mxu1 %vm499_vm0, %v3606_v22  ;;  %3400 = vmatprep.mubr.msk.bf16.mxu0 %vm499_vm0, %v3606_v22 }
  0x64   : > { %3329 = vmatmul.mubr.msk.bf16.gmra.mxu1 %vm499_vm0, %v3632_v34  ;;  %3401 = vmatmul.mubr.msk.bf16.gmra.mxu0 %vm499_vm0, %v3632_v34 }
  0x65   : > { %3332 = vmatprep.mubr.msk.bf16.mxu1 %vm499_vm0, %v3639_v37  ;;  %3404 = vmatprep.mubr.msk.bf16.mxu0 %vm499_vm0, %v3639_v37 }
  0x6c   : > { %3333 = vmatmul.mubr.msk.bf16.gmra.mxu1 %vm499_vm0, %v3665_v49  ;;  %3405 = vmatmul.mubr.msk.bf16.gmra.mxu0 %vm499_vm0, %v3665_v49 }
  0x6d   : > { %3336 = vmatprep.mubr.msk.bf16.mxu1 %vm499_vm0, %v3672_v52  ;;  %3408 = vmatprep.mubr.msk.bf16.mxu0 %vm499_vm0, %v3672_v52 }
  0x74   : > { %3337 = vmatmul.mubr.msk.bf16.gmra.mxu1 %vm499_vm0, %v3692_v62  ;;  %3409 = vmatmul.mubr.msk.bf16.gmra.mxu0 %vm499_vm0, %v3692_v62 }
  0x75   : > { %3340 = vmatprep.mubr.msk.bf16.mxu1 %vm499_vm0, %v3696_v0  ;;  %3412 = vmatprep.mubr.msk.bf16.mxu0 %vm499_vm0, %v3696_v0 }
  0x7c   : > { %3341 = vmatmul.mubr.msk.bf16.gmra.mxu1 %vm499_vm0, %v3716_v12  ;;  %3413 = vmatmul.mubr.msk.bf16.gmra.mxu0 %vm499_vm0, %v3716_v12 }
  0x7d   : > { %3344 = vmatprep.mubr.msk.bf16.mxu1 %vm499_vm0, %v3720_v14  ;;  %3416 = vmatprep.mubr.msk.bf16.mxu0 %vm499_vm0, %v3720_v14 }
  0x84   : > { %3345 = vmatmul.mubr.msk.bf16.gmra.mxu1 %vm499_vm0, %v439_v28  ;;  %3417 = vmatmul.mubr.msk.bf16.gmra.mxu0 %vm499_vm0, %v439_v28 }
  0x85   : > { %3348 = vmatprep.mubr.msk.bf16.mxu1 %vm499_vm0, %v440_v30  ;;  %3420 = vmatprep.mubr.msk.bf16.mxu0 %vm499_vm0, %v440_v30 }
  0x8c   : > { %3349 = vmatmul.mubr.msk.bf16.gmra.mxu1 %vm499_vm0, %v441_v44  ;;  %3421 = vmatmul.mubr.msk.bf16.gmra.mxu0 %vm499_vm0, %v441_v44 }
  0x8d   : > { %3352 = vmatprep.mubr.msk.bf16.mxu1 %vm499_vm0, %v442_v46  ;;  %3424 = vmatprep.mubr.msk.bf16.mxu0 %vm499_vm0, %v442_v46 }
  0x94   : > { %3353 = vmatmul.mubr.msk.bf16.gmra.mxu1 %vm499_vm0, %v443_v56  ;;  %3425 = vmatmul.mubr.msk.bf16.gmra.mxu0 %vm499_vm0, %v443_v56 }
  0x95   : > { %3356 = vmatprep.mubr.msk.bf16.mxu1 %vm499_vm0, %v3582_v9  ;;  %3428 = vmatprep.mubr.msk.bf16.mxu0 %vm499_vm0, %v3582_v9 }
  0x9c   : > { %3357 = vmatmul.mubr.msk.bf16.gmra.mxu1 %vm499_vm0, %v3604_v21  ;;  %3429 = vmatmul.mubr.msk.bf16.gmra.mxu0 %vm499_vm0, %v3604_v21 }
  0x9d   : > { %3360 = vmatprep.mubr.msk.bf16.mxu1 %vm499_vm0, %v3608_v23  ;;  %3432 = vmatprep.mubr.msk.bf16.mxu0 %vm499_vm0, %v3608_v23 }
  0xa4   : > { %3361 = vmatmul.mubr.msk.bf16.gmra.mxu1 %vm499_vm0, %v3634_v35  ;;  %3433 = vmatmul.mubr.msk.bf16.gmra.mxu0 %vm499_vm0, %v3634_v35 }
  0xa5   : > { %3364 = vmatprep.mubr.msk.bf16.mxu1 %vm499_vm0, %v3641_v38  ;;  %3436 = vmatprep.mubr.msk.bf16.mxu0 %vm499_vm0, %v3641_v38 }
  0xac   : > { %3365 = vmatmul.mubr.msk.bf16.gmra.mxu1 %vm499_vm0, %v3667_v50  ;;  %3437 = vmatmul.mubr.msk.bf16.gmra.mxu0 %vm499_vm0, %v3667_v50 }
  0xad   : > { %3368 = vmatprep.mubr.msk.bf16.mxu1 %vm499_vm0, %v3674_v53  ;;  %3440 = vmatprep.mubr.msk.bf16.mxu0 %vm499_vm0, %v3674_v53 }
  0xb4   : > { %3369 = vmatmul.mubr.msk.bf16.gmra.mxu1 %vm499_vm0, %v3694_v63  ;;  %3441 = vmatmul.mubr.msk.bf16.gmra.mxu0 %vm499_vm0, %v3694_v63 }
  0xb5   : > { %3372 = vmatprep.mubr.msk.bf16.mxu1 %vm499_vm0, %v3698_v1  ;;  %3444 = vmatprep.mubr.msk.bf16.mxu0 %vm499_vm0, %v3698_v1 }
  0xbc   : > { %3373 = vmatmul.mubr.msk.bf16.gmra.mxu1 %vm499_vm0, %v3718_v13  ;;  %3445 = vmatmul.mubr.msk.bf16.gmra.mxu0 %vm499_vm0, %v3718_v13 }
  0xbd   : > { %3376 = vmatprep.mubr.msk.bf16.mxu1 %vm499_vm0, %v3722_v15  ;;  %3448 = vmatprep.mubr.msk.bf16.mxu0 %vm499_vm0, %v3722_v15 }
  0xc4   : > { %3377 = vmatmul.mubr.msk.bf16.gmra.mxu1 %vm499_vm0, %v3740_v29  ;;  %3449 = vmatmul.mubr.msk.bf16.gmra.mxu0 %vm499_vm0, %v3740_v29 }
  0xc5   : > { %3380 = vmatprep.mubr.msk.bf16.mxu1 %vm499_vm0, %v3742_v31  ;;  %3452 = vmatprep.mubr.msk.bf16.mxu0 %vm499_vm0, %v3742_v31 }
  0xcc   : > { %3381 = vmatmul.mubr.msk.bf16.gmra.mxu1 %vm499_vm0, %v3758_v45  ;;  %3453 = vmatmul.mubr.msk.bf16.gmra.mxu0 %vm499_vm0, %v3758_v45 }
  0xcd   : > { %3384 = vmatprep.mubr.msk.bf16.mxu1 %vm499_vm0, %v3760_v47  ;;  %3456 = vmatprep.mubr.msk.bf16.mxu0 %vm499_vm0, %v3760_v47 }
  0xd4   : > { %3385 = vmatmul.mubr.msk.bf16.gmra.mxu1 %vm499_vm0, %v3772_v57  ;;  %3457 = vmatmul.mubr.msk.bf16.gmra.mxu0 %vm499_vm0, %v3772_v57 }
  0xdc   : > { %v3254_v9 = vpop.f32.mrf.mxu0  ;;  %v3286_v20 = vpop.f32.mrf.mxu1 }
  0xdd   : > { %v639_v21 = vadd.f32 %v3254_v9, %v3898_v7  ;;  %v767_v22 = vadd.f32 %v3286_v20, %v3898_v7 }
  0xde   : > { %v630_v23 = vpop.f32.mrf.mxu0  ;;  %v758_v34 = vpop.f32.mrf.mxu1 }
  0xdf   : > { %v2946_v35 = vpack.c.bf16 %v639_v21, %v639_v21  ;;  %v2978_v37 = vpack.c.bf16 %v767_v22, %v767_v22  ;;  %v631_v38 = vadd.f32 %v3898_v7, %v630_v23  ;;  %v759_v49 = vadd.f32 %v3898_v7, %v758_v34 }
  0xe0   : > { %v3255_v50 = vpop.f32.mrf.mxu0  ;;  %v3287_v52 = vpop.f32.mrf.mxu1 }
  0xe1   : > { %1144 = vst.msk [vmem:[%s3909_s26 + $0x8] sm:$0xf] %vm1141_vm1, %v2946_v35  ;;  %1176 = vst.msk [vmem:[%s3909_s26 + $0x88] sm:$0xf] %vm1141_vm1, %v2978_v37  ;;  %v2944_v53 = vpack.c.bf16 %v631_v38, %v631_v38  ;;  %v2976_v58 = vpack.c.bf16 %v759_v49, %v759_v49  ;;  %v642_v59 = vadd.f32 %v3255_v50, %v3898_v7 }
  0xe2   : > { %v770_v60 = vadd.f32 %v3287_v52, %v3898_v7  ;;  %v633_v61 = vpop.f32.mrf.mxu0  ;;  %v761_v62 = vpop.f32.mrf.mxu1 }
  0xe3   : > { %1142 = vst.msk [vmem:[%s3909_s26] sm:$0xf] %vm1141_vm1, %v2944_v53  ;;  %1174 = vst.msk [vmem:[%s3909_s26 + $0x80] sm:$0xf] %vm1141_vm1, %v2976_v58  ;;  %v2947_v63 = vpack.c.bf16 %v642_v59, %v642_v59  ;;  %v634_v1 = vadd.f32 %v3898_v7, %v633_v61  ;;  %v762_v2 = vadd.f32 %v3898_v7, %v761_v62 }
  0xe4   : > { %v2979_v0 = vpack.c.bf16 %v770_v60, %v770_v60  ;;  %v3258_v3 = vpop.f32.mrf.mxu0  ;;  %v3290_v4 = vpop.f32.mrf.mxu1 }
  0xe5   : > { %1145 = vst.msk [vmem:[%s3909_s26 + $0xc] sm:$0xf] %vm1141_vm1, %v2947_v63  ;;  %v2945_v5 = vpack.c.bf16 %v634_v1, %v634_v1  ;;  %v2977_v6 = vpack.c.bf16 %v762_v2, %v762_v2  ;;  %v655_v8 = vadd.f32 %v3258_v3, %v3898_v7  ;;  %v783_v10 = vadd.f32 %v3290_v4, %v3898_v7 }
  0xe6   : > { %1177 = vst.msk [vmem:[%s3909_s26 + $0x8c] sm:$0xf] %vm1141_vm1, %v2979_v0  ;;  %v646_v11 = vpop.f32.mrf.mxu0  ;;  %v774_v12 = vpop.f32.mrf.mxu1 }
  0xe7   : > { %1143 = vst.msk [vmem:[%s3909_s26 + $0x4] sm:$0xf] %vm1141_vm1, %v2945_v5  ;;  %1175 = vst.msk [vmem:[%s3909_s26 + $0x84] sm:$0xf] %vm1141_vm1, %v2977_v6  ;;  %v2950_v13 = vpack.c.bf16 %v655_v8, %v655_v8  ;;  %v2982_v14 = vpack.c.bf16 %v783_v10, %v783_v10  ;;  %v647_v15 = vadd.f32 %v3898_v7, %v646_v11 }
  0xe8   : > { %v775_v16 = vadd.f32 %v3898_v7, %v774_v12  ;;  %v3259_v17 = vpop.f32.mrf.mxu0  ;;  %v3291_v18 = vpop.f32.mrf.mxu1 }
  0xe9   : > { %1148 = vst.msk [vmem:[%s3909_s26 + $0x18] sm:$0xf] %vm1141_vm1, %v2950_v13  ;;  %1180 = vst.msk [vmem:[%s3909_s26 + $0x98] sm:$0xf] %vm1141_vm1, %v2982_v14  ;;  %v2948_v19 = vpack.c.bf16 %v647_v15, %v647_v15  ;;  %v658_v25 = vadd.f32 %v3259_v17, %v3898_v7  ;;  %v786_v26 = vadd.f32 %v3291_v18, %v3898_v7 }
  0xea   : > { %v2980_v24 = vpack.c.bf16 %v775_v16, %v775_v16  ;;  %v649_v27 = vpop.f32.mrf.mxu0  ;;  %v777_v28 = vpop.f32.mrf.mxu1 }
  0xeb   : > { %1146 = vst.msk [vmem:[%s3909_s26 + $0x10] sm:$0xf] %vm1141_vm1, %v2948_v19  ;;  %v2951_v29 = vpack.c.bf16 %v658_v25, %v658_v25  ;;  %v2983_v30 = vpack.c.bf16 %v786_v26, %v786_v26  ;;  %v650_v31 = vadd.f32 %v3898_v7, %v649_v27  ;;  %v778_v32 = vadd.f32 %v3898_v7, %v777_v28 }
  0xec   : > { %1178 = vst.msk [vmem:[%s3909_s26 + $0x90] sm:$0xf] %vm1141_vm1, %v2980_v24  ;;  %v3262_v33 = vpop.f32.mrf.mxu0  ;;  %v3294_v36 = vpop.f32.mrf.mxu1 }
  0xed   : > { %1149 = vst.msk [vmem:[%s3909_s26 + $0x1c] sm:$0xf] %vm1141_vm1, %v2951_v29  ;;  %1181 = vst.msk [vmem:[%s3909_s26 + $0x9c] sm:$0xf] %vm1141_vm1, %v2983_v30  ;;  %v2949_v39 = vpack.c.bf16 %v650_v31, %v650_v31  ;;  %v2981_v40 = vpack.c.bf16 %v778_v32, %v778_v32  ;;  %v671_v41 = vadd.f32 %v3262_v33, %v3898_v7 }
  0xee   : > { %v799_v42 = vadd.f32 %v3294_v36, %v3898_v7  ;;  %v662_v43 = vpop.f32.mrf.mxu0  ;;  %v790_v44 = vpop.f32.mrf.mxu1 }
  0xef   : > { %1147 = vst.msk [vmem:[%s3909_s26 + $0x14] sm:$0xf] %vm1141_vm1, %v2949_v39  ;;  %1179 = vst.msk [vmem:[%s3909_s26 + $0x94] sm:$0xf] %vm1141_vm1, %v2981_v40  ;;  %v2954_v45 = vpack.c.bf16 %v671_v41, %v671_v41  ;;  %v663_v47 = vadd.f32 %v3898_v7, %v662_v43  ;;  %v791_v48 = vadd.f32 %v3898_v7, %v790_v44 }
  0xf0   : > { %v2986_v46 = vpack.c.bf16 %v799_v42, %v799_v42  ;;  %v3263_v51 = vpop.f32.mrf.mxu0  ;;  %v3295_v54 = vpop.f32.mrf.mxu1 }
  0xf1   : > { %1152 = vst.msk [vmem:[%s3909_s26 + $0x28] sm:$0xf] %vm1141_vm1, %v2954_v45  ;;  %v2952_v55 = vpack.c.bf16 %v663_v47, %v663_v47  ;;  %v2984_v56 = vpack.c.bf16 %v791_v48, %v791_v48  ;;  %v674_v57 = vadd.f32 %v3263_v51, %v3898_v7  ;;  %v802_v9 = vadd.f32 %v3295_v54, %v3898_v7 }
  0xf2   : > { %1184 = vst.msk [vmem:[%s3909_s26 + $0xa8] sm:$0xf] %vm1141_vm1, %v2986_v46  ;;  %v665_v20 = vpop.f32.mrf.mxu0  ;;  %v793_v21 = vpop.f32.mrf.mxu1 }
  0xf3   : > { %1150 = vst.msk [vmem:[%s3909_s26 + $0x20] sm:$0xf] %vm1141_vm1, %v2952_v55  ;;  %1182 = vst.msk [vmem:[%s3909_s26 + $0xa0] sm:$0xf] %vm1141_vm1, %v2984_v56  ;;  %v2955_v22 = vpack.c.bf16 %v674_v57, %v674_v57  ;;  %v2987_v23 = vpack.c.bf16 %v802_v9, %v802_v9  ;;  %v666_v34 = vadd.f32 %v3898_v7, %v665_v20 }
  0xf4   : > { %v794_v35 = vadd.f32 %v3898_v7, %v793_v21  ;;  %v3266_v37 = vpop.f32.mrf.mxu0  ;;  %v3298_v38 = vpop.f32.mrf.mxu1 }
  0xf5   : > { %1153 = vst.msk [vmem:[%s3909_s26 + $0x2c] sm:$0xf] %vm1141_vm1, %v2955_v22  ;;  %1185 = vst.msk [vmem:[%s3909_s26 + $0xac] sm:$0xf] %vm1141_vm1, %v2987_v23  ;;  %v2953_v49 = vpack.c.bf16 %v666_v34, %v666_v34  ;;  %v687_v52 = vadd.f32 %v3266_v37, %v3898_v7  ;;  %v815_v53 = vadd.f32 %v3298_v38, %v3898_v7 }
  0xf6   : > { %v2985_v50 = vpack.c.bf16 %v794_v35, %v794_v35  ;;  %v678_v58 = vpop.f32.mrf.mxu0  ;;  %v806_v59 = vpop.f32.mrf.mxu1 }
  0xf7   : > { %1151 = vst.msk [vmem:[%s3909_s26 + $0x24] sm:$0xf] %vm1141_vm1, %v2953_v49  ;;  %v2958_v60 = vpack.c.bf16 %v687_v52, %v687_v52  ;;  %v2990_v61 = vpack.c.bf16 %v815_v53, %v815_v53  ;;  %v679_v62 = vadd.f32 %v3898_v7, %v678_v58  ;;  %v807_v63 = vadd.f32 %v3898_v7, %v806_v59 }
  0xf8   : > { %1183 = vst.msk [vmem:[%s3909_s26 + $0xa4] sm:$0xf] %vm1141_vm1, %v2985_v50  ;;  %v3267_v0 = vpop.f32.mrf.mxu0  ;;  %v3299_v1 = vpop.f32.mrf.mxu1 }
  0xf9   : > { %1156 = vst.msk [vmem:[%s3909_s26 + $0x38] sm:$0xf] %vm1141_vm1, %v2958_v60  ;;  %1188 = vst.msk [vmem:[%s3909_s26 + $0xb8] sm:$0xf] %vm1141_vm1, %v2990_v61  ;;  %v2956_v2 = vpack.c.bf16 %v679_v62, %v679_v62  ;;  %v2988_v3 = vpack.c.bf16 %v807_v63, %v807_v63  ;;  %v690_v4 = vadd.f32 %v3267_v0, %v3898_v7 }
  0xfa   : > { %v818_v5 = vadd.f32 %v3299_v1, %v3898_v7  ;;  %v681_v6 = vpop.f32.mrf.mxu0  ;;  %v809_v8 = vpop.f32.mrf.mxu1 }
  0xfb   : > { %1154 = vst.msk [vmem:[%s3909_s26 + $0x30] sm:$0xf] %vm1141_vm1, %v2956_v2  ;;  %1186 = vst.msk [vmem:[%s3909_s26 + $0xb0] sm:$0xf] %vm1141_vm1, %v2988_v3  ;;  %v2959_v10 = vpack.c.bf16 %v690_v4, %v690_v4  ;;  %v682_v12 = vadd.f32 %v3898_v7, %v681_v6  ;;  %v810_v13 = vadd.f32 %v3898_v7, %v809_v8 }
  0xfc   : > { %v2991_v11 = vpack.c.bf16 %v818_v5, %v818_v5  ;;  %v3270_v14 = vpop.f32.mrf.mxu0  ;;  %v3302_v15 = vpop.f32.mrf.mxu1 }
  0xfd   : > { %1157 = vst.msk [vmem:[%s3909_s26 + $0x3c] sm:$0xf] %vm1141_vm1, %v2959_v10  ;;  %v2957_v16 = vpack.c.bf16 %v682_v12, %v682_v12  ;;  %v2989_v17 = vpack.c.bf16 %v810_v13, %v810_v13  ;;  %v703_v18 = vadd.f32 %v3270_v14, %v3898_v7  ;;  %v831_v19 = vadd.f32 %v3302_v15, %v3898_v7 }
  0xfe   : > { %1189 = vst.msk [vmem:[%s3909_s26 + $0xbc] sm:$0xf] %vm1141_vm1, %v2991_v11  ;;  %v694_v24 = vpop.f32.mrf.mxu0  ;;  %v822_v25 = vpop.f32.mrf.mxu1 }
  0xff   : > { %1155 = vst.msk [vmem:[%s3909_s26 + $0x34] sm:$0xf] %vm1141_vm1, %v2957_v16  ;;  %1187 = vst.msk [vmem:[%s3909_s26 + $0xb4] sm:$0xf] %vm1141_vm1, %v2989_v17  ;;  %v2962_v26 = vpack.c.bf16 %v703_v18, %v703_v18  ;;  %v2994_v27 = vpack.c.bf16 %v831_v19, %v831_v19  ;;  %v695_v28 = vadd.f32 %v3898_v7, %v694_v24 }
 0x100   : > { %v823_v29 = vadd.f32 %v3898_v7, %v822_v25  ;;  %v3271_v30 = vpop.f32.mrf.mxu0  ;;  %v3303_v31 = vpop.f32.mrf.mxu1 }
 0x101   : > { %1160 = vst.msk [vmem:[%s3909_s26 + $0x48] sm:$0xf] %vm1141_vm1, %v2962_v26  ;;  %1192 = vst.msk [vmem:[%s3909_s26 + $0xc8] sm:$0xf] %vm1141_vm1, %v2994_v27  ;;  %v2960_v32 = vpack.c.bf16 %v695_v28, %v695_v28  ;;  %v706_v36 = vadd.f32 %v3271_v30, %v3898_v7  ;;  %v834_v39 = vadd.f32 %v3303_v31, %v3898_v7 }
 0x102   : > { %v2992_v33 = vpack.c.bf16 %v823_v29, %v823_v29  ;;  %v697_v40 = vpop.f32.mrf.mxu0  ;;  %v825_v41 = vpop.f32.mrf.mxu1 }
 0x103   : > { %1158 = vst.msk [vmem:[%s3909_s26 + $0x40] sm:$0xf] %vm1141_vm1, %v2960_v32  ;;  %v2963_v42 = vpack.c.bf16 %v706_v36, %v706_v36  ;;  %v2995_v43 = vpack.c.bf16 %v834_v39, %v834_v39  ;;  %v698_v44 = vadd.f32 %v3898_v7, %v697_v40  ;;  %v826_v45 = vadd.f32 %v3898_v7, %v825_v41 }
 0x104   : > { %1190 = vst.msk [vmem:[%s3909_s26 + $0xc0] sm:$0xf] %vm1141_vm1, %v2992_v33  ;;  %v3274_v46 = vpop.f32.mrf.mxu0  ;;  %v3306_v47 = vpop.f32.mrf.mxu1 }
 0x105   : > { %1161 = vst.msk [vmem:[%s3909_s26 + $0x4c] sm:$0xf] %vm1141_vm1, %v2963_v42  ;;  %1193 = vst.msk [vmem:[%s3909_s26 + $0xcc] sm:$0xf] %vm1141_vm1, %v2995_v43  ;;  %v2961_v48 = vpack.c.bf16 %v698_v44, %v698_v44  ;;  %v2993_v51 = vpack.c.bf16 %v826_v45, %v826_v45  ;;  %v719_v54 = vadd.f32 %v3274_v46, %v3898_v7 }
 0x106   : > { %v847_v55 = vadd.f32 %v3306_v47, %v3898_v7  ;;  %v710_v56 = vpop.f32.mrf.mxu0  ;;  %v838_v57 = vpop.f32.mrf.mxu1 }
 0x107   : > { %1159 = vst.msk [vmem:[%s3909_s26 + $0x44] sm:$0xf] %vm1141_vm1, %v2961_v48  ;;  %1191 = vst.msk [vmem:[%s3909_s26 + $0xc4] sm:$0xf] %vm1141_vm1, %v2993_v51  ;;  %v2966_v9 = vpack.c.bf16 %v719_v54, %v719_v54  ;;  %v711_v21 = vadd.f32 %v3898_v7, %v710_v56  ;;  %v839_v22 = vadd.f32 %v3898_v7, %v838_v57  ;;  %v4095_v56 = vld [vmem:[%s4518_s6] ss:$0 sm:$0xff] }
 0x108   : > { %v2998_v20 = vpack.c.bf16 %v847_v55, %v847_v55  ;;  %v3275_v23 = vpop.f32.mrf.mxu0  ;;  %v3307_v34 = vpop.f32.mrf.mxu1  ;;  %v4090_v55 = vld [vmem:[%s4517_s5] ss:$0 sm:$0xff] }
 0x109   : > { %1164 = vst.msk [vmem:[%s3909_s26 + $0x58] sm:$0xf] %vm1141_vm1, %v2966_v9  ;;  %v2964_v35 = vpack.c.bf16 %v711_v21, %v711_v21  ;;  %v2996_v37 = vpack.c.bf16 %v839_v22, %v839_v22  ;;  %v722_v38 = vadd.f32 %v3275_v23, %v3898_v7  ;;  %v850_v49 = vadd.f32 %v3307_v34, %v3898_v7 }
 0x10a   : > { %1196 = vst.msk [vmem:[%s3909_s26 + $0xd8] sm:$0xf] %vm1141_vm1, %v2998_v20  ;;  %v713_v50 = vpop.f32.mrf.mxu0  ;;  %v841_v52 = vpop.f32.mrf.mxu1 }
 0x10b   : > { %1162 = vst.msk [vmem:[%s3909_s26 + $0x50] sm:$0xf] %vm1141_vm1, %v2964_v35  ;;  %1194 = vst.msk [vmem:[%s3909_s26 + $0xd0] sm:$0xf] %vm1141_vm1, %v2996_v37  ;;  %v2967_v53 = vpack.c.bf16 %v722_v38, %v722_v38  ;;  %v2999_v58 = vpack.c.bf16 %v850_v49, %v850_v49  ;;  %v714_v59 = vadd.f32 %v3898_v7, %v713_v50 }
 0x10c   : > { %v842_v60 = vadd.f32 %v3898_v7, %v841_v52  ;;  %v3278_v61 = vpop.f32.mrf.mxu0  ;;  %v3310_v62 = vpop.f32.mrf.mxu1 }
 0x10d   : > { %1165 = vst.msk [vmem:[%s3909_s26 + $0x5c] sm:$0xf] %vm1141_vm1, %v2967_v53  ;;  %1197 = vst.msk [vmem:[%s3909_s26 + $0xdc] sm:$0xf] %vm1141_vm1, %v2999_v58  ;;  %v2965_v63 = vpack.c.bf16 %v714_v59, %v714_v59  ;;  %v735_v1 = vadd.f32 %v3278_v61, %v3898_v7  ;;  %v863_v2 = vadd.f32 %v3310_v62, %v3898_v7 }
 0x10e   : > { %v2997_v0 = vpack.c.bf16 %v842_v60, %v842_v60  ;;  %v726_v3 = vpop.f32.mrf.mxu0  ;;  %v854_v4 = vpop.f32.mrf.mxu1 }
 0x10f   : > { %1163 = vst.msk [vmem:[%s3909_s26 + $0x54] sm:$0xf] %vm1141_vm1, %v2965_v63  ;;  %v2970_v5 = vpack.c.bf16 %v735_v1, %v735_v1  ;;  %v3002_v6 = vpack.c.bf16 %v863_v2, %v863_v2  ;;  %v727_v8 = vadd.f32 %v3898_v7, %v726_v3  ;;  %v855_v10 = vadd.f32 %v3898_v7, %v854_v4 }
 0x110   : > { %1195 = vst.msk [vmem:[%s3909_s26 + $0xd4] sm:$0xf] %vm1141_vm1, %v2997_v0  ;;  %v3279_v11 = vpop.f32.mrf.mxu0  ;;  %v3311_v12 = vpop.f32.mrf.mxu1 }
 0x111   : > { %1168 = vst.msk [vmem:[%s3909_s26 + $0x68] sm:$0xf] %vm1141_vm1, %v2970_v5  ;;  %1200 = vst.msk [vmem:[%s3909_s26 + $0xe8] sm:$0xf] %vm1141_vm1, %v3002_v6  ;;  %v2968_v13 = vpack.c.bf16 %v727_v8, %v727_v8  ;;  %v3000_v14 = vpack.c.bf16 %v855_v10, %v855_v10  ;;  %v738_v15 = vadd.f32 %v3279_v11, %v3898_v7 }
 0x112   : > { %v866_v16 = vadd.f32 %v3311_v12, %v3898_v7  ;;  %v729_v17 = vpop.f32.mrf.mxu0  ;;  %v857_v18 = vpop.f32.mrf.mxu1 }
 0x113   : > { %1166 = vst.msk [vmem:[%s3909_s26 + $0x60] sm:$0xf] %vm1141_vm1, %v2968_v13  ;;  %1198 = vst.msk [vmem:[%s3909_s26 + $0xe0] sm:$0xf] %vm1141_vm1, %v3000_v14  ;;  %v2971_v19 = vpack.c.bf16 %v738_v15, %v738_v15  ;;  %v730_v25 = vadd.f32 %v3898_v7, %v729_v17  ;;  %v858_v26 = vadd.f32 %v3898_v7, %v857_v18 }
 0x114   : > { %v3003_v24 = vpack.c.bf16 %v866_v16, %v866_v16  ;;  %v3282_v27 = vpop.f32.mrf.mxu0  ;;  %v3314_v28 = vpop.f32.mrf.mxu1 }
 0x115   : > { %1169 = vst.msk [vmem:[%s3909_s26 + $0x6c] sm:$0xf] %vm1141_vm1, %v2971_v19  ;;  %v2969_v29 = vpack.c.bf16 %v730_v25, %v730_v25  ;;  %v3001_v30 = vpack.c.bf16 %v858_v26, %v858_v26  ;;  %v751_v31 = vadd.f32 %v3282_v27, %v3898_v7  ;;  %v879_v32 = vadd.f32 %v3314_v28, %v3898_v7 }
 0x116   : > { %1201 = vst.msk [vmem:[%s3909_s26 + $0xec] sm:$0xf] %vm1141_vm1, %v3003_v24  ;;  %v742_v33 = vpop.f32.mrf.mxu0  ;;  %v870_v36 = vpop.f32.mrf.mxu1 }
 0x117   : > { %1167 = vst.msk [vmem:[%s3909_s26 + $0x64] sm:$0xf] %vm1141_vm1, %v2969_v29  ;;  %1199 = vst.msk [vmem:[%s3909_s26 + $0xe4] sm:$0xf] %vm1141_vm1, %v3001_v30  ;;  %v2974_v39 = vpack.c.bf16 %v751_v31, %v751_v31  ;;  %v3006_v40 = vpack.c.bf16 %v879_v32, %v879_v32  ;;  %v743_v41 = vadd.f32 %v3898_v7, %v742_v33 }
 0x118   : > { %v871_v42 = vadd.f32 %v3898_v7, %v870_v36  ;;  %v3283_v43 = vpop.f32.mrf.mxu0  ;;  %v3315_v44 = vpop.f32.mrf.mxu1 }
 0x119   : > { %1172 = vst.msk [vmem:[%s3909_s26 + $0x78] sm:$0xf] %vm1141_vm1, %v2974_v39  ;;  %1204 = vst.msk [vmem:[%s3909_s26 + $0xf8] sm:$0xf] %vm1141_vm1, %v3006_v40  ;;  %v2972_v45 = vpack.c.bf16 %v743_v41, %v743_v41  ;;  %v754_v47 = vadd.f32 %v3283_v43, %v3898_v7  ;;  %v882_v48 = vadd.f32 %v3315_v44, %v3898_v7 }
 0x11a   : > { %v3004_v46 = vpack.c.bf16 %v871_v42, %v871_v42  ;;  %v745_v51 = vpop.f32.mrf.mxu0  ;;  %v873_v54 = vpop.f32.mrf.mxu1 }
 0x11b   : > { %1170 = vst.msk [vmem:[%s3909_s26 + $0x70] sm:$0xf] %vm1141_vm1, %v2972_v45  ;;  %v2975_v57 = vpack.c.bf16 %v754_v47, %v754_v47  ;;  %v3007_v9 = vpack.c.bf16 %v882_v48, %v882_v48  ;;  %v746_v20 = vadd.f32 %v3898_v7, %v745_v51  ;;  %v874_v21 = vadd.f32 %v3898_v7, %v873_v54 }
 0x11c   : > { %1202 = vst.msk [vmem:[%s3909_s26 + $0xf0] sm:$0xf] %vm1141_vm1, %v3004_v46  ;;  %v3326_v22 = vpop.f32.mrf.mxu1  ;;  %v3398_v23 = vpop.f32.mrf.mxu0 }
 0x11d   : > { %1173 = vst.msk [vmem:[%s3909_s26 + $0x7c] sm:$0xf] %vm1141_vm1, %v2975_v57  ;;  %1205 = vst.msk [vmem:[%s3909_s26 + $0xfc] sm:$0xf] %vm1141_vm1, %v3007_v9  ;;  %v2973_v34 = vpack.c.bf16 %v746_v20, %v746_v20  ;;  %v3005_v35 = vpack.c.bf16 %v874_v21, %v874_v21  ;;  %v1288_v37 = vadd.f32 %v3326_v22, %v4090_v55 }
 0x11e   : > { %v1936_v38 = vadd.f32 %v3398_v23, %v4095_v56  ;;  %v1279_v7 = vpop.f32.mrf.mxu1  ;;  %v1927_v49 = vpop.f32.mrf.mxu0 }
 0x11f   : > { %1171 = vst.msk [vmem:[%s3909_s26 + $0x74] sm:$0xf] %vm1141_vm1, %v2973_v34  ;;  %1203 = vst.msk [vmem:[%s3909_s26 + $0xf4] sm:$0xf] %vm1141_vm1, %v3005_v35  ;;  %v3010_v50 = vpack.c.bf16 %v1288_v37, %v1288_v37  ;;  %v1280_v53 = vadd.f32 %v4090_v55, %v1279_v7  ;;  %v1928_v58 = vadd.f32 %v4095_v56, %v1927_v49 }
 0x120   : > { %v3074_v52 = vpack.c.bf16 %v1936_v38, %v1936_v38  ;;  %v3327_v59 = vpop.f32.mrf.mxu1  ;;  %v3399_v60 = vpop.f32.mrf.mxu0 }
 0x121   : > { %1792 = vst.msk [vmem:[%s4113_s12 + $0x8] sm:$0xf] %vm1141_vm1, %v3010_v50  ;;  %v3008_v61 = vpack.c.bf16 %v1280_v53, %v1280_v53  ;;  %v3072_v62 = vpack.c.bf16 %v1928_v58, %v1928_v58  ;;  %v1291_v63 = vadd.f32 %v3327_v59, %v4090_v55  ;;  %v1939_v0 = vadd.f32 %v3399_v60, %v4095_v56 }
 0x122   : > { %2440 = vst.msk [vmem:[%s4119_s16 + $0x8] sm:$0xf] %vm1141_vm1, %v3074_v52  ;;  %v1282_v1 = vpop.f32.mrf.mxu1  ;;  %v1930_v2 = vpop.f32.mrf.mxu0 }
 0x123   : > { %1790 = vst.msk [vmem:[%s4113_s12] sm:$0xf] %vm1141_vm1, %v3008_v61  ;;  %2438 = vst.msk [vmem:[%s4119_s16] sm:$0xf] %vm1141_vm1, %v3072_v62  ;;  %v3011_v3 = vpack.c.bf16 %v1291_v63, %v1291_v63  ;;  %v3075_v4 = vpack.c.bf16 %v1939_v0, %v1939_v0  ;;  %v1283_v5 = vadd.f32 %v4090_v55, %v1282_v1 }
 0x124   : > { %v1931_v6 = vadd.f32 %v4095_v56, %v1930_v2  ;;  %v3330_v8 = vpop.f32.mrf.mxu1  ;;  %v3402_v10 = vpop.f32.mrf.mxu0 }
 0x125   : > { %1793 = vst.msk [vmem:[%s4113_s12 + $0xc] sm:$0xf] %vm1141_vm1, %v3011_v3  ;;  %2441 = vst.msk [vmem:[%s4119_s16 + $0xc] sm:$0xf] %vm1141_vm1, %v3075_v4  ;;  %v3009_v11 = vpack.c.bf16 %v1283_v5, %v1283_v5  ;;  %v1304_v13 = vadd.f32 %v3330_v8, %v4090_v55  ;;  %v1952_v14 = vadd.f32 %v3402_v10, %v4095_v56 }
 0x126   : > { %v3073_v12 = vpack.c.bf16 %v1931_v6, %v1931_v6  ;;  %v1295_v15 = vpop.f32.mrf.mxu1  ;;  %v1943_v16 = vpop.f32.mrf.mxu0 }
 0x127   : > { %1791 = vst.msk [vmem:[%s4113_s12 + $0x4] sm:$0xf] %vm1141_vm1, %v3009_v11  ;;  %v3014_v17 = vpack.c.bf16 %v1304_v13, %v1304_v13  ;;  %v3078_v18 = vpack.c.bf16 %v1952_v14, %v1952_v14  ;;  %v1296_v19 = vadd.f32 %v4090_v55, %v1295_v15  ;;  %v1944_v24 = vadd.f32 %v4095_v56, %v1943_v16 }
 0x128   : > { %2439 = vst.msk [vmem:[%s4119_s16 + $0x4] sm:$0xf] %vm1141_vm1, %v3073_v12  ;;  %v3331_v25 = vpop.f32.mrf.mxu1  ;;  %v3403_v26 = vpop.f32.mrf.mxu0 }
 0x129   : > { %1796 = vst.msk [vmem:[%s4113_s12 + $0x18] sm:$0xf] %vm1141_vm1, %v3014_v17  ;;  %2444 = vst.msk [vmem:[%s4119_s16 + $0x18] sm:$0xf] %vm1141_vm1, %v3078_v18  ;;  %v3012_v27 = vpack.c.bf16 %v1296_v19, %v1296_v19  ;;  %v3076_v28 = vpack.c.bf16 %v1944_v24, %v1944_v24  ;;  %v1307_v29 = vadd.f32 %v3331_v25, %v4090_v55 }
 0x12a   : > { %v1955_v30 = vadd.f32 %v3403_v26, %v4095_v56  ;;  %v1298_v31 = vpop.f32.mrf.mxu1  ;;  %v1946_v32 = vpop.f32.mrf.mxu0 }
 0x12b   : > { %1794 = vst.msk [vmem:[%s4113_s12 + $0x10] sm:$0xf] %vm1141_vm1, %v3012_v27  ;;  %2442 = vst.msk [vmem:[%s4119_s16 + $0x10] sm:$0xf] %vm1141_vm1, %v3076_v28  ;;  %v3015_v33 = vpack.c.bf16 %v1307_v29, %v1307_v29  ;;  %v1299_v39 = vadd.f32 %v4090_v55, %v1298_v31  ;;  %v1947_v40 = vadd.f32 %v4095_v56, %v1946_v32 }
 0x12c   : > { %v3079_v36 = vpack.c.bf16 %v1955_v30, %v1955_v30  ;;  %v3334_v41 = vpop.f32.mrf.mxu1  ;;  %v3406_v42 = vpop.f32.mrf.mxu0 }
 0x12d   : > { %1797 = vst.msk [vmem:[%s4113_s12 + $0x1c] sm:$0xf] %vm1141_vm1, %v3015_v33  ;;  %v3013_v43 = vpack.c.bf16 %v1299_v39, %v1299_v39  ;;  %v3077_v44 = vpack.c.bf16 %v1947_v40, %v1947_v40  ;;  %v1320_v45 = vadd.f32 %v3334_v41, %v4090_v55  ;;  %v1968_v46 = vadd.f32 %v3406_v42, %v4095_v56 }
 0x12e   : > { %2445 = vst.msk [vmem:[%s4119_s16 + $0x1c] sm:$0xf] %vm1141_vm1, %v3079_v36  ;;  %v1311_v47 = vpop.f32.mrf.mxu1  ;;  %v1959_v48 = vpop.f32.mrf.mxu0 }
 0x12f   : > { %1795 = vst.msk [vmem:[%s4113_s12 + $0x14] sm:$0xf] %vm1141_vm1, %v3013_v43  ;;  %2443 = vst.msk [vmem:[%s4119_s16 + $0x14] sm:$0xf] %vm1141_vm1, %v3077_v44  ;;  %v3018_v51 = vpack.c.bf16 %v1320_v45, %v1320_v45  ;;  %v3082_v54 = vpack.c.bf16 %v1968_v46, %v1968_v46  ;;  %v1312_v57 = vadd.f32 %v4090_v55, %v1311_v47 }
 0x130   : > { %v1960_v9 = vadd.f32 %v4095_v56, %v1959_v48  ;;  %v3335_v20 = vpop.f32.mrf.mxu1  ;;  %v3407_v21 = vpop.f32.mrf.mxu0 }
 0x131   : > { %1800 = vst.msk [vmem:[%s4113_s12 + $0x28] sm:$0xf] %vm1141_vm1, %v3018_v51  ;;  %2448 = vst.msk [vmem:[%s4119_s16 + $0x28] sm:$0xf] %vm1141_vm1, %v3082_v54  ;;  %v3016_v22 = vpack.c.bf16 %v1312_v57, %v1312_v57  ;;  %v1323_v34 = vadd.f32 %v3335_v20, %v4090_v55  ;;  %v1971_v35 = vadd.f32 %v3407_v21, %v4095_v56 }
 0x132   : > { %v3080_v23 = vpack.c.bf16 %v1960_v9, %v1960_v9  ;;  %v1314_v37 = vpop.f32.mrf.mxu1  ;;  %v1962_v38 = vpop.f32.mrf.mxu0 }
 0x133   : > { %1798 = vst.msk [vmem:[%s4113_s12 + $0x20] sm:$0xf] %vm1141_vm1, %v3016_v22  ;;  %v3019_v7 = vpack.c.bf16 %v1323_v34, %v1323_v34  ;;  %v3083_v49 = vpack.c.bf16 %v1971_v35, %v1971_v35  ;;  %v1315_v50 = vadd.f32 %v4090_v55, %v1314_v37  ;;  %v1963_v52 = vadd.f32 %v4095_v56, %v1962_v38 }
 0x134   : > { %2446 = vst.msk [vmem:[%s4119_s16 + $0x20] sm:$0xf] %vm1141_vm1, %v3080_v23  ;;  %v3338_v53 = vpop.f32.mrf.mxu1  ;;  %v3410_v58 = vpop.f32.mrf.mxu0 }
 0x135   : > { %1801 = vst.msk [vmem:[%s4113_s12 + $0x2c] sm:$0xf] %vm1141_vm1, %v3019_v7  ;;  %2449 = vst.msk [vmem:[%s4119_s16 + $0x2c] sm:$0xf] %vm1141_vm1, %v3083_v49  ;;  %v3017_v59 = vpack.c.bf16 %v1315_v50, %v1315_v50  ;;  %v3081_v60 = vpack.c.bf16 %v1963_v52, %v1963_v52  ;;  %v1336_v61 = vadd.f32 %v3338_v53, %v4090_v55 }
 0x136   : > { %v1984_v62 = vadd.f32 %v3410_v58, %v4095_v56  ;;  %v1327_v63 = vpop.f32.mrf.mxu1  ;;  %v1975_v0 = vpop.f32.mrf.mxu0 }
 0x137   : > { %1799 = vst.msk [vmem:[%s4113_s12 + $0x24] sm:$0xf] %vm1141_vm1, %v3017_v59  ;;  %2447 = vst.msk [vmem:[%s4119_s16 + $0x24] sm:$0xf] %vm1141_vm1, %v3081_v60  ;;  %v3022_v1 = vpack.c.bf16 %v1336_v61, %v1336_v61  ;;  %v1328_v3 = vadd.f32 %v4090_v55, %v1327_v63  ;;  %v1976_v4 = vadd.f32 %v4095_v56, %v1975_v0 }
 0x138   : > { %v3086_v2 = vpack.c.bf16 %v1984_v62, %v1984_v62  ;;  %v3339_v5 = vpop.f32.mrf.mxu1  ;;  %v3411_v6 = vpop.f32.mrf.mxu0 }
 0x139   : > { %1804 = vst.msk [vmem:[%s4113_s12 + $0x38] sm:$0xf] %vm1141_vm1, %v3022_v1  ;;  %v3020_v8 = vpack.c.bf16 %v1328_v3, %v1328_v3  ;;  %v3084_v10 = vpack.c.bf16 %v1976_v4, %v1976_v4  ;;  %v1339_v11 = vadd.f32 %v3339_v5, %v4090_v55  ;;  %v1987_v12 = vadd.f32 %v3411_v6, %v4095_v56 }
 0x13a   : > { %2452 = vst.msk [vmem:[%s4119_s16 + $0x38] sm:$0xf] %vm1141_vm1, %v3086_v2  ;;  %v1330_v13 = vpop.f32.mrf.mxu1  ;;  %v1978_v14 = vpop.f32.mrf.mxu0 }
 0x13b   : > { %1802 = vst.msk [vmem:[%s4113_s12 + $0x30] sm:$0xf] %vm1141_vm1, %v3020_v8  ;;  %2450 = vst.msk [vmem:[%s4119_s16 + $0x30] sm:$0xf] %vm1141_vm1, %v3084_v10  ;;  %v3023_v15 = vpack.c.bf16 %v1339_v11, %v1339_v11  ;;  %v3087_v16 = vpack.c.bf16 %v1987_v12, %v1987_v12  ;;  %v1331_v17 = vadd.f32 %v4090_v55, %v1330_v13 }
 0x13c   : > { %v1979_v18 = vadd.f32 %v4095_v56, %v1978_v14  ;;  %v3342_v19 = vpop.f32.mrf.mxu1  ;;  %v3414_v24 = vpop.f32.mrf.mxu0 }
 0x13d   : > { %1805 = vst.msk [vmem:[%s4113_s12 + $0x3c] sm:$0xf] %vm1141_vm1, %v3023_v15  ;;  %2453 = vst.msk [vmem:[%s4119_s16 + $0x3c] sm:$0xf] %vm1141_vm1, %v3087_v16  ;;  %v3021_v25 = vpack.c.bf16 %v1331_v17, %v1331_v17  ;;  %v1352_v27 = vadd.f32 %v3342_v19, %v4090_v55  ;;  %v2000_v28 = vadd.f32 %v3414_v24, %v4095_v56 }
 0x13e   : > { %v3085_v26 = vpack.c.bf16 %v1979_v18, %v1979_v18  ;;  %v1343_v29 = vpop.f32.mrf.mxu1  ;;  %v1991_v30 = vpop.f32.mrf.mxu0 }
 0x13f   : > { %1803 = vst.msk [vmem:[%s4113_s12 + $0x34] sm:$0xf] %vm1141_vm1, %v3021_v25  ;;  %v3026_v31 = vpack.c.bf16 %v1352_v27, %v1352_v27  ;;  %v3090_v32 = vpack.c.bf16 %v2000_v28, %v2000_v28  ;;  %v1344_v33 = vadd.f32 %v4090_v55, %v1343_v29  ;;  %v1992_v36 = vadd.f32 %v4095_v56, %v1991_v30 }
 0x140   : > { %2451 = vst.msk [vmem:[%s4119_s16 + $0x34] sm:$0xf] %vm1141_vm1, %v3085_v26  ;;  %v3343_v39 = vpop.f32.mrf.mxu1  ;;  %v3415_v40 = vpop.f32.mrf.mxu0 }
 0x141   : > { %1808 = vst.msk [vmem:[%s4113_s12 + $0x48] sm:$0xf] %vm1141_vm1, %v3026_v31  ;;  %2456 = vst.msk [vmem:[%s4119_s16 + $0x48] sm:$0xf] %vm1141_vm1, %v3090_v32  ;;  %v3024_v41 = vpack.c.bf16 %v1344_v33, %v1344_v33  ;;  %v3088_v42 = vpack.c.bf16 %v1992_v36, %v1992_v36  ;;  %v1355_v43 = vadd.f32 %v3343_v39, %v4090_v55 }
 0x142   : > { %v2003_v44 = vadd.f32 %v3415_v40, %v4095_v56  ;;  %v1346_v45 = vpop.f32.mrf.mxu1  ;;  %v1994_v46 = vpop.f32.mrf.mxu0 }
 0x143   : > { %1806 = vst.msk [vmem:[%s4113_s12 + $0x40] sm:$0xf] %vm1141_vm1, %v3024_v41  ;;  %2454 = vst.msk [vmem:[%s4119_s16 + $0x40] sm:$0xf] %vm1141_vm1, %v3088_v42  ;;  %v3027_v47 = vpack.c.bf16 %v1355_v43, %v1355_v43  ;;  %v1347_v51 = vadd.f32 %v4090_v55, %v1346_v45  ;;  %v1995_v54 = vadd.f32 %v4095_v56, %v1994_v46 }
 0x144   : > { %v3091_v48 = vpack.c.bf16 %v2003_v44, %v2003_v44  ;;  %v3346_v57 = vpop.f32.mrf.mxu1  ;;  %v3418_v9 = vpop.f32.mrf.mxu0 }
 0x145   : > { %1809 = vst.msk [vmem:[%s4113_s12 + $0x4c] sm:$0xf] %vm1141_vm1, %v3027_v47  ;;  %v3025_v20 = vpack.c.bf16 %v1347_v51, %v1347_v51  ;;  %v3089_v21 = vpack.c.bf16 %v1995_v54, %v1995_v54  ;;  %v1368_v22 = vadd.f32 %v3346_v57, %v4090_v55  ;;  %v2016_v23 = vadd.f32 %v3418_v9, %v4095_v56 }
 0x146   : > { %2457 = vst.msk [vmem:[%s4119_s16 + $0x4c] sm:$0xf] %vm1141_vm1, %v3091_v48  ;;  %v1359_v34 = vpop.f32.mrf.mxu1  ;;  %v2007_v35 = vpop.f32.mrf.mxu0 }
 0x147   : > { %1807 = vst.msk [vmem:[%s4113_s12 + $0x44] sm:$0xf] %vm1141_vm1, %v3025_v20  ;;  %2455 = vst.msk [vmem:[%s4119_s16 + $0x44] sm:$0xf] %vm1141_vm1, %v3089_v21  ;;  %v3030_v37 = vpack.c.bf16 %v1368_v22, %v1368_v22  ;;  %v3094_v38 = vpack.c.bf16 %v2016_v23, %v2016_v23  ;;  %v1360_v7 = vadd.f32 %v4090_v55, %v1359_v34 }
 0x148   : > { %v2008_v49 = vadd.f32 %v4095_v56, %v2007_v35  ;;  %v3347_v50 = vpop.f32.mrf.mxu1  ;;  %v3419_v52 = vpop.f32.mrf.mxu0 }
 0x149   : > { %1812 = vst.msk [vmem:[%s4113_s12 + $0x58] sm:$0xf] %vm1141_vm1, %v3030_v37  ;;  %2460 = vst.msk [vmem:[%s4119_s16 + $0x58] sm:$0xf] %vm1141_vm1, %v3094_v38  ;;  %v3028_v53 = vpack.c.bf16 %v1360_v7, %v1360_v7  ;;  %v1371_v59 = vadd.f32 %v3347_v50, %v4090_v55  ;;  %v2019_v60 = vadd.f32 %v3419_v52, %v4095_v56 }
 0x14a   : > { %v3092_v58 = vpack.c.bf16 %v2008_v49, %v2008_v49  ;;  %v1362_v61 = vpop.f32.mrf.mxu1  ;;  %v2010_v62 = vpop.f32.mrf.mxu0 }
 0x14b   : > { %1810 = vst.msk [vmem:[%s4113_s12 + $0x50] sm:$0xf] %vm1141_vm1, %v3028_v53  ;;  %v3031_v63 = vpack.c.bf16 %v1371_v59, %v1371_v59  ;;  %v3095_v0 = vpack.c.bf16 %v2019_v60, %v2019_v60  ;;  %v1363_v1 = vadd.f32 %v4090_v55, %v1362_v61  ;;  %v2011_v2 = vadd.f32 %v4095_v56, %v2010_v62 }
 0x14c   : > { %2458 = vst.msk [vmem:[%s4119_s16 + $0x50] sm:$0xf] %vm1141_vm1, %v3092_v58  ;;  %v3350_v3 = vpop.f32.mrf.mxu1  ;;  %v3422_v4 = vpop.f32.mrf.mxu0 }
 0x14d   : > { %1813 = vst.msk [vmem:[%s4113_s12 + $0x5c] sm:$0xf] %vm1141_vm1, %v3031_v63  ;;  %2461 = vst.msk [vmem:[%s4119_s16 + $0x5c] sm:$0xf] %vm1141_vm1, %v3095_v0  ;;  %v3029_v5 = vpack.c.bf16 %v1363_v1, %v1363_v1  ;;  %v3093_v6 = vpack.c.bf16 %v2011_v2, %v2011_v2  ;;  %v1384_v8 = vadd.f32 %v3350_v3, %v4090_v55 }
 0x14e   : > { %v2032_v10 = vadd.f32 %v3422_v4, %v4095_v56  ;;  %v1375_v11 = vpop.f32.mrf.mxu1  ;;  %v2023_v12 = vpop.f32.mrf.mxu0 }
 0x14f   : > { %1811 = vst.msk [vmem:[%s4113_s12 + $0x54] sm:$0xf] %vm1141_vm1, %v3029_v5  ;;  %2459 = vst.msk [vmem:[%s4119_s16 + $0x54] sm:$0xf] %vm1141_vm1, %v3093_v6  ;;  %v3034_v13 = vpack.c.bf16 %v1384_v8, %v1384_v8  ;;  %v1376_v15 = vadd.f32 %v4090_v55, %v1375_v11  ;;  %v2024_v16 = vadd.f32 %v4095_v56, %v2023_v12 }
 0x150   : > { %v3098_v14 = vpack.c.bf16 %v2032_v10, %v2032_v10  ;;  %v3351_v17 = vpop.f32.mrf.mxu1  ;;  %v3423_v18 = vpop.f32.mrf.mxu0 }
 0x151   : > { %1816 = vst.msk [vmem:[%s4113_s12 + $0x68] sm:$0xf] %vm1141_vm1, %v3034_v13  ;;  %v3032_v19 = vpack.c.bf16 %v1376_v15, %v1376_v15  ;;  %v3096_v24 = vpack.c.bf16 %v2024_v16, %v2024_v16  ;;  %v1387_v25 = vadd.f32 %v3351_v17, %v4090_v55  ;;  %v2035_v26 = vadd.f32 %v3423_v18, %v4095_v56 }
 0x152   : > { %2464 = vst.msk [vmem:[%s4119_s16 + $0x68] sm:$0xf] %vm1141_vm1, %v3098_v14  ;;  %v1378_v27 = vpop.f32.mrf.mxu1  ;;  %v2026_v28 = vpop.f32.mrf.mxu0 }
 0x153   : > { %1814 = vst.msk [vmem:[%s4113_s12 + $0x60] sm:$0xf] %vm1141_vm1, %v3032_v19  ;;  %2462 = vst.msk [vmem:[%s4119_s16 + $0x60] sm:$0xf] %vm1141_vm1, %v3096_v24  ;;  %v3035_v29 = vpack.c.bf16 %v1387_v25, %v1387_v25  ;;  %v3099_v30 = vpack.c.bf16 %v2035_v26, %v2035_v26  ;;  %v1379_v31 = vadd.f32 %v4090_v55, %v1378_v27 }
 0x154   : > { %v2027_v32 = vadd.f32 %v4095_v56, %v2026_v28  ;;  %v3354_v33 = vpop.f32.mrf.mxu1  ;;  %v3426_v36 = vpop.f32.mrf.mxu0 }
 0x155   : > { %1817 = vst.msk [vmem:[%s4113_s12 + $0x6c] sm:$0xf] %vm1141_vm1, %v3035_v29  ;;  %2465 = vst.msk [vmem:[%s4119_s16 + $0x6c] sm:$0xf] %vm1141_vm1, %v3099_v30  ;;  %v3033_v39 = vpack.c.bf16 %v1379_v31, %v1379_v31  ;;  %v1400_v41 = vadd.f32 %v3354_v33, %v4090_v55  ;;  %v2048_v42 = vadd.f32 %v3426_v36, %v4095_v56 }
 0x156   : > { %v3097_v40 = vpack.c.bf16 %v2027_v32, %v2027_v32  ;;  %v1391_v43 = vpop.f32.mrf.mxu1  ;;  %v2039_v44 = vpop.f32.mrf.mxu0 }
 0x157   : > { %1815 = vst.msk [vmem:[%s4113_s12 + $0x64] sm:$0xf] %vm1141_vm1, %v3033_v39  ;;  %v3038_v45 = vpack.c.bf16 %v1400_v41, %v1400_v41  ;;  %v3102_v46 = vpack.c.bf16 %v2048_v42, %v2048_v42  ;;  %v1392_v47 = vadd.f32 %v4090_v55, %v1391_v43  ;;  %v2040_v48 = vadd.f32 %v4095_v56, %v2039_v44 }
 0x158   : > { %2463 = vst.msk [vmem:[%s4119_s16 + $0x64] sm:$0xf] %vm1141_vm1, %v3097_v40  ;;  %v3355_v51 = vpop.f32.mrf.mxu1  ;;  %v3427_v54 = vpop.f32.mrf.mxu0 }
 0x159   : > { %1820 = vst.msk [vmem:[%s4113_s12 + $0x78] sm:$0xf] %vm1141_vm1, %v3038_v45  ;;  %2468 = vst.msk [vmem:[%s4119_s16 + $0x78] sm:$0xf] %vm1141_vm1, %v3102_v46  ;;  %v3036_v57 = vpack.c.bf16 %v1392_v47, %v1392_v47  ;;  %v3100_v9 = vpack.c.bf16 %v2040_v48, %v2040_v48  ;;  %v1403_v20 = vadd.f32 %v3355_v51, %v4090_v55 }
 0x15a   : > { %v2051_v21 = vadd.f32 %v3427_v54, %v4095_v56  ;;  %v1394_v22 = vpop.f32.mrf.mxu1  ;;  %v2042_v23 = vpop.f32.mrf.mxu0 }
 0x15b   : > { %1818 = vst.msk [vmem:[%s4113_s12 + $0x70] sm:$0xf] %vm1141_vm1, %v3036_v57  ;;  %2466 = vst.msk [vmem:[%s4119_s16 + $0x70] sm:$0xf] %vm1141_vm1, %v3100_v9  ;;  %v3039_v34 = vpack.c.bf16 %v1403_v20, %v1403_v20  ;;  %v1395_v37 = vadd.f32 %v4090_v55, %v1394_v22  ;;  %v2043_v38 = vadd.f32 %v4095_v56, %v2042_v23 }
 0x15c   : > { %v3103_v35 = vpack.c.bf16 %v2051_v21, %v2051_v21  ;;  %v3358_v7 = vpop.f32.mrf.mxu1  ;;  %v3430_v49 = vpop.f32.mrf.mxu0 }
 0x15d   : > { %1821 = vst.msk [vmem:[%s4113_s12 + $0x7c] sm:$0xf] %vm1141_vm1, %v3039_v34  ;;  %v3037_v50 = vpack.c.bf16 %v1395_v37, %v1395_v37  ;;  %v3101_v52 = vpack.c.bf16 %v2043_v38, %v2043_v38  ;;  %v1416_v53 = vadd.f32 %v3358_v7, %v4090_v55  ;;  %v2064_v58 = vadd.f32 %v3430_v49, %v4095_v56 }
 0x15e   : > { %2469 = vst.msk [vmem:[%s4119_s16 + $0x7c] sm:$0xf] %vm1141_vm1, %v3103_v35  ;;  %v1407_v59 = vpop.f32.mrf.mxu1  ;;  %v2055_v60 = vpop.f32.mrf.mxu0 }
 0x15f   : > { %1819 = vst.msk [vmem:[%s4113_s12 + $0x74] sm:$0xf] %vm1141_vm1, %v3037_v50  ;;  %2467 = vst.msk [vmem:[%s4119_s16 + $0x74] sm:$0xf] %vm1141_vm1, %v3101_v52  ;;  %v3042_v61 = vpack.c.bf16 %v1416_v53, %v1416_v53  ;;  %v3106_v62 = vpack.c.bf16 %v2064_v58, %v2064_v58  ;;  %v1408_v63 = vadd.f32 %v4090_v55, %v1407_v59 }
 0x160   : > { %v2056_v0 = vadd.f32 %v4095_v56, %v2055_v60  ;;  %v3359_v1 = vpop.f32.mrf.mxu1  ;;  %v3431_v2 = vpop.f32.mrf.mxu0 }
 0x161   : > { %1824 = vst.msk [vmem:[%s4113_s12 + $0x88] sm:$0xf] %vm1141_vm1, %v3042_v61  ;;  %2472 = vst.msk [vmem:[%s4119_s16 + $0x88] sm:$0xf] %vm1141_vm1, %v3106_v62  ;;  %v3040_v3 = vpack.c.bf16 %v1408_v63, %v1408_v63  ;;  %v1419_v5 = vadd.f32 %v3359_v1, %v4090_v55  ;;  %v2067_v6 = vadd.f32 %v3431_v2, %v4095_v56 }
 0x162   : > { %v3104_v4 = vpack.c.bf16 %v2056_v0, %v2056_v0  ;;  %v1410_v8 = vpop.f32.mrf.mxu1  ;;  %v2058_v10 = vpop.f32.mrf.mxu0 }
 0x163   : > { %1822 = vst.msk [vmem:[%s4113_s12 + $0x80] sm:$0xf] %vm1141_vm1, %v3040_v3  ;;  %v3043_v11 = vpack.c.bf16 %v1419_v5, %v1419_v5  ;;  %v3107_v12 = vpack.c.bf16 %v2067_v6, %v2067_v6  ;;  %v1411_v13 = vadd.f32 %v4090_v55, %v1410_v8  ;;  %v2059_v14 = vadd.f32 %v4095_v56, %v2058_v10 }
 0x164   : > { %2470 = vst.msk [vmem:[%s4119_s16 + $0x80] sm:$0xf] %vm1141_vm1, %v3104_v4  ;;  %v3362_v15 = vpop.f32.mrf.mxu1  ;;  %v3434_v16 = vpop.f32.mrf.mxu0 }
 0x165   : > { %1825 = vst.msk [vmem:[%s4113_s12 + $0x8c] sm:$0xf] %vm1141_vm1, %v3043_v11  ;;  %2473 = vst.msk [vmem:[%s4119_s16 + $0x8c] sm:$0xf] %vm1141_vm1, %v3107_v12  ;;  %v3041_v17 = vpack.c.bf16 %v1411_v13, %v1411_v13  ;;  %v3105_v18 = vpack.c.bf16 %v2059_v14, %v2059_v14  ;;  %v1432_v19 = vadd.f32 %v3362_v15, %v4090_v55 }
 0x166   : > { %v2080_v24 = vadd.f32 %v3434_v16, %v4095_v56  ;;  %v1423_v25 = vpop.f32.mrf.mxu1  ;;  %v2071_v26 = vpop.f32.mrf.mxu0 }
 0x167   : > { %1823 = vst.msk [vmem:[%s4113_s12 + $0x84] sm:$0xf] %vm1141_vm1, %v3041_v17  ;;  %2471 = vst.msk [vmem:[%s4119_s16 + $0x84] sm:$0xf] %vm1141_vm1, %v3105_v18  ;;  %v3046_v27 = vpack.c.bf16 %v1432_v19, %v1432_v19  ;;  %v1424_v29 = vadd.f32 %v4090_v55, %v1423_v25  ;;  %v2072_v30 = vadd.f32 %v4095_v56, %v2071_v26 }
 0x168   : > { %v3110_v28 = vpack.c.bf16 %v2080_v24, %v2080_v24  ;;  %v3363_v31 = vpop.f32.mrf.mxu1  ;;  %v3435_v32 = vpop.f32.mrf.mxu0 }
 0x169   : > { %1828 = vst.msk [vmem:[%s4113_s12 + $0x98] sm:$0xf] %vm1141_vm1, %v3046_v27  ;;  %v3044_v33 = vpack.c.bf16 %v1424_v29, %v1424_v29  ;;  %v3108_v36 = vpack.c.bf16 %v2072_v30, %v2072_v30  ;;  %v1435_v39 = vadd.f32 %v3363_v31, %v4090_v55  ;;  %v2083_v40 = vadd.f32 %v3435_v32, %v4095_v56 }
 0x16a   : > { %2476 = vst.msk [vmem:[%s4119_s16 + $0x98] sm:$0xf] %vm1141_vm1, %v3110_v28  ;;  %v1426_v41 = vpop.f32.mrf.mxu1  ;;  %v2074_v42 = vpop.f32.mrf.mxu0 }
 0x16b   : > { %1826 = vst.msk [vmem:[%s4113_s12 + $0x90] sm:$0xf] %vm1141_vm1, %v3044_v33  ;;  %2474 = vst.msk [vmem:[%s4119_s16 + $0x90] sm:$0xf] %vm1141_vm1, %v3108_v36  ;;  %v3047_v43 = vpack.c.bf16 %v1435_v39, %v1435_v39  ;;  %v3111_v44 = vpack.c.bf16 %v2083_v40, %v2083_v40  ;;  %v1427_v45 = vadd.f32 %v4090_v55, %v1426_v41 }
 0x16c   : > { %v2075_v46 = vadd.f32 %v4095_v56, %v2074_v42  ;;  %v3366_v47 = vpop.f32.mrf.mxu1  ;;  %v3438_v48 = vpop.f32.mrf.mxu0 }
 0x16d   : > { %1829 = vst.msk [vmem:[%s4113_s12 + $0x9c] sm:$0xf] %vm1141_vm1, %v3047_v43  ;;  %2477 = vst.msk [vmem:[%s4119_s16 + $0x9c] sm:$0xf] %vm1141_vm1, %v3111_v44  ;;  %v3045_v51 = vpack.c.bf16 %v1427_v45, %v1427_v45  ;;  %v1448_v57 = vadd.f32 %v3366_v47, %v4090_v55  ;;  %v2096_v9 = vadd.f32 %v3438_v48, %v4095_v56 }
 0x16e   : > { %v3109_v54 = vpack.c.bf16 %v2075_v46, %v2075_v46  ;;  %v1439_v20 = vpop.f32.mrf.mxu1  ;;  %v2087_v21 = vpop.f32.mrf.mxu0 }
 0x16f   : > { %1827 = vst.msk [vmem:[%s4113_s12 + $0x94] sm:$0xf] %vm1141_vm1, %v3045_v51  ;;  %v3050_v22 = vpack.c.bf16 %v1448_v57, %v1448_v57  ;;  %v3114_v23 = vpack.c.bf16 %v2096_v9, %v2096_v9  ;;  %v1440_v34 = vadd.f32 %v4090_v55, %v1439_v20  ;;  %v2088_v35 = vadd.f32 %v4095_v56, %v2087_v21 }
 0x170   : > { %2475 = vst.msk [vmem:[%s4119_s16 + $0x94] sm:$0xf] %vm1141_vm1, %v3109_v54  ;;  %v3367_v37 = vpop.f32.mrf.mxu1  ;;  %v3439_v38 = vpop.f32.mrf.mxu0 }
 0x171   : > { %1832 = vst.msk [vmem:[%s4113_s12 + $0xa8] sm:$0xf] %vm1141_vm1, %v3050_v22  ;;  %2480 = vst.msk [vmem:[%s4119_s16 + $0xa8] sm:$0xf] %vm1141_vm1, %v3114_v23  ;;  %v3048_v7 = vpack.c.bf16 %v1440_v34, %v1440_v34  ;;  %v3112_v49 = vpack.c.bf16 %v2088_v35, %v2088_v35  ;;  %v1451_v50 = vadd.f32 %v3367_v37, %v4090_v55 }
 0x172   : > { %v2099_v52 = vadd.f32 %v3439_v38, %v4095_v56  ;;  %v1442_v53 = vpop.f32.mrf.mxu1  ;;  %v2090_v58 = vpop.f32.mrf.mxu0 }
 0x173   : > { %1830 = vst.msk [vmem:[%s4113_s12 + $0xa0] sm:$0xf] %vm1141_vm1, %v3048_v7  ;;  %2478 = vst.msk [vmem:[%s4119_s16 + $0xa0] sm:$0xf] %vm1141_vm1, %v3112_v49  ;;  %v3051_v59 = vpack.c.bf16 %v1451_v50, %v1451_v50  ;;  %v1443_v61 = vadd.f32 %v4090_v55, %v1442_v53  ;;  %v2091_v62 = vadd.f32 %v4095_v56, %v2090_v58 }
 0x174   : > { %v3115_v60 = vpack.c.bf16 %v2099_v52, %v2099_v52  ;;  %v3370_v63 = vpop.f32.mrf.mxu1  ;;  %v3442_v0 = vpop.f32.mrf.mxu0 }
 0x175   : > { %1833 = vst.msk [vmem:[%s4113_s12 + $0xac] sm:$0xf] %vm1141_vm1, %v3051_v59  ;;  %v3049_v1 = vpack.c.bf16 %v1443_v61, %v1443_v61  ;;  %v3113_v2 = vpack.c.bf16 %v2091_v62, %v2091_v62  ;;  %v1464_v3 = vadd.f32 %v3370_v63, %v4090_v55  ;;  %v2112_v4 = vadd.f32 %v3442_v0, %v4095_v56 }
 0x176   : > { %2481 = vst.msk [vmem:[%s4119_s16 + $0xac] sm:$0xf] %vm1141_vm1, %v3115_v60  ;;  %v1455_v5 = vpop.f32.mrf.mxu1  ;;  %v2103_v6 = vpop.f32.mrf.mxu0 }
 0x177   : > { %1831 = vst.msk [vmem:[%s4113_s12 + $0xa4] sm:$0xf] %vm1141_vm1, %v3049_v1  ;;  %2479 = vst.msk [vmem:[%s4119_s16 + $0xa4] sm:$0xf] %vm1141_vm1, %v3113_v2  ;;  %v3054_v8 = vpack.c.bf16 %v1464_v3, %v1464_v3  ;;  %v3118_v10 = vpack.c.bf16 %v2112_v4, %v2112_v4  ;;  %v1456_v11 = vadd.f32 %v4090_v55, %v1455_v5 }
 0x178   : > { %v2104_v12 = vadd.f32 %v4095_v56, %v2103_v6  ;;  %v3371_v13 = vpop.f32.mrf.mxu1  ;;  %v3443_v14 = vpop.f32.mrf.mxu0 }
 0x179   : > { %1836 = vst.msk [vmem:[%s4113_s12 + $0xb8] sm:$0xf] %vm1141_vm1, %v3054_v8  ;;  %2484 = vst.msk [vmem:[%s4119_s16 + $0xb8] sm:$0xf] %vm1141_vm1, %v3118_v10  ;;  %v3052_v15 = vpack.c.bf16 %v1456_v11, %v1456_v11  ;;  %v1467_v17 = vadd.f32 %v3371_v13, %v4090_v55  ;;  %v2115_v18 = vadd.f32 %v3443_v14, %v4095_v56 }
 0x17a   : > { %v3116_v16 = vpack.c.bf16 %v2104_v12, %v2104_v12  ;;  %v1458_v19 = vpop.f32.mrf.mxu1  ;;  %v2106_v24 = vpop.f32.mrf.mxu0 }
 0x17b   : > { %1834 = vst.msk [vmem:[%s4113_s12 + $0xb0] sm:$0xf] %vm1141_vm1, %v3052_v15  ;;  %v3055_v25 = vpack.c.bf16 %v1467_v17, %v1467_v17  ;;  %v3119_v26 = vpack.c.bf16 %v2115_v18, %v2115_v18  ;;  %v1459_v27 = vadd.f32 %v4090_v55, %v1458_v19  ;;  %v2107_v28 = vadd.f32 %v4095_v56, %v2106_v24 }
 0x17c   : > { %2482 = vst.msk [vmem:[%s4119_s16 + $0xb0] sm:$0xf] %vm1141_vm1, %v3116_v16  ;;  %v3374_v29 = vpop.f32.mrf.mxu1  ;;  %v3446_v30 = vpop.f32.mrf.mxu0 }
 0x17d   : > { %1837 = vst.msk [vmem:[%s4113_s12 + $0xbc] sm:$0xf] %vm1141_vm1, %v3055_v25  ;;  %2485 = vst.msk [vmem:[%s4119_s16 + $0xbc] sm:$0xf] %vm1141_vm1, %v3119_v26  ;;  %v3053_v31 = vpack.c.bf16 %v1459_v27, %v1459_v27  ;;  %v3117_v32 = vpack.c.bf16 %v2107_v28, %v2107_v28  ;;  %v1480_v33 = vadd.f32 %v3374_v29, %v4090_v55 }
 0x17e   : > { %v2128_v36 = vadd.f32 %v3446_v30, %v4095_v56  ;;  %v1471_v39 = vpop.f32.mrf.mxu1  ;;  %v2119_v40 = vpop.f32.mrf.mxu0 }
 0x17f   : > { %1835 = vst.msk [vmem:[%s4113_s12 + $0xb4] sm:$0xf] %vm1141_vm1, %v3053_v31  ;;  %2483 = vst.msk [vmem:[%s4119_s16 + $0xb4] sm:$0xf] %vm1141_vm1, %v3117_v32  ;;  %v3058_v41 = vpack.c.bf16 %v1480_v33, %v1480_v33  ;;  %v1472_v43 = vadd.f32 %v4090_v55, %v1471_v39  ;;  %v2120_v44 = vadd.f32 %v4095_v56, %v2119_v40 }
 0x180   : > { %v3122_v42 = vpack.c.bf16 %v2128_v36, %v2128_v36  ;;  %v3375_v45 = vpop.f32.mrf.mxu1  ;;  %v3447_v46 = vpop.f32.mrf.mxu0 }
 0x181   : > { %1840 = vst.msk [vmem:[%s4113_s12 + $0xc8] sm:$0xf] %vm1141_vm1, %v3058_v41  ;;  %v3056_v47 = vpack.c.bf16 %v1472_v43, %v1472_v43  ;;  %v3120_v48 = vpack.c.bf16 %v2120_v44, %v2120_v44  ;;  %v1483_v51 = vadd.f32 %v3375_v45, %v4090_v55  ;;  %v2131_v54 = vadd.f32 %v3447_v46, %v4095_v56 }
 0x182   : > { %2488 = vst.msk [vmem:[%s4119_s16 + $0xc8] sm:$0xf] %vm1141_vm1, %v3122_v42  ;;  %v1474_v57 = vpop.f32.mrf.mxu1  ;;  %v2122_v9 = vpop.f32.mrf.mxu0 }
 0x183   : > { %1838 = vst.msk [vmem:[%s4113_s12 + $0xc0] sm:$0xf] %vm1141_vm1, %v3056_v47  ;;  %2486 = vst.msk [vmem:[%s4119_s16 + $0xc0] sm:$0xf] %vm1141_vm1, %v3120_v48  ;;  %v3059_v20 = vpack.c.bf16 %v1483_v51, %v1483_v51  ;;  %v3123_v21 = vpack.c.bf16 %v2131_v54, %v2131_v54  ;;  %v1475_v22 = vadd.f32 %v4090_v55, %v1474_v57 }
 0x184   : > { %v2123_v23 = vadd.f32 %v4095_v56, %v2122_v9  ;;  %v3378_v34 = vpop.f32.mrf.mxu1  ;;  %v3450_v35 = vpop.f32.mrf.mxu0 }
 0x185   : > { %1841 = vst.msk [vmem:[%s4113_s12 + $0xcc] sm:$0xf] %vm1141_vm1, %v3059_v20  ;;  %2489 = vst.msk [vmem:[%s4119_s16 + $0xcc] sm:$0xf] %vm1141_vm1, %v3123_v21  ;;  %v3057_v37 = vpack.c.bf16 %v1475_v22, %v1475_v22  ;;  %v1496_v7 = vadd.f32 %v3378_v34, %v4090_v55  ;;  %v2144_v49 = vadd.f32 %v3450_v35, %v4095_v56 }
 0x186   : > { %v3121_v38 = vpack.c.bf16 %v2123_v23, %v2123_v23  ;;  %v1487_v50 = vpop.f32.mrf.mxu1  ;;  %v2135_v52 = vpop.f32.mrf.mxu0 }
 0x187   : > { %1839 = vst.msk [vmem:[%s4113_s12 + $0xc4] sm:$0xf] %vm1141_vm1, %v3057_v37  ;;  %v3062_v53 = vpack.c.bf16 %v1496_v7, %v1496_v7  ;;  %v3126_v58 = vpack.c.bf16 %v2144_v49, %v2144_v49  ;;  %v1488_v59 = vadd.f32 %v4090_v55, %v1487_v50  ;;  %v2136_v60 = vadd.f32 %v4095_v56, %v2135_v52  ;;  %v3488_v37 = vld [vmem:[%s4517_s5] ss:$0 sm:$0xff] }
 0x188   : > { %2487 = vst.msk [vmem:[%s4119_s16 + $0xc4] sm:$0xf] %vm1141_vm1, %v3121_v38  ;;  %v3379_v61 = vpop.f32.mrf.mxu1  ;;  %v3451_v62 = vpop.f32.mrf.mxu0 }
 0x189   : > { %1844 = vst.msk [vmem:[%s4113_s12 + $0xd8] sm:$0xf] %vm1141_vm1, %v3062_v53  ;;  %2492 = vst.msk [vmem:[%s4119_s16 + $0xd8] sm:$0xf] %vm1141_vm1, %v3126_v58  ;;  %v3060_v63 = vpack.c.bf16 %v1488_v59, %v1488_v59  ;;  %v3124_v0 = vpack.c.bf16 %v2136_v60, %v2136_v60  ;;  %v1499_v1 = vadd.f32 %v3379_v61, %v4090_v55 }
 0x18a   : > { %v2147_v2 = vadd.f32 %v3451_v62, %v4095_v56  ;;  %v1490_v3 = vpop.f32.mrf.mxu1  ;;  %v2138_v4 = vpop.f32.mrf.mxu0 }
 0x18b   : > { %1842 = vst.msk [vmem:[%s4113_s12 + $0xd0] sm:$0xf] %vm1141_vm1, %v3060_v63  ;;  %2490 = vst.msk [vmem:[%s4119_s16 + $0xd0] sm:$0xf] %vm1141_vm1, %v3124_v0  ;;  %v3063_v5 = vpack.c.bf16 %v1499_v1, %v1499_v1  ;;  %v1491_v8 = vadd.f32 %v4090_v55, %v1490_v3  ;;  %v2139_v10 = vadd.f32 %v4095_v56, %v2138_v4 }
 0x18c   : > { %v3127_v6 = vpack.c.bf16 %v2147_v2, %v2147_v2  ;;  %v3382_v11 = vpop.f32.mrf.mxu1  ;;  %v3454_v12 = vpop.f32.mrf.mxu0 }
 0x18d   : > { %1845 = vst.msk [vmem:[%s4113_s12 + $0xdc] sm:$0xf] %vm1141_vm1, %v3063_v5  ;;  %v3061_v13 = vpack.c.bf16 %v1491_v8, %v1491_v8  ;;  %v3125_v14 = vpack.c.bf16 %v2139_v10, %v2139_v10  ;;  %v1512_v15 = vadd.f32 %v3382_v11, %v4090_v55  ;;  %v2160_v16 = vadd.f32 %v3454_v12, %v4095_v56 }
 0x18e   : > { %2493 = vst.msk [vmem:[%s4119_s16 + $0xdc] sm:$0xf] %vm1141_vm1, %v3127_v6  ;;  %v1503_v17 = vpop.f32.mrf.mxu1  ;;  %v2151_v18 = vpop.f32.mrf.mxu0 }
 0x18f   : > { %1843 = vst.msk [vmem:[%s4113_s12 + $0xd4] sm:$0xf] %vm1141_vm1, %v3061_v13  ;;  %2491 = vst.msk [vmem:[%s4119_s16 + $0xd4] sm:$0xf] %vm1141_vm1, %v3125_v14  ;;  %v3066_v19 = vpack.c.bf16 %v1512_v15, %v1512_v15  ;;  %v3130_v24 = vpack.c.bf16 %v2160_v16, %v2160_v16  ;;  %v1504_v25 = vadd.f32 %v4090_v55, %v1503_v17 }
 0x190   : > { %v2152_v26 = vadd.f32 %v4095_v56, %v2151_v18  ;;  %v3383_v27 = vpop.f32.mrf.mxu1  ;;  %v3455_v28 = vpop.f32.mrf.mxu0 }
 0x191   : > { %1848 = vst.msk [vmem:[%s4113_s12 + $0xe8] sm:$0xf] %vm1141_vm1, %v3066_v19  ;;  %2496 = vst.msk [vmem:[%s4119_s16 + $0xe8] sm:$0xf] %vm1141_vm1, %v3130_v24  ;;  %v3064_v29 = vpack.c.bf16 %v1504_v25, %v1504_v25  ;;  %v1515_v31 = vadd.f32 %v3383_v27, %v4090_v55  ;;  %v2163_v32 = vadd.f32 %v3455_v28, %v4095_v56 }
 0x192   : > { %v3128_v30 = vpack.c.bf16 %v2152_v26, %v2152_v26  ;;  %v1506_v33 = vpop.f32.mrf.mxu1  ;;  %v2154_v36 = vpop.f32.mrf.mxu0 }
 0x193   : > { %1846 = vst.msk [vmem:[%s4113_s12 + $0xe0] sm:$0xf] %vm1141_vm1, %v3064_v29  ;;  %v3067_v39 = vpack.c.bf16 %v1515_v31, %v1515_v31  ;;  %v3131_v40 = vpack.c.bf16 %v2163_v32, %v2163_v32  ;;  %v1507_v41 = vadd.f32 %v4090_v55, %v1506_v33  ;;  %v2155_v42 = vadd.f32 %v4095_v56, %v2154_v36 }
 0x194   : > { %2494 = vst.msk [vmem:[%s4119_s16 + $0xe0] sm:$0xf] %vm1141_vm1, %v3128_v30  ;;  %v3386_v43 = vpop.f32.mrf.mxu1  ;;  %v3458_v44 = vpop.f32.mrf.mxu0 }
 0x195   : > { %1849 = vst.msk [vmem:[%s4113_s12 + $0xec] sm:$0xf] %vm1141_vm1, %v3067_v39  ;;  %2497 = vst.msk [vmem:[%s4119_s16 + $0xec] sm:$0xf] %vm1141_vm1, %v3131_v40  ;;  %v3065_v45 = vpack.c.bf16 %v1507_v41, %v1507_v41  ;;  %v3129_v46 = vpack.c.bf16 %v2155_v42, %v2155_v42  ;;  %v1528_v47 = vadd.f32 %v3386_v43, %v4090_v55 }
 0x196   : > { %v2176_v48 = vadd.f32 %v3458_v44, %v4095_v56  ;;  %v1519_v51 = vpop.f32.mrf.mxu1  ;;  %v2167_v54 = vpop.f32.mrf.mxu0 }
 0x197   : > { %1847 = vst.msk [vmem:[%s4113_s12 + $0xe4] sm:$0xf] %vm1141_vm1, %v3065_v45  ;;  %2495 = vst.msk [vmem:[%s4119_s16 + $0xe4] sm:$0xf] %vm1141_vm1, %v3129_v46  ;;  %v3070_v57 = vpack.c.bf16 %v1528_v47, %v1528_v47  ;;  %v1520_v20 = vadd.f32 %v4090_v55, %v1519_v51  ;;  %v2168_v21 = vadd.f32 %v4095_v56, %v2167_v54  ;;  %v3489_v55 = vld [vmem:[%s4518_s6] ss:$0 sm:$0xff] }
 0x198   : > { %v3134_v9 = vpack.c.bf16 %v2176_v48, %v2176_v48  ;;  %v3387_v22 = vpop.f32.mrf.mxu1  ;;  %v3459_v23 = vpop.f32.mrf.mxu0 }
 0x199   : > { %1852 = vst.msk [vmem:[%s4113_s12 + $0xf8] sm:$0xf] %vm1141_vm1, %v3070_v57  ;;  %v3068_v34 = vpack.c.bf16 %v1520_v20, %v1520_v20  ;;  %v3132_v35 = vpack.c.bf16 %v2168_v21, %v2168_v21  ;;  %v1531_v38 = vadd.f32 %v3488_v37, %v3387_v22  ;;  %v2179_v56 = vadd.f32 %v3489_v55, %v3459_v23 }
 0x19a   : > { %2500 = vst.msk [vmem:[%s4119_s16 + $0xf8] sm:$0xf] %vm1141_vm1, %v3134_v9  ;;  %v1522_v7 = vpop.f32.mrf.mxu1  ;;  %v2170_v49 = vpop.f32.mrf.mxu0 }
 0x19b   : > { %1850 = vst.msk [vmem:[%s4113_s12 + $0xf0] sm:$0xf] %vm1141_vm1, %v3068_v34  ;;  %2498 = vst.msk [vmem:[%s4119_s16 + $0xf0] sm:$0xf] %vm1141_vm1, %v3132_v35  ;;  %v3071_v50 = vpack.c.bf16 %v1531_v38, %v1531_v38  ;;  %v3135_v52 = vpack.c.bf16 %v2179_v56, %v2179_v56  ;;  %v1523_v53 = vadd.f32 %v3488_v37, %v1522_v7 }
 0x19c   : > { %v2171_v58 = vadd.f32 %v3489_v55, %v2170_v49 }
 0x19d   : > { %1853 = vst.msk [vmem:[%s4113_s12 + $0xfc] sm:$0xf] %vm1141_vm1, %v3071_v50  ;;  %2501 = vst.msk [vmem:[%s4119_s16 + $0xfc] sm:$0xf] %vm1141_vm1, %v3135_v52  ;;  %v3069_v59 = vpack.c.bf16 %v1523_v53, %v1523_v53 }
 0x19e   : > { %v3133_v60 = vpack.c.bf16 %v2171_v58, %v2171_v58 }
 0x19f   : > { %1851 = vst.msk [vmem:[%s4113_s12 + $0xf4] sm:$0xf] %vm1141_vm1, %v3069_v59 }
 0x1a0   : > { %2499 = vst.msk [vmem:[%s4119_s16 + $0xf4] sm:$0xf] %vm1141_vm1, %v3133_v60 }
 0x1a1 PF: > { %s20_s30 = sadd.s32 1, %s3496_s30  }
 0x1a2   : > { %p17_p4 = scmp.ge.s32.totalorder %s20_s30, 4  }
 0x1a4   :  { %19 = sbr.rel (!%p17_p4) target bundleno = 1 (0x1), region = 102 }

// kernel: causal_self_attention_forward.4
= control target key start
LH: loop header
LB: loop body
LE: loop exit
PB: predicated region body
PF: predicated region fallthrough
CT: control target
= control target key end

     0   :  { %s5536_s0 = inlined_call_operand.vmem [shape: s32[3], index: 0, kind: input, shape index: {}]   ;;  %s5537_s2 = inlined_call_operand.vmem [shape: bf16[8,512,16], index: 2, kind: input, shape index: {}]   ;;  %s5538_s3 = inlined_call_operand.vmem [shape: bf16[8,512,16], index: 3, kind: input, shape index: {}]   ;;  %s5539_s4 = inlined_call_operand.vmem [shape: bf16[8,512,16], index: 4, kind: input, shape index: {}]   ;;  %s5540_s5 = inlined_call_operand.vmem [shape: bf16[8,512,16], index: 5, kind: output, shape index: {}]   ;;  %s5541_s1 = inlined_call_operand.vmem [shape: s32[3], index: 1, kind: input, shape index: {}]  }
   0x1   :  { %s10_s20 = sshll.u32 %s5536_s0, 4  ;;  %s14_s23 = sshll.u32 %s5541_s1, 4  ;;  %s11_s20 = int_to_ptr.vmem [resolvable:$true] %s10_s20  ;;  %s15_s23 = int_to_ptr.vmem [resolvable:$true] %s14_s23 }
   0x2   :  { %s3870_s24 = scalar_lea.vmem %s11_s20, 16  ;;  %p3875_p1 = scmp.lt.s32.totalorder %s11_s20, %s11_s20 }
   0x3   :  { %p3871_p0 = scmp.ne.s32.totalorder %s11_s20, %s3870_s24  ;;  %p3876_p2 = scmp.lt.s32.totalorder %s3870_s24, %s3870_s24 }
   0x5   :  { %p3877_p3 = por %p3876_p2, %p3875_p1 }
   0x7   :  { %p3878_p4 = pnand %p3877_p3, %p3871_p0 }
   0x9   :  { %3881 = shalt.err (!%p3878_p4)  }
   0xa   :  { %s3936_s25 = smov [#allocation6]   ;;  %s3882_s26 = scalar_lea.vmem %s15_s23, 16 }
   0xb   :  { %13 = dma.vmem_to_smem %s11_s20, 16, %s3936_s25, [#allocation5] }
   0xc   :  { %p3883_p5 = scmp.ne.s32.totalorder %s15_s23, %s3882_s26  ;;  %p3887_p6 = scmp.lt.s32.totalorder %s15_s23, %s15_s23 }
   0xd   :  { %p3888_p7 = scmp.lt.s32.totalorder %s3882_s26, %s3882_s26 }
   0xf   :  { %p3889_p8 = por %p3888_p7, %p3887_p6 }
  0x11   :  { %p3890_p9 = pnand %p3889_p8, %p3883_p5 }
  0x13   :  { %3893 = shalt.err (!%p3890_p9)  }
  0x14   :  { %s3937_s0 = smov [#allocation7]  }
  0x15   :  { %17 = dma.vmem_to_smem %s15_s23, 16, %s3937_s0, [#allocation5] }
  0x16   :  { %3914 = dma.done.wait [#allocation5], 32 }
  0x17   :  { %3915 = vsyncadd [#allocation5], 4294967264 }
  0x18   :  { %19 = sfence }
  0x19   :  { %s3978_s1 = smov 0   ;;  %s3980_s27 = smov 0  }
  0x1a   :  { %s3982_s28 = smov 0   ;;  %s3984_s29 = smov 0  }
  0x1b   :  { %s3986_s30 = smov 0  }
  0x1c LB: > { %s34_s6 = sadd.s32 1, %s3926_s28  ;;  %s37_s7 = sadd.s32 1, %s3930_s29  ;;  %s3934_s30 = sphi %s3986_s30, %s25_s30   ;;  %s3930_s29 = sphi %s3984_s29, %s5853_s29   ;;  %s3926_s28 = sphi %s3982_s28, %s5852_s28   ;;  %s3922_s27 = sphi %s3980_s27, %s5851_s27   ;;  %s3918_s1 = sphi %s3978_s1, %s5850_s1  }
  0x1d   : > { %p35_p10 = scmp.ge.s32.totalorder %s34_s6, 3  ;;  %p3201_p11 = scmp.ge.s32.totalorder %s3934_s30, 1 }
  0x1e   : > { %p218_p12 = scmp.lt.s32.totalorder %s3934_s30, 25 }
  0x1f   : > { %s5855_s6 = smov (%p35_p10, %s34_s6), 0  ;;  %s5857_s7 = smov (!%p35_p10, %s37_s7), %s3930_s29 }
  0x20   : > { %p219_p13 = pnand %p3201_p11, %p218_p12  ;;  %p39_p0 = scmp.ge.s32.totalorder %s5857_s7, 8 }
  0x22   : > { %s5859_s7 = smov (%p39_p0, %s5857_s7), 0  ;;  %222 = sbr.rel (%p219_p13) target bundleno = 1291 (0x50b), region = 32 }
  0x27   : > { %s272_s8 = sld [smem:[#allocation6 + %s3918_s1]]  ;;  %p274_p1 = scmp.lt.s32.totalorder %s3922_s27, 7 }
  0x28   : > { %s284_s9 = sld [smem:[#allocation7 + %s3918_s1]] }
  0x29   : > { %s5861_s27 = smov (!%p274_p1, %s3922_s27), 7  ;;  %s296_s10 = sld [smem:[#allocation7 + %s3918_s1]] }
  0x2a   : > { %s308_s11 = sld [smem:[#allocation6 + %s3918_s1]]  ;;  %s3203_s16 = sshll.u32 %s5861_s27, 6 }
  0x2b   : > { %s4008_s12 = sld [smem:[#allocation6 + %s3918_s1]] }
  0x2c   : > { %s4010_s14 = sld [smem:[#allocation7 + %s3918_s1]] }
  0x2d   : > { %s3202_s13 = sshll.u32 %s272_s8, 5 }
  0x2e   : > { %p276_p2 = scmp.lt.s32.totalorder %s3202_s13, 63  ;;  %s3205_s15 = sshll.u32 %s284_s9, 5 }
  0x2f   : > { %p288_p3 = scmp.lt.s32.totalorder %s3205_s15, 63  ;;  %s3208_s18 = sshll.u32 %s296_s10, 5 }
  0x30   : > { %s5863_s13 = smov (!%p276_p2, %s3202_s13), 63  ;;  %p300_p4 = scmp.lt.s32.totalorder %s3208_s18, 63 }
  0x31   : > { %s5865_s15 = smov (!%p288_p3, %s3205_s15), 63  ;;  %s279_s17 = sadd.s32 %s3203_s16, %s5863_s13 }
  0x32   : > { %s3204_s19 = sshll.u32 %s279_s17, 2  ;;  %s291_s20 = sadd.s32 %s3203_s16, %s5865_s15 }
  0x33   : > { %s4015_s23 = scalar_lea.vmem %s5537_s2, %s3204_s19  ;;  %s3207_s24 = sshll.u32 %s291_s20, 2 }
  0x34   : > { %s4020_s0 = scalar_lea.vmem %s5538_s3, %s3207_s24  ;;  %s3211_s1 = sshll.u32 %s308_s11, 5 }
  0x35   : > { %s5867_s18 = smov (!%p300_p4, %s3208_s18), 63  ;;  %p312_p5 = scmp.lt.s32.totalorder %s3211_s1, 63 }
  0x36   : > { %s303_s27 = sadd.s32 %s3203_s16, %s5867_s18  ;;  %p3214_p6 = scmp.ne.s32.totalorder %s4010_s14, 0 }
  0x37   : > { %s3210_s8 = sshll.u32 %s303_s27, 2  ;;  %s5869_s1 = smov (!%p312_p5, %s3211_s1), 63 }
  0x38   : > { %s4025_s13 = scalar_lea.vmem %s5539_s4, %s3210_s8  ;;  %s315_s15 = sadd.s32 %s3203_s16, %s5869_s1 }
  0x39   : > { %s3213_s17 = sshll.u32 %s315_s15, 2  ;;  %326 = sbr.rel (%p3214_p6) target bundleno = 111 (0x6f), region = 36 }
  0x3a   : > { %s4030_s21 = scalar_lea.vmem %s5540_s5, %s3213_s17 }
  0x3e   : > { %vm327_vm0 = vcmask 7168   ;;  %vm392_vm1 = vcmask 130048   ;;  %v3938_v0 = vmov -inf   ;;  %v3939_v1 = vmov 0.0  }
  0x3f   : > { %328 = vst.msk [vmem:[#allocation3] sm:$0xff] %vm327_vm0, %v3938_v0  ;;  %329 = vst.msk [vmem:[#allocation3 + $0x8] sm:$0xff] %vm327_vm0, %v3938_v0 }
  0x40   : > { %330 = vst.msk [vmem:[#allocation3 + $0x10] sm:$0xff] %vm327_vm0, %v3938_v0  ;;  %331 = vst.msk [vmem:[#allocation3 + $0x18] sm:$0xff] %vm327_vm0, %v3938_v0 }
  0x41   : > { %332 = vst.msk [vmem:[#allocation3 + $0x20] sm:$0xff] %vm327_vm0, %v3938_v0  ;;  %333 = vst.msk [vmem:[#allocation3 + $0x28] sm:$0xff] %vm327_vm0, %v3938_v0 }
  0x42   : > { %334 = vst.msk [vmem:[#allocation3 + $0x30] sm:$0xff] %vm327_vm0, %v3938_v0  ;;  %335 = vst.msk [vmem:[#allocation3 + $0x38] sm:$0xff] %vm327_vm0, %v3938_v0 }
  0x43   : > { %336 = vst.msk [vmem:[#allocation3 + $0x40] sm:$0xff] %vm327_vm0, %v3938_v0  ;;  %337 = vst.msk [vmem:[#allocation3 + $0x48] sm:$0xff] %vm327_vm0, %v3938_v0 }
  0x44   : > { %338 = vst.msk [vmem:[#allocation3 + $0x50] sm:$0xff] %vm327_vm0, %v3938_v0  ;;  %339 = vst.msk [vmem:[#allocation3 + $0x58] sm:$0xff] %vm327_vm0, %v3938_v0 }
  0x45   : > { %340 = vst.msk [vmem:[#allocation3 + $0x60] sm:$0xff] %vm327_vm0, %v3938_v0  ;;  %341 = vst.msk [vmem:[#allocation3 + $0x68] sm:$0xff] %vm327_vm0, %v3938_v0 }
  0x46   : > { %342 = vst.msk [vmem:[#allocation3 + $0x70] sm:$0xff] %vm327_vm0, %v3938_v0  ;;  %343 = vst.msk [vmem:[#allocation3 + $0x78] sm:$0xff] %vm327_vm0, %v3938_v0 }
  0x47   : > { %344 = vst.msk [vmem:[#allocation3 + $0x80] sm:$0xff] %vm327_vm0, %v3938_v0  ;;  %345 = vst.msk [vmem:[#allocation3 + $0x88] sm:$0xff] %vm327_vm0, %v3938_v0 }
  0x48   : > { %346 = vst.msk [vmem:[#allocation3 + $0x90] sm:$0xff] %vm327_vm0, %v3938_v0  ;;  %347 = vst.msk [vmem:[#allocation3 + $0x98] sm:$0xff] %vm327_vm0, %v3938_v0 }
  0x49   : > { %348 = vst.msk [vmem:[#allocation3 + $0xa0] sm:$0xff] %vm327_vm0, %v3938_v0  ;;  %349 = vst.msk [vmem:[#allocation3 + $0xa8] sm:$0xff] %vm327_vm0, %v3938_v0 }
  0x4a   : > { %350 = vst.msk [vmem:[#allocation3 + $0xb0] sm:$0xff] %vm327_vm0, %v3938_v0  ;;  %351 = vst.msk [vmem:[#allocation3 + $0xb8] sm:$0xff] %vm327_vm0, %v3938_v0 }
  0x4b   : > { %352 = vst.msk [vmem:[#allocation3 + $0xc0] sm:$0xff] %vm327_vm0, %v3938_v0  ;;  %353 = vst.msk [vmem:[#allocation3 + $0xc8] sm:$0xff] %vm327_vm0, %v3938_v0 }
  0x4c   : > { %354 = vst.msk [vmem:[#allocation3 + $0xd0] sm:$0xff] %vm327_vm0, %v3938_v0  ;;  %355 = vst.msk [vmem:[#allocation3 + $0xd8] sm:$0xff] %vm327_vm0, %v3938_v0 }
  0x4d   : > { %356 = vst.msk [vmem:[#allocation3 + $0xe0] sm:$0xff] %vm327_vm0, %v3938_v0  ;;  %357 = vst.msk [vmem:[#allocation3 + $0xe8] sm:$0xff] %vm327_vm0, %v3938_v0 }
  0x4e   : > { %358 = vst.msk [vmem:[#allocation3 + $0xf0] sm:$0xff] %vm327_vm0, %v3938_v0  ;;  %359 = vst.msk [vmem:[#allocation3 + $0xf8] sm:$0xff] %vm327_vm0, %v3938_v0 }
  0x4f   : > { %360 = vst.msk [vmem:[#allocation4] sm:$0xff] %vm327_vm0, %v3939_v1  ;;  %361 = vst.msk [vmem:[#allocation4 + $0x8] sm:$0xff] %vm327_vm0, %v3939_v1 }
  0x50   : > { %362 = vst.msk [vmem:[#allocation4 + $0x10] sm:$0xff] %vm327_vm0, %v3939_v1  ;;  %363 = vst.msk [vmem:[#allocation4 + $0x18] sm:$0xff] %vm327_vm0, %v3939_v1 }
  0x51   : > { %364 = vst.msk [vmem:[#allocation4 + $0x20] sm:$0xff] %vm327_vm0, %v3939_v1  ;;  %365 = vst.msk [vmem:[#allocation4 + $0x28] sm:$0xff] %vm327_vm0, %v3939_v1 }
  0x52   : > { %366 = vst.msk [vmem:[#allocation4 + $0x30] sm:$0xff] %vm327_vm0, %v3939_v1  ;;  %367 = vst.msk [vmem:[#allocation4 + $0x38] sm:$0xff] %vm327_vm0, %v3939_v1 }
  0x53   : > { %368 = vst.msk [vmem:[#allocation4 + $0x40] sm:$0xff] %vm327_vm0, %v3939_v1  ;;  %369 = vst.msk [vmem:[#allocation4 + $0x48] sm:$0xff] %vm327_vm0, %v3939_v1 }
  0x54   : > { %370 = vst.msk [vmem:[#allocation4 + $0x50] sm:$0xff] %vm327_vm0, %v3939_v1  ;;  %371 = vst.msk [vmem:[#allocation4 + $0x58] sm:$0xff] %vm327_vm0, %v3939_v1 }
  0x55   : > { %372 = vst.msk [vmem:[#allocation4 + $0x60] sm:$0xff] %vm327_vm0, %v3939_v1  ;;  %373 = vst.msk [vmem:[#allocation4 + $0x68] sm:$0xff] %vm327_vm0, %v3939_v1 }
  0x56   : > { %374 = vst.msk [vmem:[#allocation4 + $0x70] sm:$0xff] %vm327_vm0, %v3939_v1  ;;  %375 = vst.msk [vmem:[#allocation4 + $0x78] sm:$0xff] %vm327_vm0, %v3939_v1 }
  0x57   : > { %376 = vst.msk [vmem:[#allocation4 + $0x80] sm:$0xff] %vm327_vm0, %v3939_v1  ;;  %377 = vst.msk [vmem:[#allocation4 + $0x88] sm:$0xff] %vm327_vm0, %v3939_v1 }
  0x58   : > { %378 = vst.msk [vmem:[#allocation4 + $0x90] sm:$0xff] %vm327_vm0, %v3939_v1  ;;  %379 = vst.msk [vmem:[#allocation4 + $0x98] sm:$0xff] %vm327_vm0, %v3939_v1 }
  0x59   : > { %380 = vst.msk [vmem:[#allocation4 + $0xa0] sm:$0xff] %vm327_vm0, %v3939_v1  ;;  %381 = vst.msk [vmem:[#allocation4 + $0xa8] sm:$0xff] %vm327_vm0, %v3939_v1 }
  0x5a   : > { %382 = vst.msk [vmem:[#allocation4 + $0xb0] sm:$0xff] %vm327_vm0, %v3939_v1  ;;  %383 = vst.msk [vmem:[#allocation4 + $0xb8] sm:$0xff] %vm327_vm0, %v3939_v1 }
  0x5b   : > { %384 = vst.msk [vmem:[#allocation4 + $0xc0] sm:$0xff] %vm327_vm0, %v3939_v1  ;;  %385 = vst.msk [vmem:[#allocation4 + $0xc8] sm:$0xff] %vm327_vm0, %v3939_v1 }
  0x5c   : > { %386 = vst.msk [vmem:[#allocation4 + $0xd0] sm:$0xff] %vm327_vm0, %v3939_v1  ;;  %387 = vst.msk [vmem:[#allocation4 + $0xd8] sm:$0xff] %vm327_vm0, %v3939_v1 }
  0x5d   : > { %388 = vst.msk [vmem:[#allocation4 + $0xe0] sm:$0xff] %vm327_vm0, %v3939_v1  ;;  %389 = vst.msk [vmem:[#allocation4 + $0xe8] sm:$0xff] %vm327_vm0, %v3939_v1 }
  0x5e   : > { %390 = vst.msk [vmem:[#allocation4 + $0xf0] sm:$0xff] %vm327_vm0, %v3939_v1  ;;  %391 = vst.msk [vmem:[#allocation4 + $0xf8] sm:$0xff] %vm327_vm0, %v3939_v1 }
  0x5f   : > { %393 = vst.msk [vmem:[#allocation2] sm:$0xff] %vm392_vm1, %v3939_v1  ;;  %394 = vst.msk [vmem:[#allocation2 + $0x8] sm:$0xff] %vm392_vm1, %v3939_v1 }
  0x60   : > { %395 = vst.msk [vmem:[#allocation2 + $0x10] sm:$0xff] %vm392_vm1, %v3939_v1  ;;  %396 = vst.msk [vmem:[#allocation2 + $0x18] sm:$0xff] %vm392_vm1, %v3939_v1 }
  0x61   : > { %397 = vst.msk [vmem:[#allocation2 + $0x20] sm:$0xff] %vm392_vm1, %v3939_v1  ;;  %398 = vst.msk [vmem:[#allocation2 + $0x28] sm:$0xff] %vm392_vm1, %v3939_v1 }
  0x62   : > { %399 = vst.msk [vmem:[#allocation2 + $0x30] sm:$0xff] %vm392_vm1, %v3939_v1  ;;  %400 = vst.msk [vmem:[#allocation2 + $0x38] sm:$0xff] %vm392_vm1, %v3939_v1 }
  0x63   : > { %401 = vst.msk [vmem:[#allocation2 + $0x40] sm:$0xff] %vm392_vm1, %v3939_v1  ;;  %402 = vst.msk [vmem:[#allocation2 + $0x48] sm:$0xff] %vm392_vm1, %v3939_v1 }
  0x64   : > { %403 = vst.msk [vmem:[#allocation2 + $0x50] sm:$0xff] %vm392_vm1, %v3939_v1  ;;  %404 = vst.msk [vmem:[#allocation2 + $0x58] sm:$0xff] %vm392_vm1, %v3939_v1 }
  0x65   : > { %405 = vst.msk [vmem:[#allocation2 + $0x60] sm:$0xff] %vm392_vm1, %v3939_v1  ;;  %406 = vst.msk [vmem:[#allocation2 + $0x68] sm:$0xff] %vm392_vm1, %v3939_v1 }
  0x66   : > { %407 = vst.msk [vmem:[#allocation2 + $0x70] sm:$0xff] %vm392_vm1, %v3939_v1  ;;  %408 = vst.msk [vmem:[#allocation2 + $0x78] sm:$0xff] %vm392_vm1, %v3939_v1 }
  0x67   : > { %409 = vst.msk [vmem:[#allocation2 + $0x80] sm:$0xff] %vm392_vm1, %v3939_v1  ;;  %410 = vst.msk [vmem:[#allocation2 + $0x88] sm:$0xff] %vm392_vm1, %v3939_v1 }
  0x68   : > { %411 = vst.msk [vmem:[#allocation2 + $0x90] sm:$0xff] %vm392_vm1, %v3939_v1  ;;  %412 = vst.msk [vmem:[#allocation2 + $0x98] sm:$0xff] %vm392_vm1, %v3939_v1 }
  0x69   : > { %413 = vst.msk [vmem:[#allocation2 + $0xa0] sm:$0xff] %vm392_vm1, %v3939_v1  ;;  %414 = vst.msk [vmem:[#allocation2 + $0xa8] sm:$0xff] %vm392_vm1, %v3939_v1 }
  0x6a   : > { %415 = vst.msk [vmem:[#allocation2 + $0xb0] sm:$0xff] %vm392_vm1, %v3939_v1  ;;  %416 = vst.msk [vmem:[#allocation2 + $0xb8] sm:$0xff] %vm392_vm1, %v3939_v1 }
  0x6b   : > { %417 = vst.msk [vmem:[#allocation2 + $0xc0] sm:$0xff] %vm392_vm1, %v3939_v1  ;;  %418 = vst.msk [vmem:[#allocation2 + $0xc8] sm:$0xff] %vm392_vm1, %v3939_v1 }
  0x6c   : > { %419 = vst.msk [vmem:[#allocation2 + $0xd0] sm:$0xff] %vm392_vm1, %v3939_v1  ;;  %420 = vst.msk [vmem:[#allocation2 + $0xd8] sm:$0xff] %vm392_vm1, %v3939_v1 }
  0x6d   : > { %421 = vst.msk [vmem:[#allocation2 + $0xe0] sm:$0xff] %vm392_vm1, %v3939_v1  ;;  %422 = vst.msk [vmem:[#allocation2 + $0xe8] sm:$0xff] %vm392_vm1, %v3939_v1 }
  0x6e   : > { %423 = vst.msk [vmem:[#allocation2 + $0xf0] sm:$0xff] %vm392_vm1, %v3939_v1  ;;  %424 = vst.msk [vmem:[#allocation2 + $0xf8] sm:$0xff] %vm392_vm1, %v3939_v1 }
  0x6f PF: > { %v3564_v2 = vld [vmem:[%s4020_s0 + $0x78] sm:$0xff]   ;;  %vm681_vm2 = vcmask 130048   ;;  %v3566_v4 = vld [vmem:[%s4020_s0 + $0x70] sm:$0xff]   ;;  %v3568_v8 = vld [vmem:[%s4020_s0 + $0x68] sm:$0xff]   ;;  %v972_v42 = vlaneseq  ;;  %s3263_s11 = sshll.u32 %s4008_s12, 8  ;;  %s3264_s16 = sshll.u32 %s4010_s14, 8 }
  0x70   : > { %v3565_v3 = vld [vmem:[%s4020_s0 + $0x38] sm:$0xff]   ;;  %3508 = vmatprep.subr.msk.bf16.mxu0 %vm681_vm2, %v3564_v2  ;;  %v3567_v6 = vld [vmem:[%s4020_s0 + $0x30] sm:$0xff]   ;;  %v3569_v9 = vld [vmem:[%s4020_s0 + $0x28] sm:$0xff]   ;;  %v4277_v46 = vstv %s3263_s11  ;;  %p3281_p7 = scmp.ne.s32.totalorder %s4010_s14, %s4008_s12 }
  0x71   : > { %v752_v5 = vsel %vm681_vm2, %v3565_v3, 0  ;;  %v749_v7 = vsel %vm681_vm2, %v3567_v6, 0  ;;  %v3580_v10 = vld [vmem:[%s4015_s23] sm:$0xff]   ;;  %v746_v11 = vsel %vm681_vm2, %v3569_v9, 0  ;;  %v3573_v14 = vld [vmem:[%s4020_s0 + $0x18] sm:$0xff]   ;;  %v3575_v18 = vld [vmem:[%s4020_s0 + $0x10] sm:$0xff]   ;;  %v1042_v47 = vstv %s3264_s16 }
  0x72   : > { %3349 = vmatpush3.bf16.xpose.msra.mxu0 %v752_v5  ;;  %v3570_v12 = vld [vmem:[%s4020_s0 + $0x60] sm:$0xff]   ;;  %3364 = vmatprep.mubr.msk.bf16.mxu0 %vm681_vm2, %v3580_v10  ;;  %v3572_v16 = vld [vmem:[%s4020_s0 + $0x58] sm:$0xff]   ;;  %v740_v17 = vsel %vm681_vm2, %v3573_v14, 0  ;;  %v3574_v19 = vld [vmem:[%s4020_s0 + $0x50] sm:$0xff]   ;;  %v737_v20 = vsel %vm681_vm2, %v3575_v18, 0  ;;  %v1040_v43 = vand.u32 127, %v972_v42 }
  0x73   : > { %3509 = vmatprep.subr.msk.bf16.mxu0 %vm681_vm2, %v3566_v4  ;;  %v3571_v13 = vld [vmem:[%s4020_s0 + $0x20] sm:$0xff]   ;;  %v3576_v21 = vld [vmem:[%s4020_s0 + $0x48] sm:$0xff]   ;;  %v3582_v28 = vld [vmem:[%s4015_s23 + $0x10] sm:$0xff]   ;;  %v4275_v44 = vshrl.u32 %v972_v42, 7 }
  0x74   : > { %v743_v15 = vsel %vm681_vm2, %v3571_v13, 0  ;;  %v3577_v22 = vld [vmem:[%s4020_s0 + $0x8] sm:$0xff]   ;;  %v3578_v24 = vld [vmem:[%s4020_s0 + $0x40] sm:$0xff]   ;;  %v3583_v29 = vld [vmem:[%s4015_s23 + $0x18] sm:$0xff]   ;;  %v1041_v45 = vadd.s32 128, %v1040_v43  ;;  %v4282_v50 = vadd.s32 %v1042_v47, %v1040_v43 }
  0x75   : > { %v734_v23 = vsel %vm681_vm2, %v3577_v22, 0  ;;  %v3579_v25 = vld [vmem:[%s4020_s0] sm:$0xff]   ;;  %v3581_v27 = vld [vmem:[%s4015_s23 + $0x8] sm:$0xff]   ;;  %v3586_v32 = vld [vmem:[%s4015_s23 + $0x30] sm:$0xff]   ;;  %v974_v48 = vadd.s32 8, %v4275_v44  ;;  %v1006_v49 = vadd.s32 %v4277_v46, %v4275_v44  ;;  %v975_v54 = vadd.s32 16, %v4275_v44 }
  0x76   : > { %v731_v26 = vsel %vm681_vm2, %v3579_v25, 0  ;;  %v3584_v30 = vld [vmem:[%s4015_s23 + $0x20] sm:$0xff]   ;;  %v3585_v31 = vld [vmem:[%s4015_s23 + $0x28] sm:$0xff]   ;;  %v3587_v33 = vld [vmem:[%s4015_s23 + $0x38] sm:$0xff]   ;;  %v4284_v51 = vadd.s32 %v1042_v47, %v1041_v45  ;;  %v976_v61 = vadd.s32 24, %v4275_v44  ;;  %v977_v1 = vadd.s32 32, %v4275_v44 }
  0x77   : > { %v3588_v34 = vld [vmem:[%s4015_s23 + $0x40] sm:$0xff]   ;;  %v3589_v35 = vld [vmem:[%s4015_s23 + $0x48] sm:$0xff]   ;;  %v3590_v36 = vld [vmem:[%s4015_s23 + $0x50] sm:$0xff]   ;;  %v1007_v52 = vadd.s32 %v4277_v46, %v974_v48  ;;  %vm1045_vm3 = vcmp.le.s32.totalorder %v4282_v50, %v1006_v49  ;;  %v1008_v60 = vadd.s32 %v4277_v46, %v975_v54 }
  0x78   : > { %v3591_v37 = vld [vmem:[%s4015_s23 + $0x58] sm:$0xff]   ;;  %v3592_v38 = vld [vmem:[%s4015_s23 + $0x60] sm:$0xff]   ;;  %v3593_v39 = vld [vmem:[%s4015_s23 + $0x68] sm:$0xff]   ;;  %vm1046_vm4 = vcmp.le.s32.totalorder %v4284_v51, %v1006_v49  ;;  %v1009_v4 = vadd.s32 %v4277_v46, %v976_v61  ;;  %v983_v49 = vadd.s32 80, %v4275_v44 }
  0x79   : > { %v3594_v40 = vld [vmem:[%s4015_s23 + $0x70] sm:$0xff]   ;;  %v3595_v41 = vld [vmem:[%s4015_s23 + $0x78] sm:$0xff]   ;;  %vm1047_vm5 = vcmp.le.s32.totalorder %v4282_v50, %v1007_v52  ;;  %vm1048_vm6 = vcmp.le.s32.totalorder %v4284_v51, %v1007_v52  ;;  %vm1049_vm7 = vcmp.le.s32.totalorder %v4282_v50, %v1008_v60  ;;  %vm1050_vm8 = vcmp.le.s32.totalorder %v4284_v51, %v1008_v60 }
  0x7a   : > { %3351 = vmatpush3.bf16.xpose.msra.mxu0 %v749_v7  ;;  %vm1051_vm9 = vcmp.le.s32.totalorder %v4282_v50, %v1009_v4  ;;  %vm1052_vm10 = vcmp.le.s32.totalorder %v4284_v51, %v1009_v4  ;;  %v984_v60 = vadd.s32 88, %v4275_v44 }
  0x7b   : > { %3510 = vmatprep.subr.msk.bf16.mxu0 %vm681_vm2, %v3568_v8  ;;  %v1010_v8 = vadd.s32 %v4277_v46, %v977_v1 }
  0x7d   : > { %vm1053_vm11 = vcmp.le.s32.totalorder %v4282_v50, %v1010_v8  ;;  %vm1054_vm12 = vcmp.le.s32.totalorder %v4284_v51, %v1010_v8 }
  0x82   : > { %3353 = vmatpush3.bf16.xpose.msra.mxu0 %v746_v11  ;;  %v978_v11 = vadd.s32 40, %v4275_v44 }
  0x83   : > { %3511 = vmatprep.subr.msk.bf16.mxu0 %vm681_vm2, %v3570_v12 }
  0x84   : > { %v1011_v18 = vadd.s32 %v4277_v46, %v978_v11 }
  0x86   : > { %vm1055_vm13 = vcmp.le.s32.totalorder %v4282_v50, %v1011_v18  ;;  %vm1056_vm14 = vcmp.le.s32.totalorder %v4284_v51, %v1011_v18 }
  0x8a   : > { %3355 = vmatpush3.bf16.xpose.msra.mxu0 %v743_v15  ;;  %v979_v15 = vadd.s32 48, %v4275_v44 }
  0x8b   : > { %3512 = vmatprep.subr.msk.bf16.mxu0 %vm681_vm2, %v3572_v16 }
  0x92   : > { %3357 = vmatpush3.bf16.xpose.msra.mxu0 %v740_v17 }
  0x93   : > { %3513 = vmatprep.subr.msk.bf16.mxu0 %vm681_vm2, %v3574_v19  ;;  %v3940_v19 = vmov 0  }
  0x94   : > { %3562 = vset.pattern.permute.xlu0 %v3940_v19  ;;  %3563 = vset.pattern.permute.xlu1 %v3940_v19  ;;  %v987_v19 = vadd.s32 112, %v4275_v44 }
  0x9a   : > { %3359 = vmatpush3.bf16.xpose.msra.mxu0 %v737_v20 }
  0x9b   : > { %3514 = vmatprep.subr.msk.bf16.mxu0 %vm681_vm2, %v3576_v21 }
  0xa2   : > { %3361 = vmatpush3.bf16.xpose.msra.mxu0 %v734_v23  ;;  %v1012_v23 = vadd.s32 %v4277_v46, %v979_v15 }
  0xa3   : > { %3515 = vmatprep.subr.msk.bf16.mxu0 %vm681_vm2, %v3578_v24 }
  0xa4   : > { %vm1057_vm15 = vcmp.le.s32.totalorder %v4282_v50, %v1012_v23  ;;  %vm1058_vm0 = vcmp.le.s32.totalorder %v4284_v51, %v1012_v23 }
  0xaa   : > { %3363 = vmatpush3.bf16.xpose.msra.mxu0 %v731_v26  ;;  %v980_v26 = vadd.s32 56, %v4275_v44 }
  0xb1   : > { %3365 = vmatmul.mubr.msk.bf16.vlgmr.msra.gmra.mxu0 %vm681_vm2, %v3580_v10 }
  0xb2   : > { %3366 = vmatprep.mubr.msk.bf16.mxu0 %vm681_vm2, %v3581_v27 }
  0xb9   : > { %3367 = vmatmul.mubr.msk.bf16.gmra.mxu0 %vm681_vm2, %v3581_v27 }
  0xba   : > { %3368 = vmatprep.mubr.msk.bf16.mxu0 %vm681_vm2, %v3582_v28 }
  0xc1   : > { %3369 = vmatmul.mubr.msk.bf16.gmra.mxu0 %vm681_vm2, %v3582_v28 }
  0xc2   : > { %3370 = vmatprep.mubr.msk.bf16.mxu0 %vm681_vm2, %v3583_v29 }
  0xc9   : > { %3371 = vmatmul.mubr.msk.bf16.gmra.mxu0 %vm681_vm2, %v3583_v29 }
  0xca   : > { %3372 = vmatprep.mubr.msk.bf16.mxu0 %vm681_vm2, %v3584_v30 }
  0xd1   : > { %3373 = vmatmul.mubr.msk.bf16.gmra.mxu0 %vm681_vm2, %v3584_v30 }
  0xd2   : > { %3374 = vmatprep.mubr.msk.bf16.mxu0 %vm681_vm2, %v3585_v31 }
  0xd9   : > { %3375 = vmatmul.mubr.msk.bf16.gmra.mxu0 %vm681_vm2, %v3585_v31 }
  0xda   : > { %3376 = vmatprep.mubr.msk.bf16.mxu0 %vm681_vm2, %v3586_v32 }
  0xe1   : > { %3377 = vmatmul.mubr.msk.bf16.gmra.mxu0 %vm681_vm2, %v3586_v32  ;;  %v1013_v32 = vadd.s32 %v4277_v46, %v980_v26 }
  0xe2   : > { %3378 = vmatprep.mubr.msk.bf16.mxu0 %vm681_vm2, %v3587_v33 }
  0xe3   : > { %vm1059_vm1 = vcmp.le.s32.totalorder %v4282_v50, %v1013_v32 }
  0xe9   : > { %3379 = vmatmul.mubr.msk.bf16.gmra.mxu0 %vm681_vm2, %v3587_v33  ;;  %v981_v33 = vadd.s32 64, %v4275_v44 }
  0xea   : > { %3380 = vmatprep.mubr.msk.bf16.mxu0 %vm681_vm2, %v3588_v34 }
  0xf1   : > { %3381 = vmatmul.mubr.msk.bf16.gmra.mxu0 %vm681_vm2, %v3588_v34 }
  0xf2   : > { %3382 = vmatprep.mubr.msk.bf16.mxu0 %vm681_vm2, %v3589_v35 }
  0xf9   : > { %3383 = vmatmul.mubr.msk.bf16.gmra.mxu0 %vm681_vm2, %v3589_v35 }
  0xfa   : > { %3384 = vmatprep.mubr.msk.bf16.mxu0 %vm681_vm2, %v3590_v36 }
 0x101   : > { %3385 = vmatmul.mubr.msk.bf16.gmra.mxu0 %vm681_vm2, %v3590_v36 }
 0x102   : > { %3386 = vmatprep.mubr.msk.bf16.mxu0 %vm681_vm2, %v3591_v37 }
 0x109   : > { %3387 = vmatmul.mubr.msk.bf16.gmra.mxu0 %vm681_vm2, %v3591_v37  ;;  %v982_v37 = vadd.s32 72, %v4275_v44 }
 0x10a   : > { %3388 = vmatprep.mubr.msk.bf16.mxu0 %vm681_vm2, %v3592_v38 }
 0x10b   : > { %v1015_v45 = vadd.s32 %v4277_v46, %v982_v37 }
 0x111   : > { %3389 = vmatmul.mubr.msk.bf16.gmra.mxu0 %vm681_vm2, %v3592_v38 }
 0x112   : > { %3390 = vmatprep.mubr.msk.bf16.mxu0 %vm681_vm2, %v3593_v39 }
 0x119   : > { %3391 = vmatmul.mubr.msk.bf16.gmra.mxu0 %vm681_vm2, %v3593_v39 }
 0x11a   : > { %3392 = vmatprep.mubr.msk.bf16.mxu0 %vm681_vm2, %v3594_v40 }
 0x121   : > { %3393 = vmatmul.mubr.msk.bf16.gmra.mxu0 %vm681_vm2, %v3594_v40  ;;  %v1014_v40 = vadd.s32 %v4277_v46, %v981_v33 }
 0x122   : > { %3394 = vmatprep.mubr.msk.bf16.mxu0 %vm681_vm2, %v3595_v41 }
 0x129   : > { %3395 = vmatmul.mubr.msk.bf16.gmra.mxu0 %vm681_vm2, %v3595_v41 }
 0x171   : > { %v812_v53 = vpop.f32.mrf.mxu0 }
 0x172   : > { %v4290_v56 = vsel %vm1045_vm3, %v812_v53, -1e+30  ;;  %vm1060_vm3 = vcmp.le.s32.totalorder %v4284_v51, %v1013_v32 }
 0x173   : > { %v814_v55 = vpop.f32.mrf.mxu0 }
 0x174   : > { %v4292_v57 = vsel %vm1046_vm4, %v814_v55, -1e+30  ;;  %vm1061_vm4 = vcmp.le.s32.totalorder %v4282_v50, %v1014_v40 }
 0x175   : > { %v816_v58 = vpop.f32.mrf.mxu0  ;;  %v1205_v59 = vmax.f32 %v4290_v56, %v4292_v57 }
 0x176   : > { %v4300_v63 = vsel %vm1047_vm5, %v816_v58, -1e+30  ;;  %vm1062_vm5 = vcmp.le.s32.totalorder %v4284_v51, %v1014_v40  ;;  %v989_v40 = vadd.s32 128, %v4275_v44 }
 0x177   : > { %1206 = vmax.xlane.f32.xlu0 %v1205_v59  ;;  %v818_v62 = vpop.f32.mrf.mxu0  ;;  %v1016_v59 = vadd.s32 %v4277_v46, %v983_v49 }
 0x178   : > { %v4302_v0 = vsel %vm1048_vm6, %v818_v62, -1e+30  ;;  %vm1063_vm6 = vcmp.le.s32.totalorder %v4282_v50, %v1015_v45  ;;  %v985_v62 = vadd.s32 96, %v4275_v44 }
 0x179   : > { %v822_v2 = vpop.f32.mrf.mxu0  ;;  %v1208_v3 = vmax.f32 %v4300_v63, %v4302_v0 }
 0x17a   : > { %v4310_v6 = vsel %vm1049_vm7, %v822_v2, -1e+30  ;;  %vm1064_vm7 = vcmp.le.s32.totalorder %v4284_v51, %v1015_v45 }
 0x17b   : > { %1209 = vmax.xlane.f32.xlu0 %v1208_v3  ;;  %v824_v5 = vpop.f32.mrf.mxu0 }
 0x17c   : > { %v4312_v7 = vsel %vm1050_vm8, %v824_v5, -1e+30  ;;  %vm1065_vm8 = vcmp.le.s32.totalorder %v4282_v50, %v1016_v59  ;;  %v1017_v5 = vadd.s32 %v4277_v46, %v984_v60 }
 0x17d   : > { %v826_v9 = vpop.f32.mrf.mxu0  ;;  %v1211_v10 = vmax.f32 %v4310_v6, %v4312_v7 }
 0x17e   : > { %v4320_v13 = vsel %vm1051_vm9, %v826_v9, -1e+30  ;;  %vm1066_vm9 = vcmp.le.s32.totalorder %v4284_v51, %v1016_v59  ;;  %v1018_v9 = vadd.s32 %v4277_v46, %v985_v62 }
 0x17f   : > { %1212 = vmax.xlane.f32.xlu1 %v1211_v10  ;;  %v828_v12 = vpop.f32.mrf.mxu0  ;;  %v986_v10 = vadd.s32 104, %v4275_v44 }
 0x180   : > { %v4322_v14 = vsel %vm1052_vm10, %v828_v12, -1e+30  ;;  %vm1067_vm10 = vcmp.le.s32.totalorder %v4282_v50, %v1017_v5 }
 0x181   : > { %v832_v16 = vpop.f32.mrf.mxu0  ;;  %v1214_v17 = vmax.f32 %v4320_v13, %v4322_v14  ;;  %v1019_v18 = vadd.s32 %v4277_v46, %v986_v10 }
 0x182   : > { %v4330_v21 = vsel %vm1053_vm11, %v832_v16, -1e+30  ;;  %vm1068_vm11 = vcmp.le.s32.totalorder %v4284_v51, %v1017_v5 }
 0x183   : > { %1215 = vmax.xlane.f32.xlu1 %v1214_v17  ;;  %v834_v20 = vpop.f32.mrf.mxu0 }
 0x184   : > { %v4332_v22 = vsel %vm1054_vm12, %v834_v20, -1e+30  ;;  %vm1069_vm12 = vcmp.le.s32.totalorder %v4282_v50, %v1018_v9 }
 0x185   : > { %v836_v24 = vpop.f32.mrf.mxu0  ;;  %v1217_v25 = vmax.f32 %v4330_v21, %v4332_v22 }
 0x186   : > { %v4340_v28 = vsel %vm1055_vm13, %v836_v24, -1e+30  ;;  %vm1070_vm13 = vcmp.le.s32.totalorder %v4284_v51, %v1018_v9 }
 0x187   : > { %1218 = vmax.xlane.f32.xlu0 %v1217_v25  ;;  %v838_v27 = vpop.f32.mrf.mxu0 }
 0x188   : > { %v4342_v29 = vsel %vm1056_vm14, %v838_v27, -1e+30  ;;  %vm1071_vm14 = vcmp.le.s32.totalorder %v4282_v50, %v1019_v18 }
 0x189   : > { %v842_v30 = vpop.f32.mrf.mxu0  ;;  %v1220_v31 = vmax.f32 %v4340_v28, %v4342_v29 }
 0x18a   : > { %v4350_v35 = vsel %vm1057_vm15, %v842_v30, -1e+30  ;;  %v1020_v30 = vadd.s32 %v4277_v46, %v987_v19  ;;  %vm1072_vm15 = vcmp.le.s32.totalorder %v4284_v51, %v1019_v18 }
 0x18b   : > { %1221 = vmax.xlane.f32.xlu1 %v1220_v31  ;;  %v844_v34 = vpop.f32.mrf.mxu0  ;;  %v988_v31 = vadd.s32 120, %v4275_v44 }
 0x18c   : > { %v4352_v36 = vsel %vm1058_vm0, %v844_v34, -1e+30  ;;  %vm1073_vm0 = vcmp.le.s32.totalorder %v4282_v50, %v1020_v30 }
 0x18d   : > { %v846_v38 = vpop.f32.mrf.mxu0  ;;  %v1223_v39 = vmax.f32 %v4350_v35, %v4352_v36 }
 0x18e   : > { %v4360_v42 = vsel %vm1059_vm1, %v846_v38, -1e+30  ;;  %vm1074_vm1 = vcmp.le.s32.totalorder %v4284_v51, %v1020_v30 }
 0x18f   : > { %1224 = vmax.xlane.f32.xlu0 %v1223_v39  ;;  %v848_v41 = vpop.f32.mrf.mxu0  ;;  %v1021_v39 = vadd.s32 %v4277_v46, %v988_v31  ;;  %v993_v31 = vadd.s32 160, %v4275_v44 }
 0x190   : > { %v4362_v43 = vsel %vm1060_vm3, %v848_v41, -1e+30 }
 0x191   : > { %v852_v47 = vpop.f32.mrf.mxu0  ;;  %v1226_v48 = vmax.f32 %v4360_v42, %v4362_v43  ;;  %vm1075_vm3 = vcmp.le.s32.totalorder %v4282_v50, %v1021_v39 }
 0x192   : > { %v4370_v53 = vsel %vm1061_vm4, %v852_v47, -1e+30  ;;  %vm1076_vm4 = vcmp.le.s32.totalorder %v4284_v51, %v1021_v39 }
 0x193   : > { %1227 = vmax.xlane.f32.xlu1 %v1226_v48  ;;  %v854_v52 = vpop.f32.mrf.mxu0 }
 0x194   : > { %v4372_v54 = vsel %vm1062_vm5, %v854_v52, -1e+30  ;;  %v1022_v52 = vadd.s32 %v4277_v46, %v989_v40 }
 0x195   : > { %v856_v55 = vpop.f32.mrf.mxu0  ;;  %v1229_v58 = vmax.f32 %v4370_v53, %v4372_v54 }
 0x196   : > { %v4381_v1 = vsel %vm1063_vm6, %v856_v55, -1e+30  ;;  %v990_v55 = vadd.s32 136, %v4275_v44  ;;  %vm1077_vm5 = vcmp.le.s32.totalorder %v4282_v50, %v1022_v52  ;;  %vm1078_vm6 = vcmp.le.s32.totalorder %v4284_v51, %v1022_v52 }
 0x197   : > { %1230 = vmax.xlane.f32.xlu0 %v1229_v58  ;;  %v858_v61 = vpop.f32.mrf.mxu0 }
 0x198   : > { %v4383_v2 = vsel %vm1064_vm7, %v858_v61, -1e+30 }
 0x199   : > { %v862_v3 = vpop.f32.mrf.mxu0  ;;  %v1232_v4 = vmax.f32 %v4381_v1, %v4383_v2 }
 0x19a   : > { %v4392_v11 = vsel %vm1065_vm8, %v862_v3, -1e+30  ;;  %v1023_v3 = vadd.s32 %v4277_v46, %v990_v55 }
 0x19b   : > { %1233 = vmax.xlane.f32.xlu1 %v1232_v4  ;;  %v864_v8 = vpop.f32.mrf.mxu0  ;;  %v991_v4 = vadd.s32 144, %v4275_v44 }
 0x19c   : > { %v4394_v12 = vsel %vm1066_vm9, %v864_v8, -1e+30  ;;  %vm1079_vm7 = vcmp.le.s32.totalorder %v4282_v50, %v1023_v3  ;;  %vm1080_vm8 = vcmp.le.s32.totalorder %v4284_v51, %v1023_v3  ;;  %v995_v3 = vadd.s32 176, %v4275_v44 }
 0x19d   : > { %v866_v15 = vpop.f32.mrf.mxu0  ;;  %v1235_v16 = vmax.f32 %v4392_v11, %v4394_v12 }
 0x19e   : > { %v4403_v20 = vsel %vm1067_vm10, %v866_v15, -1e+30 }
 0x19f   : > { %1236 = vmax.xlane.f32.xlu0 %v1235_v16  ;;  %v868_v17 = vpop.f32.mrf.mxu0  ;;  %v1024_v16 = vadd.s32 %v4277_v46, %v991_v4 }
 0x1a0   : > { %v4405_v23 = vsel %vm1068_vm11, %v868_v17, -1e+30  ;;  %v992_v17 = vadd.s32 152, %v4275_v44 }
 0x1a1   : > { %v872_v24 = vpop.f32.mrf.mxu0  ;;  %v1238_v25 = vmax.f32 %v4403_v20, %v4405_v23  ;;  %vm1081_vm9 = vcmp.le.s32.totalorder %v4282_v50, %v1024_v16  ;;  %vm1082_vm10 = vcmp.le.s32.totalorder %v4284_v51, %v1024_v16 }
 0x1a2   : > { %v4410_v26 = vsel %vm1069_vm12, %v872_v24, -1e+30  ;;  %v1025_v30 = vadd.s32 %v4277_v46, %v992_v17  ;;  %v1028_v17 = vadd.s32 %v4277_v46, %v995_v3  ;;  %v998_v3 = vadd.s32 200, %v4275_v44 }
 0x1a3   : > { %5634 = vst [vmem:[#allocation9_spill] sm:$0xff] %v4410_v26  ;;  %1239 = vmax.xlane.f32.xlu1 %v1238_v25  ;;  %v874_v27 = vpop.f32.mrf.mxu0 }
 0x1a4   : > { %v4415_v32 = vsel %vm1070_vm13, %v874_v27, -1e+30  ;;  %vm1083_vm11 = vcmp.le.s32.totalorder %v4282_v50, %v1025_v30  ;;  %vm1084_vm12 = vcmp.le.s32.totalorder %v4284_v51, %v1025_v30 }
 0x1a5   : > { %5635 = vst [vmem:[#allocation10_spill] sm:$0xff] %v4415_v32  ;;  %v876_v33 = vpop.f32.mrf.mxu0  ;;  %v1241_v34 = vmax.f32 %v4410_v26, %v4415_v32  ;;  %v4734_v32 = vld [vmem:[#allocation3 + $0x70] sm:$0xff] }
 0x1a6   : > { %v4420_v37 = vsel %vm1071_vm14, %v876_v33, -1e+30  ;;  %5678 = vst [vmem:[#allocation53_spill] sm:$0xff] %v4734_v32 }
 0x1a7   : > { %5636 = vst [vmem:[#allocation11_spill] sm:$0xff] %v4420_v37  ;;  %v878_v38 = vpop.f32.mrf.mxu0  ;;  %1242 = vmax.xlane.f32.xlu0 %v1241_v34 }
 0x1a8   : > { %v4425_v41 = vsel %vm1072_vm15, %v878_v38, -1e+30 }
 0x1a9   : > { %5637 = vst [vmem:[#allocation12_spill] sm:$0xff] %v4425_v41  ;;  %v882_v45 = vpop.f32.mrf.mxu0  ;;  %v1244_v47 = vmax.f32 %v4420_v37, %v4425_v41 }
 0x1aa   : > { %v4430_v48 = vsel %vm1073_vm0, %v882_v45, -1e+30  ;;  %v1026_v45 = vadd.s32 %v4277_v46, %v993_v31 }
 0x1ab   : > { %5638 = vst [vmem:[#allocation13_spill] sm:$0xff] %v4430_v48  ;;  %v884_v49 = vpop.f32.mrf.mxu0  ;;  %1245 = vmax.xlane.f32.xlu1 %v1244_v47  ;;  %v994_v47 = vadd.s32 168, %v4275_v44 }
 0x1ac   : > { %v4435_v58 = vsel %vm1074_vm1, %v884_v49, -1e+30  ;;  %vm1085_vm13 = vcmp.le.s32.totalorder %v4282_v50, %v1026_v45  ;;  %vm1086_vm14 = vcmp.le.s32.totalorder %v4284_v51, %v1026_v45  ;;  %vm1089_vm1 = vcmp.le.s32.totalorder %v4282_v50, %v1028_v17 }
 0x1ad   : > { %5639 = vst [vmem:[#allocation14_spill] sm:$0xff] %v4435_v58  ;;  %v886_v59 = vpop.f32.mrf.mxu0  ;;  %v1247_v60 = vmax.f32 %v4430_v48, %v4435_v58  ;;  %v4724_v58 = vld [vmem:[#allocation3 + $0x68] sm:$0xff] }
 0x1ae   : > { %v4440_v61 = vsel %vm1075_vm3, %v886_v59, -1e+30  ;;  %vm1090_vm3 = vcmp.le.s32.totalorder %v4284_v51, %v1028_v17  ;;  %5677 = vst [vmem:[#allocation52_spill] sm:$0xff] %v4724_v58 }
 0x1af   : > { %5640 = vst [vmem:[#allocation15_spill] sm:$0xff] %v4440_v61  ;;  %v888_v62 = vpop.f32.mrf.mxu0  ;;  %1248 = vmax.xlane.f32.xlu0 %v1247_v60 }
 0x1b0   : > { %v4445_v5 = vsel %vm1076_vm4, %v888_v62, -1e+30  ;;  %v1027_v62 = vadd.s32 %v4277_v46, %v994_v47 }
 0x1b1   : > { %5641 = vst [vmem:[#allocation16_spill] sm:$0xff] %v4445_v5  ;;  %v892_v8 = vpop.f32.mrf.mxu0  ;;  %v1250_v9 = vmax.f32 %v4440_v61, %v4445_v5  ;;  %v4714_v61 = vld [vmem:[#allocation3 + $0x60] sm:$0xff] }
 0x1b2   : > { %v4450_v10 = vsel %vm1077_vm5, %v892_v8, -1e+30  ;;  %vm1087_vm15 = vcmp.le.s32.totalorder %v4282_v50, %v1027_v62  ;;  %vm1088_vm0 = vcmp.le.s32.totalorder %v4284_v51, %v1027_v62  ;;  %5676 = vst [vmem:[#allocation51_spill] sm:$0xff] %v4714_v61 }
 0x1b3   : > { %5642 = vst [vmem:[#allocation17_spill] sm:$0xff] %v4450_v10  ;;  %v894_v15 = vpop.f32.mrf.mxu0  ;;  %1251 = vmax.xlane.f32.xlu1 %v1250_v9 }
 0x1b4   : > { %v4455_v18 = vsel %vm1078_vm6, %v894_v15, -1e+30 }
 0x1b5   : > { %5643 = vst [vmem:[#allocation18_spill] sm:$0xff] %v4455_v18  ;;  %v896_v19 = vpop.f32.mrf.mxu0  ;;  %v1253_v24 = vmax.f32 %v4450_v10, %v4455_v18 }
 0x1b6   : > { %v4460_v25 = vsel %vm1079_vm7, %v896_v19, -1e+30  ;;  %v996_v19 = vadd.s32 184, %v4275_v44 }
 0x1b7   : > { %5644 = vst [vmem:[#allocation19_spill] sm:$0xff] %v4460_v25  ;;  %v898_v27 = vpop.f32.mrf.mxu0  ;;  %1254 = vmax.xlane.f32.xlu0 %v1253_v24 }
 0x1b8   : > { %v4465_v33 = vsel %vm1080_vm8, %v898_v27, -1e+30 }
 0x1b9   : > { %5645 = vst [vmem:[#allocation20_spill] sm:$0xff] %v4465_v33  ;;  %v902_v34 = vpop.f32.mrf.mxu0  ;;  %v1256_v38 = vmax.f32 %v4460_v25, %v4465_v33  ;;  %v4694_v25 = vld [vmem:[#allocation3 + $0x50] sm:$0xff] }
 0x1ba   : > { %v4470_v39 = vsel %vm1081_vm9, %v902_v34, -1e+30  ;;  %5672 = vst [vmem:[#allocation47_spill] sm:$0xff] %v4694_v25 }
 0x1bb   : > { %5646 = vst [vmem:[#allocation21_spill] sm:$0xff] %v4470_v39  ;;  %v904_v40 = vpop.f32.mrf.mxu0  ;;  %1257 = vmax.xlane.f32.xlu1 %v1256_v38  ;;  %v1029_v38 = vadd.s32 %v4277_v46, %v996_v19 }
 0x1bc   : > { %v4475_v49 = vsel %vm1082_vm10, %v904_v40, -1e+30  ;;  %v997_v40 = vadd.s32 192, %v4275_v44 }
 0x1bd   : > { %5647 = vst [vmem:[#allocation22_spill] sm:$0xff] %v4475_v49  ;;  %v906_v52 = vpop.f32.mrf.mxu0  ;;  %v1259_v55 = vmax.f32 %v4470_v39, %v4475_v49  ;;  %vm1091_vm4 = vcmp.le.s32.totalorder %v4282_v50, %v1029_v38  ;;  %vm1092_vm5 = vcmp.le.s32.totalorder %v4284_v51, %v1029_v38  ;;  %v4664_v39 = vld [vmem:[#allocation3 + $0x38] sm:$0xff] }
 0x1be   : > { %v4480_v59 = vsel %vm1083_vm11, %v906_v52, -1e+30  ;;  %v1030_v62 = vadd.s32 %v4277_v46, %v997_v40 }
 0x1bf   : > { %5648 = vst [vmem:[#allocation23_spill] sm:$0xff] %v4480_v59  ;;  %v908_v60 = vpop.f32.mrf.mxu0  ;;  %1260 = vmax.xlane.f32.xlu0 %v1259_v55 }
 0x1c0   : > { %v4485_v4 = vsel %vm1084_vm12, %v908_v60, -1e+30  ;;  %vm1093_vm6 = vcmp.le.s32.totalorder %v4282_v50, %v1030_v62  ;;  %vm1094_vm7 = vcmp.le.s32.totalorder %v4284_v51, %v1030_v62 }
 0x1c1   : > { %5649 = vst [vmem:[#allocation24_spill] sm:$0xff] %v4485_v4  ;;  %v912_v8 = vpop.f32.mrf.mxu0  ;;  %v1262_v9 = vmax.f32 %v4480_v59, %v4485_v4  ;;  %v3609_v59 = vld [vmem:[%s4025_s13 + $0x8] sm:$0xff]  }
 0x1c2   : > { %v4490_v15 = vsel %vm1085_vm13, %v912_v8, -1e+30 }
 0x1c3   : > { %5650 = vst [vmem:[#allocation25_spill] sm:$0xff] %v4490_v15  ;;  %v914_v16 = vpop.f32.mrf.mxu0  ;;  %1263 = vmax.xlane.f32.xlu1 %v1262_v9 }
 0x1c4   : > { %v4495_v24 = vsel %vm1086_vm14, %v914_v16, -1e+30 }
 0x1c5   : > { %5651 = vst [vmem:[#allocation26_spill] sm:$0xff] %v4495_v24  ;;  %v916_v27 = vpop.f32.mrf.mxu0  ;;  %v1265_v30 = vmax.f32 %v4490_v15, %v4495_v24  ;;  %v3599_v15 = vld [vmem:[%s4025_s13 + $0x30] sm:$0xff]  }
 0x1c6   : > { %v4500_v31 = vsel %vm1087_vm15, %v916_v27, -1e+30  ;;  %v1031_v27 = vadd.s32 %v4277_v46, %v998_v3  ;;  %v1000_v3 = vadd.s32 216, %v4275_v44 }
 0x1c7   : > { %5652 = vst [vmem:[#allocation27_spill] sm:$0xff] %v4500_v31  ;;  %v918_v34 = vpop.f32.mrf.mxu0  ;;  %1266 = vmax.xlane.f32.xlu1 %v1265_v30  ;;  %v999_v30 = vadd.s32 208, %v4275_v44 }
 0x1c8   : > { %v4505_v45 = vsel %vm1088_vm0, %v918_v34, -1e+30  ;;  %vm1095_vm8 = vcmp.le.s32.totalorder %v4282_v50, %v1031_v27  ;;  %vm1096_vm9 = vcmp.le.s32.totalorder %v4284_v51, %v1031_v27 }
 0x1c9   : > { %5653 = vst [vmem:[#allocation28_spill] sm:$0xff] %v4505_v45  ;;  %v922_v47 = vpop.f32.mrf.mxu0  ;;  %v1268_v52 = vmax.f32 %v4500_v31, %v4505_v45  ;;  %v4704_v31 = vld [vmem:[#allocation3 + $0x58] sm:$0xff] }
 0x1ca   : > { %v4510_v55 = vsel %vm1089_vm1, %v922_v47, -1e+30  ;;  %5674 = vst [vmem:[#allocation49_spill] sm:$0xff] %v4704_v31 }
 0x1cb   : > { %5654 = vst [vmem:[#allocation29_spill] sm:$0xff] %v4510_v55  ;;  %v924_v60 = vpop.f32.mrf.mxu0  ;;  %1269 = vmax.xlane.f32.xlu0 %v1268_v52 }
 0x1cc   : > { %v4515_v8 = vsel %vm1090_vm3, %v924_v60, -1e+30  ;;  %v1032_v60 = vadd.s32 %v4277_v46, %v999_v30  ;;  %v1001_v30 = vadd.s32 224, %v4275_v44  ;;  %vm1973_vm3 = vcmask 7168  }
 0x1cd   : > { %5655 = vst [vmem:[#allocation30_spill] sm:$0xff] %v4515_v8  ;;  %v926_v9 = vpop.f32.mrf.mxu0  ;;  %v1271_v16 = vmax.f32 %v4510_v55, %v4515_v8  ;;  %v1033_v8 = vadd.s32 %v4277_v46, %v1000_v3  ;;  %v1002_v3 = vadd.s32 232, %v4275_v44 }
 0x1ce   : > { %v4520_v17 = vsel %vm1091_vm4, %v926_v9, -1e+30  ;;  %vm1097_vm10 = vcmp.le.s32.totalorder %v4282_v50, %v1032_v60  ;;  %vm1098_vm11 = vcmp.le.s32.totalorder %v4284_v51, %v1032_v60 }
 0x1cf   : > { %5656 = vst [vmem:[#allocation31_spill] sm:$0xff] %v4520_v17  ;;  %v928_v19 = vpop.f32.mrf.mxu0  ;;  %1272 = vmax.xlane.f32.xlu1 %v1271_v16  ;;  %vm1099_vm12 = vcmp.le.s32.totalorder %v4282_v50, %v1033_v8  ;;  %vm1100_vm13 = vcmp.le.s32.totalorder %v4284_v51, %v1033_v8  ;;  %v1035_v24 = vadd.s32 %v4277_v46, %v1002_v3 }
 0x1d0   : > { %v4525_v34 = vsel %vm1092_vm5, %v928_v19, -1e+30 }
 0x1d1   : > { %5657 = vst [vmem:[#allocation32_spill] sm:$0xff] %v4525_v34  ;;  %v932_v40 = vpop.f32.mrf.mxu0  ;;  %v1274_v38 = vmax.f32 %v4520_v17, %v4525_v34  ;;  %vm1103_vm0 = vcmp.le.s32.totalorder %v4282_v50, %v1035_v24  ;;  %vm1104_vm1 = vcmp.le.s32.totalorder %v4284_v51, %v1035_v24  ;;  %v3598_v24 = vld [vmem:[%s4025_s13 + $0x70] sm:$0xff]   ;;  %v4684_v17 = vld [vmem:[#allocation3 + $0x48] sm:$0xff] }
 0x1d2   : > { %v4530_v47 = vsel %vm1093_vm6, %v932_v40, -1e+30  ;;  %5670 = vst [vmem:[#allocation45_spill] sm:$0xff] %v4684_v17 }
 0x1d3   : > { %5658 = vst [vmem:[#allocation33_spill] sm:$0xff] %v4530_v47  ;;  %v934_v52 = vpop.f32.mrf.mxu0  ;;  %1275 = vmax.xlane.f32.xlu0 %v1274_v38 }
 0x1d4   : > { %v4535_v9 = vsel %vm1094_vm7, %v934_v52, -1e+30 }
 0x1d5   : > { %5659 = vst [vmem:[#allocation34_spill] sm:$0xff] %v4535_v9  ;;  %v936_v16 = vpop.f32.mrf.mxu0  ;;  %v1277_v62 = vmax.f32 %v4530_v47, %v4535_v9  ;;  %v1034_v9 = vadd.s32 %v4277_v46, %v1001_v30 }
 0x1d6   : > { %v4540_v19 = vsel %vm1095_vm8, %v936_v16, -1e+30 }
 0x1d7   : > { %5660 = vst [vmem:[#allocation35_spill] sm:$0xff] %v4540_v19  ;;  %v938_v40 = vpop.f32.mrf.mxu0  ;;  %1278 = vmax.xlane.f32.xlu0 %v1277_v62  ;;  %vm1101_vm14 = vcmp.le.s32.totalorder %v4282_v50, %v1034_v9  ;;  %vm1102_vm15 = vcmp.le.s32.totalorder %v4284_v51, %v1034_v9 }
 0x1d8   : > { %v4545_v55 = vsel %vm1096_vm9, %v938_v40, -1e+30 }
 0x1d9   : > { %5661 = vst [vmem:[#allocation36_spill] sm:$0xff] %v4545_v55  ;;  %v942_v38 = vpop.f32.mrf.mxu0  ;;  %v1280_v27 = vmax.f32 %v4540_v19, %v4545_v55  ;;  %v3611_v19 = vld [vmem:[%s4025_s13] sm:$0xff]  }
 0x1da   : > { %v4550_v52 = vsel %vm1097_vm10, %v942_v38, -1e+30 }
 0x1db   : > { %5662 = vst [vmem:[#allocation37_spill] sm:$0xff] %v4550_v52  ;;  %v944_v16 = vpop.f32.mrf.mxu0  ;;  %1281 = vmax.xlane.f32.xlu1 %v1280_v27 }
 0x1dc   : > { %v4555_v47 = vsel %vm1098_vm11, %v944_v16, -1e+30 }
 0x1dd   : > { %5663 = vst [vmem:[#allocation38_spill] sm:$0xff] %v4555_v47  ;;  %v946_v62 = vpop.f32.mrf.mxu0  ;;  %v1283_v60 = vmax.f32 %v4550_v52, %v4555_v47  ;;  %v3597_v52 = vld [vmem:[%s4025_s13 + $0x38] sm:$0xff]  }
 0x1de   : > { %v4560_v40 = vsel %vm1099_vm12, %v946_v62, -1e+30 }
 0x1df   : > { %5664 = vst [vmem:[#allocation39_spill] sm:$0xff] %v4560_v40  ;;  %v948_v38 = vpop.f32.mrf.mxu0  ;;  %1284 = vmax.xlane.f32.xlu1 %v1283_v60 }
 0x1e0   : > { %v4564_v30 = vsel %vm1100_vm13, %v948_v38, -1e+30 }
 0x1e1   : > { %5665 = vst [vmem:[#allocation40_spill] sm:$0xff] %v4564_v30  ;;  %v952_v27 = vpop.f32.mrf.mxu0  ;;  %v1286_v8 = vmax.f32 %v4560_v40, %v4564_v30  ;;  %v3607_v40 = vld [vmem:[%s4025_s13 + $0x10] sm:$0xff]  }
 0x1e2   : > { %v4569_v16 = vsel %vm1101_vm14, %v952_v27, -1e+30 }
 0x1e3   : > { %5666 = vst [vmem:[#allocation41_spill] sm:$0xff] %v4569_v16  ;;  %v954_v62 = vpop.f32.mrf.mxu0  ;;  %1287 = vmax.xlane.f32.xlu0 %v1286_v8 }
 0x1e4   : > { %v4572_v3 = vsel %vm1102_vm15, %v954_v62, -1e+30  ;;  %v3596_v62 = vld [vmem:[%s4025_s13 + $0x78] sm:$0xff]  }
 0x1e5   : > { %5667 = vst [vmem:[#allocation42_spill] sm:$0xff] %v4572_v3  ;;  %v956_v60 = vpop.f32.mrf.mxu0  ;;  %v1289_v9 = vmax.f32 %v4569_v16, %v4572_v3  ;;  %3396 = vmatprep.subr.bf16.mxu1 %v3596_v62  ;;  %v3601_v3 = vld [vmem:[%s4025_s13 + $0x28] sm:$0xff]  }
 0x1e6   : > { %v4577_v38 = vsel %vm1103_vm0, %v956_v60, -1e+30  ;;  %3397 = vmatpush3.bf16.msra.mxu1 %v3597_v52  ;;  %v4587_v60 = vld [vmem:[#allocation3] sm:$0xff]  ;;  %v3604_v52 = vld [vmem:[%s4025_s13 + $0x58] sm:$0xff]  }
 0x1e7   : > { %5668 = vst [vmem:[#allocation43_spill] sm:$0xff] %v4577_v38  ;;  %v958_v47 = vpop.f32.mrf.mxu0  ;;  %1290 = vmax.xlane.f32.xlu0 %v1289_v9  ;;  %3398 = vmatprep.subr.bf16.mxu1 %v3598_v24  ;;  %v3600_v9 = vld [vmem:[%s4025_s13 + $0x68] sm:$0xff]   ;;  %v3603_v24 = vld [vmem:[%s4025_s13 + $0x20] sm:$0xff]  }
 0x1e8   : > { %v4579_v27 = vsel %vm1104_vm1, %v958_v47, -1e+30 }
 0x1e9   : > { %5669 = vst [vmem:[#allocation44_spill] sm:$0xff] %v4579_v27  ;;  %v1292_v8 = vmax.f32 %v4577_v38, %v4579_v27  ;;  %v3605_v38 = vld [vmem:[%s4025_s13 + $0x18] sm:$0xff]  }
 0x1ea   : > { %3399 = vmatpush3.bf16.msra.mxu1 %v3599_v15  ;;  %v3602_v15 = vld [vmem:[%s4025_s13 + $0x60] sm:$0xff]  }
 0x1eb   : > { %1293 = vmax.xlane.f32.xlu1 %v1292_v8  ;;  %3400 = vmatprep.subr.bf16.mxu1 %v3600_v9  ;;  %v4594_v8 = vld [vmem:[#allocation3 + $0x8] sm:$0xff]  ;;  %v4606_v9 = vld [vmem:[#allocation3 + $0x10] sm:$0xff] }
 0x1ee   : > { %3401 = vmatpush3.bf16.msra.mxu1 %v3601_v3  ;;  %v3606_v3 = vld [vmem:[%s4025_s13 + $0x50] sm:$0xff]  }
 0x1ef   : > { %3402 = vmatprep.subr.bf16.mxu1 %v3602_v15  ;;  %v4618_v15 = vld [vmem:[#allocation3 + $0x18] sm:$0xff] }
 0x1f2   : > { %3403 = vmatpush3.bf16.msra.mxu1 %v3603_v24  ;;  %v3608_v24 = vld [vmem:[%s4025_s13 + $0x48] sm:$0xff]  }
 0x1f3   : > { %3404 = vmatprep.subr.bf16.mxu1 %v3604_v52  ;;  %v4630_v52 = vld [vmem:[#allocation3 + $0x20] sm:$0xff] }
 0x1f6   : > { %3405 = vmatpush3.bf16.msra.mxu1 %v3605_v38  ;;  %v3610_v38 = vld [vmem:[%s4025_s13 + $0x40] sm:$0xff]  }
 0x1f7   : > { %3406 = vmatprep.subr.bf16.mxu1 %v3606_v3  ;;  %v4642_v3 = vld [vmem:[#allocation3 + $0x28] sm:$0xff] }
 0x1fa   : > { %3407 = vmatpush3.bf16.msra.mxu1 %v3607_v40 }
 0x1fb   : > { %3408 = vmatprep.subr.bf16.mxu1 %v3608_v24 }
 0x1fe   : > { %3409 = vmatpush3.bf16.msra.mxu1 %v3609_v59  ;;  %v4674_v59 = vld [vmem:[#allocation3 + $0x40] sm:$0xff] }
 0x1ff   : > { %3410 = vmatprep.subr.bf16.mxu1 %v3610_v38 }
 0x200   : > { %v1207_v47 = vpop.xlane.xlu0 %1206 }
 0x201   : > { %v4592_v16 = vmax.f32 %v4587_v60, %v1207_v47 }
 0x202   : > { %3411 = vmatpush3.bf16.msra.mxu1 %v3611_v19 }
 0x203   : > { %2583 = vst.msk [vmem:[#allocation3] sm:$0xff] %vm1973_vm3, %v4592_v16  ;;  %1431 = vperm.xlu0 %3562, %v4592_v16  }
 0x204   : > { %v1210_v62 = vpop.xlane.xlu0 %1209 }
 0x205   : > { %v4604_v47 = vmax.f32 %v4594_v8, %v1210_v62 }
 0x207   : > { %2584 = vst.msk [vmem:[#allocation3 + $0x8] sm:$0xff] %vm1973_vm3, %v4604_v47  ;;  %1436 = vperm.xlu1 %3563, %v4604_v47  }
 0x208   : > { %v1213_v27 = vpop.xlane.xlu1 %1212 }
 0x209   : > { %v4616_v62 = vmax.f32 %v4606_v9, %v1213_v27 }
 0x20b   : > { %2585 = vst.msk [vmem:[#allocation3 + $0x10] sm:$0xff] %vm1973_vm3, %v4616_v62  ;;  %1441 = vperm.xlu1 %3563, %v4616_v62  }
 0x20c   : > { %v1216_v30 = vpop.xlane.xlu1 %1215 }
 0x20d   : > { %v4628_v27 = vmax.f32 %v4618_v15, %v1216_v30 }
 0x20f   : > { %2586 = vst.msk [vmem:[#allocation3 + $0x18] sm:$0xff] %vm1973_vm3, %v4628_v27  ;;  %1446 = vperm.xlu1 %3563, %v4628_v27  }
 0x210   : > { %v1219_v4 = vpop.xlane.xlu0 %1218 }
 0x211   : > { %v4640_v30 = vmax.f32 %v4630_v52, %v1219_v4  ;;  %v4654_v4 = vld [vmem:[#allocation3 + $0x30] sm:$0xff] }
 0x213   : > { %2587 = vst.msk [vmem:[#allocation3 + $0x20] sm:$0xff] %vm1973_vm3, %v4640_v30  ;;  %1451 = vperm.xlu0 %3562, %v4640_v30  }
 0x214   : > { %v1222_v55 = vpop.xlane.xlu1 %1221 }
 0x215   : > { %v4652_v49 = vmax.f32 %v4642_v3, %v1222_v55 }
 0x217   : > { %2588 = vst.msk [vmem:[#allocation3 + $0x28] sm:$0xff] %vm1973_vm3, %v4652_v49  ;;  %1456 = vperm.xlu0 %3562, %v4652_v49  }
 0x218   : > { %v1225_v24 = vpop.xlane.xlu0 %1224 }
 0x219   : > { %v4662_v40 = vmax.f32 %v4654_v4, %v1225_v24 }
 0x21b   : > { %2589 = vst.msk [vmem:[#allocation3 + $0x30] sm:$0xff] %vm1973_vm3, %v4662_v40  ;;  %1461 = vperm.xlu1 %3563, %v4662_v40  }
 0x21c   : > { %v1228_v19 = vpop.xlane.xlu1 %1227 }
 0x21d   : > { %v4672_v38 = vmax.f32 %v4664_v39, %v1228_v19 }
 0x21f   : > { %2590 = vst.msk [vmem:[#allocation3 + $0x38] sm:$0xff] %vm1973_vm3, %v4672_v38  ;;  %1466 = vperm.xlu1 %3563, %v4672_v38  }
 0x220   : > { %v1231_v55 = vpop.xlane.xlu0 %1230 }
 0x221   : > { %v4682_v34 = vmax.f32 %v4674_v59, %v1231_v55 }
 0x223   : > { %2591 = vst.msk [vmem:[#allocation3 + $0x40] sm:$0xff] %vm1973_vm3, %v4682_v34  ;;  %1471 = vperm.xlu0 %3562, %v4682_v34  }
 0x224   : > { %v1234_v24 = vpop.xlane.xlu1 %1233 }
 0x225   : > { %v4692_v33 = vmax.f32 %v4684_v17, %v1234_v24  ;;  %v962_v24 = vpop.f32.mrf.mxu0 }
 0x227   : > { %5671 = vst [vmem:[#allocation46_spill] sm:$0xff] %v4692_v33  ;;  %2592 = vst.msk [vmem:[#allocation3 + $0x48] sm:$0xff] %vm1973_vm3, %v4692_v33  ;;  %1476 = vperm.xlu0 %3562, %v4692_v33   ;;  %v964_v48 = vpop.f32.mrf.mxu0 }
 0x228   : > { %v1237_v19 = vpop.xlane.xlu0 %1236 }
 0x229   : > { %v4702_v45 = vmax.f32 %v4694_v25, %v1237_v19  ;;  %v1004_v19 = vadd.s32 248, %v4275_v44  ;;  %v966_v26 = vpop.f32.mrf.mxu0 }
 0x22b   : > { %5673 = vst [vmem:[#allocation48_spill] sm:$0xff] %v4702_v45  ;;  %2593 = vst.msk [vmem:[#allocation3 + $0x50] sm:$0xff] %vm1973_vm3, %v4702_v45  ;;  %1481 = vperm.xlu1 %3563, %v4702_v45   ;;  %v4755_v45 = vld [vmem:[#allocation3 + $0x80] sm:$0xff] }
 0x22c   : > { %v1240_v55 = vpop.xlane.xlu1 %1239 }
 0x22d   : > { %v4712_v5 = vmax.f32 %v4704_v31, %v1240_v55  ;;  %v1037_v55 = vadd.s32 %v4277_v46, %v1004_v19  ;;  %v4744_v31 = vld [vmem:[#allocation3 + $0x78] sm:$0xff] }
 0x22e   : > { %5679 = vst [vmem:[#allocation54_spill] sm:$0xff] %v4744_v31 }
 0x22f   : > { %5675 = vst [vmem:[#allocation50_spill] sm:$0xff] %v4712_v5  ;;  %2594 = vst.msk [vmem:[#allocation3 + $0x58] sm:$0xff] %vm1973_vm3, %v4712_v5  ;;  %1486 = vperm.xlu1 %3563, %v4712_v5   ;;  %vm1107_vm4 = vcmp.le.s32.totalorder %v4282_v50, %v1037_v55  ;;  %vm1108_vm5 = vcmp.le.s32.totalorder %v4284_v51, %v1037_v55  ;;  %v4770_v55 = vld [vmem:[#allocation3 + $0x88] sm:$0xff] }
 0x230   : > { %v1243_v18 = vpop.xlane.xlu0 %1242  ;;  %5682 = vst [vmem:[#allocation57_spill] sm:$0xff] %v4770_v55 }
 0x231   : > { %v4722_v10 = vmax.f32 %v4714_v61, %v1243_v18  ;;  %v968_v18 = vpop.f32.mrf.mxu0 }
 0x232   : > { %v4759_v25 = vsel %vm1108_vm5, %v968_v18, -1e+30 }
 0x233   : > { %2595 = vst.msk [vmem:[#allocation3 + $0x60] sm:$0xff] %vm1973_vm3, %v4722_v10  ;;  %5681 = vst [vmem:[#allocation56_spill] sm:$0xff] %v4759_v25 }
 0x234   : > { %v1246_v41 = vpop.xlane.xlu1 %1245 }
 0x235   : > { %v4732_v37 = vmax.f32 %v4724_v58, %v1246_v41 }
 0x237   : > { %2596 = vst.msk [vmem:[#allocation3 + $0x68] sm:$0xff] %vm1973_vm3, %v4732_v37 }
 0x238   : > { %v1249_v61 = vpop.xlane.xlu0 %1248 }
 0x239   : > { %v4742_v5 = vmax.f32 %v4734_v32, %v1249_v61  ;;  %v4757_v61 = vsel %vm1107_vm4, %v966_v26, -1e+30  ;;  %v1003_v26 = vadd.s32 240, %v4275_v44 }
 0x23a   : > { %5680 = vst [vmem:[#allocation55_spill] sm:$0xff] %v4757_v61 }
 0x23b   : > { %2597 = vst.msk [vmem:[#allocation3 + $0x70] sm:$0xff] %vm1973_vm3, %v4742_v5  ;;  %v1036_v17 = vadd.s32 %v4277_v46, %v1003_v26 }
 0x23c   : > { %v1252_v58 = vpop.xlane.xlu1 %1251 }
 0x23d   : > { %v4753_v19 = vmax.f32 %v4744_v31, %v1252_v58  ;;  %v1298_v58 = vmax.f32 %v4757_v61, %v4759_v25  ;;  %v4790_v61 = vld [vmem:[#allocation3 + $0x98] sm:$0xff]  ;;  %vm1105_vm6 = vcmp.le.s32.totalorder %v4282_v50, %v1036_v17  ;;  %vm1106_vm7 = vcmp.le.s32.totalorder %v4284_v51, %v1036_v17  ;;  %v4805_v25 = vld [vmem:[#allocation3 + $0xa0] sm:$0xff] }
 0x23e   : > { %5684 = vst [vmem:[#allocation59_spill] sm:$0xff] %v4790_v61  ;;  %v4801_v26 = vsel %vm1105_vm6, %v962_v24, -1e+30  ;;  %5688 = vst [vmem:[#allocation63_spill] sm:$0xff] %v4805_v25 }
 0x23f   : > { %2598 = vst.msk [vmem:[#allocation3 + $0x78] sm:$0xff] %vm1973_vm3, %v4753_v19  ;;  %5686 = vst [vmem:[#allocation61_spill] sm:$0xff] %v4801_v26 }
 0x240   : > { %v1255_v32 = vpop.xlane.xlu0 %1254 }
 0x241   : > { %v4766_v33 = vmax.f32 %v4755_v45, %v1255_v32  ;;  %v4780_v32 = vld [vmem:[#allocation3 + $0x90] sm:$0xff] }
 0x242   : > { %5683 = vst [vmem:[#allocation58_spill] sm:$0xff] %v4780_v32 }
 0x243   : > { %2599 = vst.msk [vmem:[#allocation3 + $0x80] sm:$0xff] %vm1973_vm3, %v4766_v33 }
 0x244   : > { %v1258_v41 = vpop.xlane.xlu1 %1257 }
 0x245   : > { %v4778_v31 = vmax.f32 %v4770_v55, %v1258_v41  ;;  %v4876_v55 = vld [vmem:[#allocation3 + $0xd8] sm:$0xff] }
 0x246   : > { %1299 = vmax.xlane.f32.xlu0 %v1298_v58  ;;  %5700 = vst [vmem:[#allocation75_spill] sm:$0xff] %v4876_v55 }
 0x247   : > { %2600 = vst.msk [vmem:[#allocation3 + $0x88] sm:$0xff] %vm1973_vm3, %v4778_v31 }
 0x248   : > { %v1261_v44 = vpop.xlane.xlu0 %1260 }
 0x249   : > { %v4788_v18 = vmax.f32 %v4780_v32, %v1261_v44  ;;  %v4803_v44 = vsel %vm1106_vm7, %v964_v48, -1e+30  ;;  %v4834_v48 = vld [vmem:[#allocation3 + $0xb8] sm:$0xff]  ;;  %v4865_v32 = vld [vmem:[#allocation3 + $0xd0] sm:$0xff] }
 0x24a   : > { %5687 = vst [vmem:[#allocation62_spill] sm:$0xff] %v4803_v44  ;;  %v1295_v17 = vmax.f32 %v4801_v26, %v4803_v44  ;;  %5694 = vst [vmem:[#allocation69_spill] sm:$0xff] %v4834_v48 }
 0x24b   : > { %2601 = vst.msk [vmem:[#allocation3 + $0x90] sm:$0xff] %vm1973_vm3, %v4788_v18  ;;  %5699 = vst [vmem:[#allocation74_spill] sm:$0xff] %v4865_v32 }
 0x24c   : > { %v1264_v46 = vpop.xlane.xlu1 %1263 }
 0x24d   : > { %v4799_v58 = vmax.f32 %v4790_v61, %v1264_v46  ;;  %v4816_v46 = vld [vmem:[#allocation3 + $0xa8] sm:$0xff]  ;;  %v4825_v61 = vld [vmem:[#allocation3 + $0xb0] sm:$0xff] }
 0x24e   : > { %5690 = vst [vmem:[#allocation65_spill] sm:$0xff] %v4816_v46  ;;  %5692 = vst [vmem:[#allocation67_spill] sm:$0xff] %v4825_v61 }
 0x24f   : > { %5685 = vst [vmem:[#allocation60_spill] sm:$0xff] %v4799_v58  ;;  %2602 = vst.msk [vmem:[#allocation3 + $0x98] sm:$0xff] %vm1973_vm3, %v4799_v58 }
 0x250   : > { %v1267_v51 = vpop.xlane.xlu1 %1266 }
 0x251   : > { %v4814_v41 = vmax.f32 %v4805_v25, %v1267_v51  ;;  %v4854_v25 = vld [vmem:[#allocation3 + $0xc8] sm:$0xff] }
 0x252   : > { %5697 = vst [vmem:[#allocation72_spill] sm:$0xff] %v4854_v25 }
 0x253   : > { %5689 = vst [vmem:[#allocation64_spill] sm:$0xff] %v4814_v41  ;;  %1296 = vmax.xlane.f32.xlu1 %v1295_v17  ;;  %2603 = vst.msk [vmem:[#allocation3 + $0xa0] sm:$0xff] %vm1973_vm3, %v4814_v41 }
 0x254   : > { %v1270_v24 = vpop.xlane.xlu0 %1269 }
 0x255   : > { %v4823_v50 = vmax.f32 %v4816_v46, %v1270_v24  ;;  %v4844_v46 = vld [vmem:[#allocation3 + $0xc0] sm:$0xff] }
 0x256   : > { %5696 = vst [vmem:[#allocation71_spill] sm:$0xff] %v4844_v46 }
 0x257   : > { %5691 = vst [vmem:[#allocation66_spill] sm:$0xff] %v4823_v50  ;;  %2604 = vst.msk [vmem:[#allocation3 + $0xa8] sm:$0xff] %vm1973_vm3, %v4823_v50 }
 0x258   : > { %v1273_v51 = vpop.xlane.xlu1 %1272 }
 0x259   : > { %v4832_v17 = vmax.f32 %v4825_v61, %v1273_v51 }
 0x25b   : > { %5693 = vst [vmem:[#allocation68_spill] sm:$0xff] %v4832_v17  ;;  %2605 = vst.msk [vmem:[#allocation3 + $0xb0] sm:$0xff] %vm1973_vm3, %v4832_v17 }
 0x25c   : > { %1491 = vperm.xlu0 %3562, %v4722_v10   ;;  %v1276_v24 = vpop.xlane.xlu0 %1275 }
 0x25d   : > { %v4842_v44 = vmax.f32 %v4834_v48, %v1276_v24 }
 0x25f   : > { %5695 = vst [vmem:[#allocation70_spill] sm:$0xff] %v4842_v44  ;;  %2606 = vst.msk [vmem:[#allocation3 + $0xb8] sm:$0xff] %vm1973_vm3, %v4842_v44 }
 0x260   : > { %1496 = vperm.xlu0 %3562, %v4732_v37   ;;  %v1279_v26 = vpop.xlane.xlu0 %1278 }
 0x261   : > { %v4852_v61 = vmax.f32 %v4844_v46, %v1279_v26 }
 0x263   : > { %2607 = vst.msk [vmem:[#allocation3 + $0xc0] sm:$0xff] %vm1973_vm3, %v4852_v61 }
 0x264   : > { %1511 = vperm.xlu1 %3563, %v4766_v33   ;;  %1501 = vperm.xlu0 %3562, %v4742_v5   ;;  %v1282_v51 = vpop.xlane.xlu1 %1281 }
 0x265   : > { %v4863_v48 = vmax.f32 %v4854_v25, %v1282_v51 }
 0x267   : > { %5698 = vst [vmem:[#allocation73_spill] sm:$0xff] %v4863_v48  ;;  %2608 = vst.msk [vmem:[#allocation3 + $0xc8] sm:$0xff] %vm1973_vm3, %v4863_v48 }
 0x268   : > { %1536 = vperm.xlu1 %3563, %v4823_v50   ;;  %1506 = vperm.xlu0 %3562, %v4753_v19   ;;  %v1285_v24 = vpop.xlane.xlu1 %1284  ;;  %v4887_v50 = vld [vmem:[#allocation3 + $0xe0] sm:$0xff] }
 0x269   : > { %v4874_v46 = vmax.f32 %v4865_v32, %v1285_v24  ;;  %5702 = vst [vmem:[#allocation77_spill] sm:$0xff] %v4887_v50 }
 0x26b   : > { %2609 = vst.msk [vmem:[#allocation3 + $0xd0] sm:$0xff] %vm1973_vm3, %v4874_v46 }
 0x26c   : > { %1546 = vperm.xlu1 %3563, %v4842_v44   ;;  %1516 = vperm.xlu0 %3562, %v4778_v31   ;;  %v1288_v26 = vpop.xlane.xlu0 %1287  ;;  %v4898_v44 = vld [vmem:[#allocation3 + $0xe8] sm:$0xff] }
 0x26d   : > { %v4885_v25 = vmax.f32 %v4876_v55, %v1288_v26  ;;  %5703 = vst [vmem:[#allocation78_spill] sm:$0xff] %v4898_v44 }
 0x26f   : > { %5701 = vst [vmem:[#allocation76_spill] sm:$0xff] %v4885_v25  ;;  %2610 = vst.msk [vmem:[#allocation3 + $0xd8] sm:$0xff] %vm1973_vm3, %v4885_v25 }
 0x270   : > { %1556 = vperm.xlu1 %3563, %v4863_v48   ;;  %1521 = vperm.xlu0 %3562, %v4788_v18   ;;  %v1291_v51 = vpop.xlane.xlu0 %1290 }
 0x271   : > { %v4896_v32 = vmax.f32 %v4887_v50, %v1291_v51 }
 0x273   : > { %2611 = vst.msk [vmem:[#allocation3 + $0xe0] sm:$0xff] %vm1973_vm3, %v4896_v32 }
 0x274   : > { %1566 = vperm.xlu1 %3563, %v4885_v25   ;;  %1526 = vperm.xlu0 %3562, %v4799_v58   ;;  %v1294_v24 = vpop.xlane.xlu1 %1293 }
 0x275   : > { %v4907_v55 = vmax.f32 %v4898_v44, %v1294_v24 }
 0x277   : > { %5704 = vst [vmem:[#allocation79_spill] sm:$0xff] %v4907_v55  ;;  %2612 = vst.msk [vmem:[#allocation3 + $0xe8] sm:$0xff] %vm1973_vm3, %v4907_v55 }
 0x278   : > { %1576 = vperm.xlu1 %3563, %v4907_v55   ;;  %1531 = vperm.xlu0 %3562, %v4814_v41  }
 0x27c   : > { %1541 = vperm.xlu0 %3562, %v4832_v17  }
 0x27e   : > { %v1432_v26 = vpop.permute.xlu0 %1431 }
 0x27f   : > { %v1589_v50 = vsub.f32 %v4290_v56, %v1432_v26  ;;  %v1590_v25 = vsub.f32 %v4292_v57, %v1432_v26 }
 0x280   : > { %1551 = vperm.xlu0 %3562, %v4852_v61  }
 0x281   : > { %v1653_v24 = vmul.f32 1.442695, %v1589_v50  ;;  %v1655_v48 = vmul.f32 1.442695, %v1590_v25 }
 0x282   : > { %v1437_v58 = vpop.permute.xlu1 %1436 }
 0x283   : > { %3612 = vpow2.f32 %v1653_v24  ;;  %v1591_v51 = vsub.f32 %v4300_v63, %v1437_v58  ;;  %v1592_v44 = vsub.f32 %v4302_v0, %v1437_v58 }
 0x284   : > { %3614 = vpow2.f32 %v1655_v48  ;;  %1561 = vperm.xlu0 %3562, %v4874_v46  }
 0x285   : > { %v1657_v55 = vmul.f32 1.442695, %v1591_v51  ;;  %v1659_v17 = vmul.f32 1.442695, %v1592_v44 }
 0x286   : > { %v1442_v41 = vpop.permute.xlu1 %1441 }
 0x287   : > { %3616 = vpow2.f32 %v1657_v55  ;;  %v1593_v56 = vsub.f32 %v4310_v6, %v1442_v41  ;;  %v1594_v57 = vsub.f32 %v4312_v7, %v1442_v41 }
 0x288   : > { %3618 = vpow2.f32 %v1659_v17  ;;  %1571 = vperm.xlu0 %3562, %v4896_v32  }
 0x289   : > { %v1661_v25 = vmul.f32 1.442695, %v1593_v56  ;;  %v1663_v50 = vmul.f32 1.442695, %v1594_v57 }
 0x28a   : > { %v1447_v26 = vpop.permute.xlu1 %1446 }
 0x28b   : > { %3620 = vpow2.f32 %v1661_v25  ;;  %v1595_v63 = vsub.f32 %v4320_v13, %v1447_v26  ;;  %v1596_v0 = vsub.f32 %v4322_v14, %v1447_v26 }
 0x28c   : > { %3622 = vpow2.f32 %v1663_v50 }
 0x28d   : > { %v1665_v58 = vmul.f32 1.442695, %v1595_v63  ;;  %v1667_v44 = vmul.f32 1.442695, %v1596_v0 }
 0x28e   : > { %v1452_v48 = vpop.permute.xlu0 %1451 }
 0x28f   : > { %3624 = vpow2.f32 %v1665_v58  ;;  %v1597_v6 = vsub.f32 %v4330_v21, %v1452_v48  ;;  %v1598_v7 = vsub.f32 %v4332_v22, %v1452_v48 }
 0x290   : > { %v3613_v55 = vpop.eup %3612  ;;  %3626 = vpow2.f32 %v1667_v44 }
 0x291   : > { %v3615_v41 = vpop.eup %3614  ;;  %v1669_v17 = vmul.f32 1.442695, %v1597_v6  ;;  %v1671_v51 = vmul.f32 1.442695, %v1598_v7 }
 0x292   : > { %v1457_v24 = vpop.permute.xlu0 %1456  ;;  %v4929_v56 = vadd.f32 %v3615_v41, %v3613_v55 }
 0x293   : > { %3628 = vpow2.f32 %v1669_v17  ;;  %v1599_v13 = vsub.f32 %v4340_v28, %v1457_v24  ;;  %v1600_v14 = vsub.f32 %v4342_v29, %v1457_v24 }
 0x294   : > { %v3617_v57 = vpop.eup %3616  ;;  %3630 = vpow2.f32 %v1671_v51 }
 0x295   : > { %v3619_v25 = vpop.eup %3618  ;;  %v1673_v50 = vmul.f32 1.442695, %v1599_v13  ;;  %v1675_v21 = vmul.f32 1.442695, %v1600_v14  ;;  %v2230_v26 = vpack.c.bf16 %v3617_v57, %v3613_v55 }
 0x296   : > { %v1462_v22 = vpop.permute.xlu1 %1461  ;;  %v2231_v63 = vpack.c.bf16 %v3619_v25, %v3615_v41  ;;  %v4933_v0 = vadd.f32 %v3619_v25, %v3617_v57 }
 0x297   : > { %3632 = vpow2.f32 %v1673_v50  ;;  %v1601_v58 = vsub.f32 %v4350_v35, %v1462_v22  ;;  %v1602_v44 = vsub.f32 %v4352_v36, %v1462_v22 }
 0x298   : > { %v3621_v48 = vpop.eup %3620  ;;  %3634 = vpow2.f32 %v1675_v21  ;;  %2390 = vmatprep.mubr.bf16.mxu1 %v2231_v63 }
 0x299   : > { %v3623_v28 = vpop.eup %3622  ;;  %v1677_v29 = vmul.f32 1.442695, %v1601_v58  ;;  %v1679_v6 = vmul.f32 1.442695, %v1602_v44  ;;  %2391 = vmatmul.mubr.bf16.vlgmr.msra.gmra.mxu1 %v2230_v26 }
 0x29a   : > { %v1467_v7 = vpop.permute.xlu1 %1466  ;;  %v4937_v17 = vadd.f32 %v3623_v28, %v3621_v48 }
 0x29b   : > { %3636 = vpow2.f32 %v1677_v29  ;;  %v1603_v55 = vsub.f32 %v4360_v42, %v1467_v7  ;;  %v1604_v41 = vsub.f32 %v4362_v43, %v1467_v7 }
 0x29c   : > { %v3625_v51 = vpop.eup %3624  ;;  %3638 = vpow2.f32 %v1679_v6 }
 0x29d   : > { %v3627_v35 = vpop.eup %3626  ;;  %v1681_v24 = vmul.f32 1.442695, %v1603_v55  ;;  %v1683_v36 = vmul.f32 1.442695, %v1604_v41  ;;  %v2232_v13 = vpack.c.bf16 %v3625_v51, %v3621_v48 }
 0x29e   : > { %v1472_v14 = vpop.permute.xlu0 %1471  ;;  %v2233_v57 = vpack.c.bf16 %v3627_v35, %v3623_v28  ;;  %v4941_v25 = vadd.f32 %v3627_v35, %v3625_v51 }
 0x29f   : > { %3640 = vpow2.f32 %v1681_v24  ;;  %v1605_v50 = vsub.f32 %v4370_v53, %v1472_v14  ;;  %v1606_v21 = vsub.f32 %v4372_v54, %v1472_v14 }
 0x2a0   : > { %v3629_v26 = vpop.eup %3628  ;;  %3642 = vpow2.f32 %v1683_v36  ;;  %2398 = vmatprep.mubr.bf16.mxu1 %v2233_v57 }
 0x2a1   : > { %v3631_v42 = vpop.eup %3630  ;;  %v1685_v43 = vmul.f32 1.442695, %v1605_v50  ;;  %v1687_v22 = vmul.f32 1.442695, %v1606_v21  ;;  %2399 = vmatmul.mubr.bf16.gmra.mxu1 %v2232_v13 }
 0x2a2   : > { %v1477_v63 = vpop.permute.xlu0 %1476  ;;  %v4945_v58 = vadd.f32 %v3631_v42, %v3629_v26 }
 0x2a3   : > { %3644 = vpow2.f32 %v1685_v43  ;;  %v1607_v44 = vsub.f32 %v4381_v1, %v1477_v63  ;;  %v1608_v48 = vsub.f32 %v4383_v2, %v1477_v63 }
 0x2a4   : > { %v3633_v28 = vpop.eup %3632  ;;  %3646 = vpow2.f32 %v1687_v22 }
 0x2a5   : > { %v3635_v53 = vpop.eup %3634  ;;  %v1689_v29 = vmul.f32 1.442695, %v1607_v44  ;;  %v1691_v54 = vmul.f32 1.442695, %v1608_v48  ;;  %v2234_v6 = vpack.c.bf16 %v3633_v28, %v3629_v26 }
 0x2a6   : > { %v1482_v7 = vpop.permute.xlu1 %1481  ;;  %v2235_v55 = vpack.c.bf16 %v3635_v53, %v3631_v42  ;;  %v4949_v41 = vadd.f32 %v3635_v53, %v3633_v28 }
 0x2a7   : > { %3648 = vpow2.f32 %v1689_v29  ;;  %v1609_v51 = vsub.f32 %v4392_v11, %v1482_v7  ;;  %v1610_v35 = vsub.f32 %v4394_v12, %v1482_v7 }
 0x2a8   : > { %v3637_v24 = vpop.eup %3636  ;;  %3650 = vpow2.f32 %v1691_v54  ;;  %2406 = vmatprep.mubr.bf16.mxu1 %v2235_v55 }
 0x2a9   : > { %v3639_v1 = vpop.eup %3638  ;;  %v1693_v2 = vmul.f32 1.442695, %v1609_v51  ;;  %v1695_v36 = vmul.f32 1.442695, %v1610_v35  ;;  %2407 = vmatmul.mubr.bf16.gmra.mxu1 %v2234_v6 }
 0x2aa   : > { %v1487_v13 = vpop.permute.xlu1 %1486  ;;  %v4953_v14 = vadd.f32 %v3639_v1, %v3637_v24 }
 0x2ab   : > { %3652 = vpow2.f32 %v1693_v2  ;;  %v1611_v57 = vsub.f32 %v4403_v20, %v1487_v13  ;;  %v1612_v50 = vsub.f32 %v4405_v23, %v1487_v13  ;;  %v5705_v2 = vsub.f32 %v4587_v60, %v4592_v16 }
 0x2ac   : > { %v3641_v21 = vpop.eup %3640  ;;  %3654 = vpow2.f32 %v1695_v36  ;;  %v5706_v13 = vsub.f32 %v4594_v8, %v4604_v47  ;;  %v5710_v16 = vsub.f32 %v4642_v3, %v4652_v49  ;;  %v5711_v8 = vsub.f32 %v4654_v4, %v4662_v40 }
 0x2ad   : > { %v3643_v11 = vpop.eup %3642  ;;  %v1697_v26 = vmul.f32 1.442695, %v1611_v57  ;;  %v1699_v12 = vmul.f32 1.442695, %v1612_v50  ;;  %v2236_v42 = vpack.c.bf16 %v3641_v21, %v3637_v24  ;;  %v1365_v36 = vmul.f32 1.442695, %v5705_v2 }
 0x2ae   : > { %v2237_v43 = vpack.c.bf16 %v3643_v11, %v3639_v1  ;;  %v4957_v22 = vadd.f32 %v3643_v11, %v3641_v21  ;;  %v1367_v57 = vmul.f32 1.442695, %v5706_v13  ;;  %v5707_v50 = vsub.f32 %v4606_v9, %v4616_v62 }
 0x2af   : > { %3656 = vpow2.f32 %v1697_v26  ;;  %v5708_v11 = vsub.f32 %v4618_v15, %v4628_v27  ;;  %v1375_v60 = vmul.f32 1.442695, %v5710_v16  ;;  %v1377_v47 = vmul.f32 1.442695, %v5711_v8  ;;  %v5736_v8 = vld [vmem:[#allocation59_spill] sm:$0xff] }
 0x2b0   : > { %v3645_v63 = vpop.eup %3644  ;;  %3658 = vpow2.f32 %v1699_v12  ;;  %2414 = vmatprep.mubr.bf16.mxu1 %v2237_v43  ;;  %v1369_v21 = vmul.f32 1.442695, %v5707_v50  ;;  %v5709_v12 = vsub.f32 %v4630_v52, %v4640_v30  ;;  %v5712_v9 = vsub.f32 %v4664_v39, %v4672_v38  ;;  %v5714_v52 = vld [vmem:[#allocation45_spill] sm:$0xff]  ;;  %v5715_v30 = vld [vmem:[#allocation46_spill] sm:$0xff]  ;;  %v5717_v43 = vld [vmem:[#allocation47_spill] sm:$0xff] }
 0x2b1   : > { %v3647_v44 = vpop.eup %3646  ;;  %2415 = vmatmul.mubr.bf16.gmra.mxu1 %v2236_v42  ;;  %v1371_v26 = vmul.f32 1.442695, %v5708_v11  ;;  %3660 = vpow2.f32 %v1365_v36  ;;  %v5713_v15 = vsub.f32 %v4674_v59, %v4682_v34  ;;  %v5716_v49 = vsub.f32 %v5714_v52, %v5715_v30  ;;  %v5720_v39 = vld [vmem:[#allocation49_spill] sm:$0xff]  ;;  %v5721_v38 = vld [vmem:[#allocation50_spill] sm:$0xff]  ;;  %v5723_v34 = vld [vmem:[#allocation51_spill] sm:$0xff] }
 0x2b2   : > { %v4959_v48 = vadd.f32 %v3647_v44, %v3645_v63  ;;  %v1373_v42 = vmul.f32 1.442695, %v5709_v12  ;;  %3662 = vpow2.f32 %v1367_v57  ;;  %v1379_v62 = vmul.f32 1.442695, %v5712_v9  ;;  %v5729_v36 = vld [vmem:[#allocation54_spill] sm:$0xff] }
 0x2b3   : > { %3664 = vpow2.f32 %v1369_v21  ;;  %v1381_v27 = vmul.f32 1.442695, %v5713_v15  ;;  %v1383_v3 = vmul.f32 1.442695, %v5716_v49  ;;  %v5724_v59 = vsub.f32 %v5723_v34, %v4722_v10  ;;  %v5732_v21 = vld [vmem:[#allocation57_spill] sm:$0xff]  ;;  %v5734_v12 = vld [vmem:[#allocation58_spill] sm:$0xff] }
 0x2b4   : > { %v3649_v20 = vpop.eup %3648  ;;  %3666 = vpow2.f32 %v1371_v26  ;;  %v5730_v13 = vsub.f32 %v5729_v36, %v4753_v19  ;;  %v5733_v19 = vsub.f32 %v5732_v21, %v4778_v31  ;;  %v5740_v31 = vld [vmem:[#allocation63_spill] sm:$0xff] }
 0x2b5   : > { %v3651_v28 = vpop.eup %3650  ;;  %v2238_v23 = vpack.c.bf16 %v3649_v20, %v3645_v63  ;;  %3668 = vpow2.f32 %v1373_v42  ;;  %v5718_v63 = vld [vmem:[#allocation48_spill] sm:$0xff]  ;;  %v5735_v42 = vsub.f32 %v5734_v12, %v4788_v18  ;;  %v5743_v18 = vld [vmem:[#allocation9_spill] sm:$0xff]  ;;  %v5759_v12 = vld [vmem:[#allocation70_spill] sm:$0xff] }
 0x2b6   : > { %v2239_v53 = vpack.c.bf16 %v3651_v28, %v3647_v44  ;;  %v4961_v29 = vadd.f32 %v3651_v28, %v3649_v20  ;;  %3670 = vpow2.f32 %v1375_v60  ;;  %v5719_v40 = vsub.f32 %v5717_v43, %v5718_v63  ;;  %v5000_v44 = vld [vmem:[#allocation3 + $0xf8] sm:$0xff] }
 0x2b7   : > { %3672 = vpow2.f32 %v1377_v47  ;;  %v5722_v20 = vsub.f32 %v5720_v39, %v5721_v38  ;;  %v1395_v10 = vmul.f32 1.442695, %v5730_v13  ;;  %v1399_v11 = vmul.f32 1.442695, %v5733_v19  ;;  %v5755_v13 = vld [vmem:[#allocation12_spill] sm:$0xff] }
 0x2b8   : > { %v3653_v54 = vpop.eup %3652  ;;  %2422 = vmatprep.mubr.bf16.mxu1 %v2239_v53  ;;  %v1385_v4 = vmul.f32 1.442695, %v5719_v40  ;;  %3674 = vpow2.f32 %v1379_v62  ;;  %v1401_v16 = vmul.f32 1.442695, %v5735_v42  ;;  %v5741_v62 = vld [vmem:[#allocation64_spill] sm:$0xff]  ;;  %v5746_v40 = vld [vmem:[#allocation65_spill] sm:$0xff] }
 0x2b9   : > { %v3655_v6 = vpop.eup %3654  ;;  %2423 = vmatmul.mubr.bf16.gmra.mxu1 %v2238_v23  ;;  %v1387_v28 = vmul.f32 1.442695, %v5722_v20  ;;  %3676 = vpow2.f32 %v1381_v27  ;;  %v1389_v23 = vmul.f32 1.442695, %v5724_v59  ;;  %v5742_v15 = vsub.f32 %v5740_v31, %v5741_v62  ;;  %v5061_v59 = vld [vmem:[#allocation3 + $0xf0] sm:$0xff]  ;;  %v5763_v31 = vld [vmem:[#allocation73_spill] sm:$0xff] }
 0x2ba   : > { %v4963_v7 = vadd.f32 %v3655_v6, %v3653_v54  ;;  %3678 = vpow2.f32 %v1383_v3  ;;  %v5744_v3 = vld [vmem:[#allocation10_spill] sm:$0xff] }
 0x2bb   : > { %3680 = vpow2.f32 %v1385_v4  ;;  %v1405_v27 = vmul.f32 1.442695, %v5742_v15  ;;  %v5747_v4 = vld [vmem:[#allocation66_spill] sm:$0xff] }
 0x2bc   : > { %v3657_v55 = vpop.eup %3656  ;;  %3682 = vpow2.f32 %v1387_v28  ;;  %v5748_v39 = vsub.f32 %v5746_v40, %v5747_v4 }
 0x2bd   : > { %v3659_v51 = vpop.eup %3658  ;;  %v2240_v35 = vpack.c.bf16 %v3657_v55, %v3653_v54  ;;  %v5725_v54 = vld [vmem:[#allocation52_spill] sm:$0xff]  ;;  %3684 = vpow2.f32 %v1389_v23 }
 0x2be   : > { %v2241_v24 = vpack.c.bf16 %v3659_v51, %v3655_v6  ;;  %v4965_v1 = vadd.f32 %v3659_v51, %v3657_v55  ;;  %v5726_v6 = vsub.f32 %v5725_v54, %v4732_v37  ;;  %v5731_v37 = vsub.f32 %v4755_v45, %v4766_v33  ;;  %v5737_v33 = vld [vmem:[#allocation60_spill] sm:$0xff] }
 0x2bf   : > { %v5738_v45 = vsub.f32 %v5736_v8, %v5737_v33  ;;  %v1407_v38 = vmul.f32 1.442695, %v5748_v39  ;;  %v5751_v54 = vld [vmem:[#allocation68_spill] sm:$0xff] }
 0x2c0   : > { %2430 = vmatprep.mubr.bf16.mxu1 %v2241_v24  ;;  %v1391_v55 = vmul.f32 1.442695, %v5726_v6  ;;  %v1397_v50 = vmul.f32 1.442695, %v5731_v37 }
 0x2c1   : > { %2431 = vmatmul.mubr.bf16.gmra.mxu1 %v2240_v35  ;;  %v5727_v35 = vld [vmem:[#allocation53_spill] sm:$0xff]  ;;  %v1403_v47 = vmul.f32 1.442695, %v5738_v45 }
 0x2c2   : > { %v5728_v24 = vsub.f32 %v5727_v35, %v4742_v5  ;;  %v5028_v5 = vpop.eup %3660  ;;  %3686 = vpow2.f32 %v1391_v55 }
 0x2c3   : > { %v5033_v26 = vpop.eup %3662 }
 0x2c4   : > { %v1393_v2 = vmul.f32 1.442695, %v5728_v24  ;;  %v5038_v60 = vpop.eup %3664 }
 0x2c5   : > { %v5044_v9 = vpop.eup %3666 }
 0x2c6   : > { %3688 = vpow2.f32 %v1393_v2  ;;  %5739 = vst [vmem:[#allocation45_spill] sm:$0xff] %v5044_v9  ;;  %v5049_v30 = vpop.eup %3668  ;;  %v5754_v2 = vld [vmem:[#allocation11_spill] sm:$0xff] }
 0x2c7   : > { %3690 = vpow2.f32 %v1395_v10  ;;  %v5053_v63 = vpop.eup %3670 }
 0x2c8   : > { %3692 = vpow2.f32 %v1397_v50  ;;  %5745 = vst [vmem:[#allocation46_spill] sm:$0xff] %v5053_v63  ;;  %v5058_v20 = vpop.eup %3672 }
 0x2c9   : > { %3694 = vpow2.f32 %v1399_v11  ;;  %v5063_v23 = vpop.eup %3674  ;;  %v5758_v11 = vld [vmem:[#allocation69_spill] sm:$0xff] }
 0x2ca   : > { %3696 = vpow2.f32 %v1401_v16  ;;  %5749 = vst [vmem:[#allocation47_spill] sm:$0xff] %v5063_v23  ;;  %v5068_v24 = vpop.eup %3676  ;;  %v5760_v42 = vsub.f32 %v5758_v11, %v5759_v12  ;;  %v5774_v12 = vld [vmem:[#allocation16_spill] sm:$0xff] }
 0x2cb   : > { %3698 = vpow2.f32 %v1403_v47  ;;  %5753 = vst [vmem:[#allocation48_spill] sm:$0xff] %v5068_v24  ;;  %v5072_v50 = vpop.eup %3678  ;;  %v5762_v47 = vld [vmem:[#allocation72_spill] sm:$0xff] }
 0x2cc   : > { %3700 = vpow2.f32 %v1405_v27  ;;  %5756 = vst [vmem:[#allocation49_spill] sm:$0xff] %v5072_v50  ;;  %v5077_v19 = vpop.eup %3680  ;;  %v1411_v16 = vmul.f32 1.442695, %v5760_v42  ;;  %v5764_v62 = vsub.f32 %v5762_v47, %v5763_v31  ;;  %v5777_v31 = vld [vmem:[#allocation28_spill] sm:$0xff] }
 0x2cd   : > { %5757 = vst [vmem:[#allocation50_spill] sm:$0xff] %v5077_v19  ;;  %v5083_v45 = vpop.eup %3682 }
 0x2ce   : > { %5761 = vst [vmem:[#allocation51_spill] sm:$0xff] %v5083_v45  ;;  %v1415_v15 = vmul.f32 1.442695, %v5764_v62 }
 0x2cf   : > { %v1300_v53 = vpop.xlane.xlu0 %1299 }
 0x2d0   : > { %v5012_v51 = vmax.f32 %v5000_v44, %v1300_v53  ;;  %v5750_v53 = vld [vmem:[#allocation67_spill] sm:$0xff] }
 0x2d1   : > { %v5752_v6 = vsub.f32 %v5750_v53, %v5751_v54 }
 0x2d2   : > { %2614 = vst.msk [vmem:[#allocation3 + $0xf8] sm:$0xff] %vm1973_vm3, %v5012_v51  ;;  %1586 = vperm.xlu1 %3563, %v5012_v51  }
 0x2d3   : > { %v1409_v55 = vmul.f32 1.442695, %v5752_v6 }
 0x2d6   : > { %2040 = vperm.xlu1 %3563, %v5028_v5  }
 0x2d7   : > { %v1492_v52 = vpop.permute.xlu0 %1491 }
 0x2d8   : > { %v1613_v49 = vsub.f32 %v5743_v18, %v1492_v52  ;;  %v1614_v43 = vsub.f32 %v5744_v3, %v1492_v52  ;;  %v5093_v18 = vpop.eup %3684 }
 0x2d9   : > { %5765 = vst [vmem:[#allocation52_spill] sm:$0xff] %v5093_v18  ;;  %v5097_v39 = vpop.eup %3686 }
 0x2da   : > { %v1701_v28 = vmul.f32 1.442695, %v1613_v49  ;;  %v1703_v34 = vmul.f32 1.442695, %v1614_v43  ;;  %2050 = vperm.xlu1 %3563, %v5038_v60   ;;  %v5766_v49 = vld [vmem:[#allocation13_spill] sm:$0xff]  ;;  %v5767_v43 = vld [vmem:[#allocation14_spill] sm:$0xff]  ;;  %v5101_v54 = vpop.eup %3688 }
 0x2db   : > { %v1497_v35 = vpop.permute.xlu0 %1496  ;;  %5768 = vst [vmem:[#allocation53_spill] sm:$0xff] %v5097_v39 }
 0x2dc   : > { %3702 = vpow2.f32 %v1701_v28  ;;  %v1615_v36 = vsub.f32 %v5754_v2, %v1497_v35  ;;  %v1616_v10 = vsub.f32 %v5755_v13, %v1497_v35  ;;  %v1297_v37 = vpop.xlane.xlu1 %1296  ;;  %v5104_v35 = vpop.eup %3690 }
 0x2dd   : > { %3704 = vpow2.f32 %v1703_v34  ;;  %v5075_v21 = vmax.f32 %v5061_v59, %v1297_v37  ;;  %v5770_v34 = vld [vmem:[#allocation18_spill] sm:$0xff]  ;;  %5771 = vst [vmem:[#allocation54_spill] sm:$0xff] %v5104_v35  ;;  %v5773_v37 = vld [vmem:[#allocation15_spill] sm:$0xff] }
 0x2de   : > { %3706 = vpow2.f32 %v1407_v38  ;;  %v1705_v8 = vmul.f32 1.442695, %v1615_v36  ;;  %v1707_v33 = vmul.f32 1.442695, %v1616_v10  ;;  %2055 = vperm.xlu1 %3563, %v5044_v9   ;;  %v5769_v38 = vld [vmem:[#allocation17_spill] sm:$0xff]  ;;  %v5107_v10 = vpop.eup %3692 }
 0x2df   : > { %3708 = vpow2.f32 %v1409_v55  ;;  %2613 = vst.msk [vmem:[#allocation3 + $0xf0] sm:$0xff] %vm1973_vm3, %v5075_v21  ;;  %1581 = vperm.xlu0 %3562, %v5075_v21   ;;  %v1502_v52 = vpop.permute.xlu0 %1501  ;;  %5772 = vst [vmem:[#allocation57_spill] sm:$0xff] %v5107_v10 }
 0x2e0   : > { %3710 = vpow2.f32 %v1705_v8  ;;  %v1617_v3 = vsub.f32 %v5766_v49, %v1502_v52  ;;  %v1618_v40 = vsub.f32 %v5767_v43, %v1502_v52  ;;  %v1512_v4 = vpop.permute.xlu1 %1511  ;;  %v5111_v8 = vpop.eup %3694 }
 0x2e1   : > { %3712 = vpow2.f32 %v1707_v33  ;;  %v1621_v28 = vsub.f32 %v5769_v38, %v1512_v4  ;;  %v1622_v53 = vsub.f32 %v5770_v34, %v1512_v4  ;;  %5775 = vst [vmem:[#allocation58_spill] sm:$0xff] %v5111_v8  ;;  %v5776_v33 = vld [vmem:[#allocation27_spill] sm:$0xff] }
 0x2e2   : > { %3714 = vpow2.f32 %v1411_v16  ;;  %v1709_v6 = vmul.f32 1.442695, %v1617_v3  ;;  %v1711_v55 = vmul.f32 1.442695, %v1618_v40  ;;  %2065 = vperm.xlu1 %3563, %v5053_v63  }
 0x2e3   : > { %3716 = vpow2.f32 %v1415_v15  ;;  %v1717_v2 = vmul.f32 1.442695, %v1621_v28  ;;  %v1719_v36 = vmul.f32 1.442695, %v1622_v53  ;;  %2045 = vperm.xlu0 %3562, %v5033_v26   ;;  %v1507_v13 = vpop.permute.xlu0 %1506  ;;  %v5115_v15 = vpop.eup %3696  ;;  %v5780_v28 = vld [vmem:[#allocation19_spill] sm:$0xff]  ;;  %v5781_v53 = vld [vmem:[#allocation20_spill] sm:$0xff] }
 0x2e4   : > { %3718 = vpow2.f32 %v1709_v6  ;;  %v1619_v11 = vsub.f32 %v5773_v37, %v1507_v13  ;;  %v1620_v42 = vsub.f32 %v5774_v12, %v1507_v13  ;;  %v1537_v16 = vpop.permute.xlu1 %1536  ;;  %v5118_v3 = vpop.eup %3698  ;;  %v5782_v13 = vld [vmem:[#allocation31_spill] sm:$0xff] }
 0x2e5   : > { %3720 = vpow2.f32 %v1711_v55  ;;  %v1631_v47 = vsub.f32 %v5776_v33, %v1537_v16  ;;  %v1632_v62 = vsub.f32 %v5777_v31, %v1537_v16  ;;  %5778 = vst [vmem:[#allocation59_spill] sm:$0xff] %v5118_v3  ;;  %v5121_v38 = vpop.eup %3700 }
 0x2e6   : > { %3722 = vpow2.f32 %v1717_v2  ;;  %v1713_v52 = vmul.f32 1.442695, %v1619_v11  ;;  %v1715_v49 = vmul.f32 1.442695, %v1620_v42  ;;  %2075 = vperm.xlu1 %3563, %v5063_v23   ;;  %5779 = vst [vmem:[#allocation60_spill] sm:$0xff] %v5121_v38  ;;  %v5783_v11 = vld [vmem:[#allocation32_spill] sm:$0xff] }
 0x2e7   : > { %3724 = vpow2.f32 %v1719_v36  ;;  %v1737_v43 = vmul.f32 1.442695, %v1631_v47  ;;  %v1739_v40 = vmul.f32 1.442695, %v1632_v62  ;;  %2060 = vperm.xlu0 %3562, %v5049_v30   ;;  %v1517_v4 = vpop.permute.xlu0 %1516 }
 0x2e8   : > { %3726 = vpow2.f32 %v1713_v52  ;;  %v1623_v34 = vsub.f32 %v5780_v28, %v1517_v4  ;;  %v1624_v6 = vsub.f32 %v5781_v53, %v1517_v4  ;;  %v1547_v55 = vpop.permute.xlu1 %1546  ;;  %v5786_v4 = vld [vmem:[#allocation21_spill] sm:$0xff] }
 0x2e9   : > { %v3703_v2 = vpop.eup %3702  ;;  %3728 = vpow2.f32 %v1715_v49  ;;  %v1635_v37 = vsub.f32 %v5782_v13, %v1547_v55  ;;  %v1636_v12 = vsub.f32 %v5783_v11, %v1547_v55  ;;  %v5788_v55 = vld [vmem:[#allocation35_spill] sm:$0xff] }
 0x2ea   : > { %v3705_v36 = vpop.eup %3704  ;;  %3730 = vpow2.f32 %v1737_v43  ;;  %v1721_v42 = vmul.f32 1.442695, %v1623_v34  ;;  %v1723_v16 = vmul.f32 1.442695, %v1624_v6  ;;  %2085 = vperm.xlu1 %3563, %v5072_v50   ;;  %v5787_v43 = vld [vmem:[#allocation22_spill] sm:$0xff] }
 0x2eb   : > { %v5128_v33 = vpop.eup %3706  ;;  %3732 = vpow2.f32 %v1739_v40  ;;  %v1745_v47 = vmul.f32 1.442695, %v1635_v37  ;;  %v1747_v31 = vmul.f32 1.442695, %v1636_v12  ;;  %2070 = vperm.xlu0 %3562, %v5058_v20   ;;  %v1522_v62 = vpop.permute.xlu0 %1521  ;;  %v5131_v52 = vadd.f32 %v3705_v36, %v3703_v2  ;;  %v5789_v40 = vld [vmem:[#allocation36_spill] sm:$0xff] }
 0x2ec   : > { %5784 = vst [vmem:[#allocation63_spill] sm:$0xff] %v5128_v33  ;;  %v5133_v49 = vpop.eup %3708  ;;  %3734 = vpow2.f32 %v1721_v42  ;;  %v1625_v28 = vsub.f32 %v5786_v4, %v1522_v62  ;;  %v1626_v34 = vsub.f32 %v5787_v43, %v1522_v62  ;;  %v1557_v53 = vpop.permute.xlu1 %1556 }
 0x2ed   : > { %5785 = vst [vmem:[#allocation64_spill] sm:$0xff] %v5133_v49  ;;  %v3711_v6 = vpop.eup %3710  ;;  %3736 = vpow2.f32 %v1723_v16  ;;  %v1639_v13 = vsub.f32 %v5788_v55, %v1557_v53  ;;  %v1640_v37 = vsub.f32 %v5789_v40, %v1557_v53  ;;  %v5792_v53 = vld [vmem:[#allocation23_spill] sm:$0xff] }
 0x2ee   : > { %v3713_v11 = vpop.eup %3712  ;;  %3738 = vpow2.f32 %v1745_v47  ;;  %v1725_v12 = vmul.f32 1.442695, %v1625_v28  ;;  %v1727_v27 = vmul.f32 1.442695, %v1626_v34  ;;  %2095 = vperm.xlu1 %3563, %v5083_v45   ;;  %v2242_v57 = vpack.c.bf16 %v3711_v6, %v3703_v2  ;;  %v5793_v47 = vld [vmem:[#allocation24_spill] sm:$0xff]  ;;  %v5794_v45 = vld [vmem:[#allocation39_spill] sm:$0xff] }
 0x2ef   : > { %v5140_v50 = vpop.eup %3714  ;;  %3740 = vpow2.f32 %v1747_v31  ;;  %v1753_v42 = vmul.f32 1.442695, %v1639_v13  ;;  %v1755_v4 = vmul.f32 1.442695, %v1640_v37  ;;  %2080 = vperm.xlu0 %3562, %v5068_v24   ;;  %v1527_v62 = vpop.permute.xlu0 %1526  ;;  %v2243_v16 = vpack.c.bf16 %v3713_v11, %v3705_v36  ;;  %v5795_v13 = vld [vmem:[#allocation40_spill] sm:$0xff] }
 0x2f0   : > { %5790 = vst [vmem:[#allocation9_spill] sm:$0xff] %v5140_v50  ;;  %v5143_v43 = vpop.eup %3716  ;;  %3742 = vpow2.f32 %v1725_v12  ;;  %v1627_v55 = vsub.f32 %v5792_v53, %v1527_v62  ;;  %v1628_v28 = vsub.f32 %v5793_v47, %v1527_v62  ;;  %v1567_v34 = vpop.permute.xlu1 %1566  ;;  %v5147_v40 = vadd.f32 %v3713_v11, %v3711_v6 }
 0x2f1   : > { %5791 = vst [vmem:[#allocation10_spill] sm:$0xff] %v5143_v43  ;;  %v3719_v2 = vpop.eup %3718  ;;  %3744 = vpow2.f32 %v1727_v27  ;;  %v1643_v31 = vsub.f32 %v5794_v45, %v1567_v34  ;;  %v1644_v37 = vsub.f32 %v5795_v13, %v1567_v34  ;;  %2438 = vmatprep.mubr.bf16.mxu1 %v2243_v16  ;;  %v5796_v16 = vld [vmem:[#allocation25_spill] sm:$0xff]  ;;  %v5799_v13 = vld [vmem:[#allocation44_spill] sm:$0xff] }
 0x2f2   : > { %v3721_v23 = vpop.eup %3720  ;;  %3746 = vpow2.f32 %v1753_v42  ;;  %v1729_v36 = vmul.f32 1.442695, %v1627_v55  ;;  %v1731_v63 = vmul.f32 1.442695, %v1628_v28  ;;  %2439 = vmatmul.mubr.bf16.gmra.mxu1 %v2242_v57  ;;  %2105 = vperm.xlu1 %3563, %v5097_v39   ;;  %v5797_v42 = vld [vmem:[#allocation26_spill] sm:$0xff]  ;;  %v5798_v28 = vld [vmem:[#allocation43_spill] sm:$0xff] }
 0x2f3   : > { %v5152_v12 = vpop.eup %3722  ;;  %3748 = vpow2.f32 %v1755_v4  ;;  %v1761_v62 = vmul.f32 1.442695, %v1643_v31  ;;  %v1763_v6 = vmul.f32 1.442695, %v1644_v37  ;;  %2090 = vperm.xlu0 %3562, %v5077_v19   ;;  %v1532_v27 = vpop.permute.xlu0 %1531  ;;  %v5155_v11 = vadd.f32 %v3721_v23, %v3719_v2 }
 0x2f4   : > { %v3725_v45 = vpop.eup %3724  ;;  %3750 = vpow2.f32 %v1729_v36  ;;  %v1629_v53 = vsub.f32 %v5796_v16, %v1532_v27  ;;  %v1630_v55 = vsub.f32 %v5797_v42, %v1532_v27  ;;  %v1577_v47 = vpop.permute.xlu1 %1576 }
 0x2f5   : > { %v3727_v57 = vpop.eup %3726  ;;  %3752 = vpow2.f32 %v1731_v63  ;;  %v1647_v34 = vsub.f32 %v5798_v28, %v1577_v47  ;;  %v1648_v4 = vsub.f32 %v5799_v13, %v1577_v47  ;;  %v5162_v31 = vadd.f32 %v3725_v45, %v5152_v12  ;;  %v5800_v13 = vld [vmem:[#allocation29_spill] sm:$0xff] }
 0x2f6   : > { %v3729_v37 = vpop.eup %3728  ;;  %3754 = vpow2.f32 %v1761_v62  ;;  %v1733_v39 = vmul.f32 1.442695, %v1629_v53  ;;  %v1735_v19 = vmul.f32 1.442695, %v1630_v55  ;;  %2115 = vperm.xlu1 %3563, %v5104_v35   ;;  %v2244_v36 = vpack.c.bf16 %v3727_v57, %v3719_v2  ;;  %v5801_v62 = vld [vmem:[#allocation30_spill] sm:$0xff] }
 0x2f7   : > { %v5165_v16 = vpop.eup %3730  ;;  %3756 = vpow2.f32 %v1763_v6  ;;  %v1769_v27 = vmul.f32 1.442695, %v1647_v34  ;;  %v1771_v42 = vmul.f32 1.442695, %v1648_v4  ;;  %2100 = vperm.xlu0 %3562, %v5093_v18   ;;  %v1542_v63 = vpop.permute.xlu0 %1541  ;;  %v2245_v28 = vpack.c.bf16 %v3729_v37, %v3721_v23  ;;  %v5802_v34 = vld [vmem:[#allocation71_spill] sm:$0xff] }
 0x2f8   : > { %v5168_v47 = vpop.eup %3732  ;;  %3758 = vpow2.f32 %v1733_v39  ;;  %v1633_v24 = vsub.f32 %v5800_v13, %v1542_v63  ;;  %v1634_v53 = vsub.f32 %v5801_v62, %v1542_v63  ;;  %v5172_v55 = vadd.f32 %v3729_v37, %v3727_v57  ;;  %v5804_v37 = vld [vmem:[#allocation75_spill] sm:$0xff] }
 0x2f9   : > { %v3735_v35 = vpop.eup %3734  ;;  %3760 = vpow2.f32 %v1735_v19  ;;  %2446 = vmatprep.mubr.bf16.mxu1 %v2245_v28  ;;  %v5176_v2 = vadd.f32 %v5168_v47, %v5165_v16  ;;  %v5803_v23 = vsub.f32 %v5802_v34, %v4852_v61  ;;  %v5805_v19 = vld [vmem:[#allocation76_spill] sm:$0xff] }
 0x2fa   : > { %v3737_v6 = vpop.eup %3736  ;;  %3762 = vpow2.f32 %v1769_v27  ;;  %v1741_v39 = vmul.f32 1.442695, %v1633_v24  ;;  %v1743_v18 = vmul.f32 1.442695, %v1634_v53  ;;  %2447 = vmatmul.mubr.bf16.gmra.mxu1 %v2244_v36  ;;  %2125 = vperm.xlu1 %3563, %v5111_v8   ;;  %v5806_v63 = vsub.f32 %v5804_v37, %v5805_v19  ;;  %v5807_v24 = vld [vmem:[#allocation33_spill] sm:$0xff]  ;;  %v5808_v27 = vld [vmem:[#allocation34_spill] sm:$0xff] }
 0x2fb   : > { %v1413_v4 = vmul.f32 1.442695, %v5803_v23  ;;  %v5182_v57 = vpop.eup %3738  ;;  %3764 = vpow2.f32 %v1771_v42  ;;  %2110 = vperm.xlu0 %3562, %v5101_v54   ;;  %v1552_v13 = vpop.permute.xlu0 %1551  ;;  %v2247_v62 = vpack.c.bf16 %v3737_v6, %v3725_v45  ;;  %v5188_v9 = vadd.f32 %v3737_v6, %v3735_v35  ;;  %v5809_v37 = vld [vmem:[#allocation74_spill] sm:$0xff] }
 0x2fc   : > { %v1419_v28 = vmul.f32 1.442695, %v5806_v63  ;;  %v5190_v61 = vpop.eup %3740  ;;  %3766 = vpow2.f32 %v1741_v39  ;;  %v1637_v36 = vsub.f32 %v5807_v24, %v1552_v13  ;;  %v1638_v53 = vsub.f32 %v5808_v27, %v1552_v13  ;;  %v5811_v13 = vld [vmem:[#allocation78_spill] sm:$0xff] }
 0x2fd   : > { %v3743_v34 = vpop.eup %3742  ;;  %3768 = vpow2.f32 %v1743_v18  ;;  %2454 = vmatprep.mubr.bf16.mxu1 %v2247_v62  ;;  %v5196_v23 = vadd.f32 %v5190_v61, %v5182_v57  ;;  %v5810_v45 = vsub.f32 %v5809_v37, %v4874_v46  ;;  %v5812_v18 = vld [vmem:[#allocation79_spill] sm:$0xff]  ;;  %v5814_v46 = vld [vmem:[#allocation37_spill] sm:$0xff] }
 0x2fe   : > { %v3745_v42 = vpop.eup %3744  ;;  %3770 = vpow2.f32 %v1413_v4  ;;  %v1749_v19 = vmul.f32 1.442695, %v1637_v36  ;;  %v1751_v63 = vmul.f32 1.442695, %v1638_v53  ;;  %2135 = vperm.xlu1 %3563, %v5118_v3   ;;  %v5813_v62 = vsub.f32 %v5811_v13, %v5812_v18  ;;  %v5815_v53 = vld [vmem:[#allocation38_spill] sm:$0xff] }
 0x2ff   : > { %v1417_v6 = vmul.f32 1.442695, %v5810_v45  ;;  %v5202_v39 = vpop.eup %3746  ;;  %3772 = vpow2.f32 %v1419_v28  ;;  %2120 = vperm.xlu0 %3562, %v5107_v10   ;;  %v1562_v27 = vpop.permute.xlu0 %1561  ;;  %v5208_v8 = vadd.f32 %v3745_v42, %v3743_v34  ;;  %v2246_v45 = vpack.c.bf16 %v3735_v35, %v5152_v12 }
 0x300   : > { %v1423_v24 = vmul.f32 1.442695, %v5813_v62  ;;  %v5210_v4 = vpop.eup %3748  ;;  %3774 = vpow2.f32 %v1749_v19  ;;  %v1641_v36 = vsub.f32 %v5814_v46, %v1562_v27  ;;  %v1642_v37 = vsub.f32 %v5815_v53, %v1562_v27  ;;  %v5816_v46 = vld [vmem:[#allocation77_spill] sm:$0xff] }
 0x301   : > { %v3751_v3 = vpop.eup %3750  ;;  %3776 = vpow2.f32 %v1751_v63  ;;  %v5217_v28 = vadd.f32 %v5210_v4, %v5202_v39  ;;  %v5817_v27 = vsub.f32 %v5816_v46, %v4896_v32 }
 0x302   : > { %v3753_v13 = vpop.eup %3752  ;;  %3778 = vpow2.f32 %v1417_v6  ;;  %v1757_v18 = vmul.f32 1.442695, %v1641_v36  ;;  %v1759_v62 = vmul.f32 1.442695, %v1642_v37  ;;  %2455 = vmatmul.mubr.bf16.gmra.mxu1 %v2246_v45  ;;  %2145 = vperm.xlu1 %3563, %v5128_v33   ;;  %v5818_v6 = vld [vmem:[#allocation41_spill] sm:$0xff]  ;;  %v5819_v37 = vld [vmem:[#allocation42_spill] sm:$0xff] }
 0x303   : > { %v5220_v19 = vpop.eup %3754  ;;  %3780 = vpow2.f32 %v1423_v24  ;;  %v1421_v35 = vmul.f32 1.442695, %v5817_v27  ;;  %2130 = vperm.xlu0 %3562, %v5115_v15   ;;  %v1572_v12 = vpop.permute.xlu0 %1571  ;;  %v2249_v63 = vpack.c.bf16 %v3753_v13, %v3745_v42  ;;  %v5226_v53 = vadd.f32 %v3753_v13, %v3751_v3 }
 0x304   : > { %v3757_v10 = vpop.eup %3756  ;;  %3782 = vpow2.f32 %v1757_v18  ;;  %v1645_v36 = vsub.f32 %v5818_v6, %v1572_v12  ;;  %v1646_v45 = vsub.f32 %v5819_v37, %v1572_v12  ;;  %v2248_v12 = vpack.c.bf16 %v3751_v3, %v3743_v34 }
 0x305   : > { %v3759_v33 = vpop.eup %3758  ;;  %3784 = vpow2.f32 %v1759_v62  ;;  %2462 = vmatprep.mubr.bf16.mxu1 %v2249_v63  ;;  %v5231_v24 = vadd.f32 %v3757_v10, %v5220_v19 }
 0x306   : > { %v3761_v32 = vpop.eup %3760  ;;  %v1765_v46 = vmul.f32 1.442695, %v1645_v36  ;;  %v1767_v27 = vmul.f32 1.442695, %v1646_v45  ;;  %2155 = vperm.xlu1 %3563, %v5140_v50   ;;  %3786 = vpow2.f32 %v1421_v35 }
 0x307   : > { %v3763_v42 = vpop.eup %3762  ;;  %2140 = vperm.xlu0 %3562, %v5121_v38   ;;  %v5235_v13 = vadd.f32 %v3761_v32, %v3759_v33  ;;  %v2251_v62 = vpack.c.bf16 %v5168_v47, %v3761_v32 }
 0x308   : > { %v3765_v18 = vpop.eup %3764  ;;  %3788 = vpow2.f32 %v1765_v46 }
 0x309   : > { %v3767_v6 = vpop.eup %3766  ;;  %3790 = vpow2.f32 %v1767_v27  ;;  %v5238_v63 = vadd.f32 %v3765_v18, %v3763_v42  ;;  %v2250_v27 = vpack.c.bf16 %v5165_v16, %v3759_v33 }
 0x30a   : > { %v3769_v37 = vpop.eup %3768  ;;  %2463 = vmatmul.mubr.bf16.gmra.mxu1 %v2248_v12  ;;  %2165 = vperm.xlu1 %3563, %v5143_v43   ;;  %v2252_v33 = vpack.c.bf16 %v5182_v57, %v3767_v6 }
 0x30b   : > { %v5241_v36 = vpop.eup %3770  ;;  %2470 = vmatprep.mubr.bf16.mxu1 %v2251_v62  ;;  %2150 = vperm.xlu0 %3562, %v5133_v49   ;;  %v5244_v35 = vadd.f32 %v3769_v37, %v3767_v6  ;;  %v2253_v62 = vpack.c.bf16 %v5190_v61, %v3769_v37 }
 0x30c   : > { %5820 = vst [vmem:[#allocation65_spill] sm:$0xff] %v5241_v36  ;;  %v5246_v45 = vpop.eup %3772 }
 0x30d   : > { %5821 = vst [vmem:[#allocation66_spill] sm:$0xff] %v5246_v45  ;;  %v3775_v3 = vpop.eup %3774 }
 0x30e   : > { %v3777_v34 = vpop.eup %3776  ;;  %2175 = vperm.xlu1 %3563, %v5246_v45   ;;  %v2254_v61 = vpack.c.bf16 %v5202_v39, %v3775_v3 }
 0x30f   : > { %v5249_v47 = vpop.eup %3778  ;;  %2160 = vperm.xlu0 %3562, %v5241_v36   ;;  %v5252_v32 = vadd.f32 %v3777_v34, %v3775_v3  ;;  %v2255_v16 = vpack.c.bf16 %v5210_v4, %v3777_v34  ;;  %v2009_v34 = vld [vmem:[#allocation2 + $0x18] sm:$0xff] }
 0x310   : > { %v5254_v46 = vpop.eup %3780 }
 0x311   : > { %5822 = vst [vmem:[#allocation67_spill] sm:$0xff] %v5254_v46  ;;  %v3783_v12 = vpop.eup %3782 }
 0x312   : > { %v3785_v43 = vpop.eup %3784  ;;  %2471 = vmatmul.mubr.bf16.gmra.mxu1 %v2250_v27  ;;  %2185 = vperm.xlu1 %3563, %v5254_v46   ;;  %v2256_v27 = vpack.c.bf16 %v5220_v19, %v3783_v12 }
 0x313   : > { %2478 = vmatprep.mubr.bf16.mxu1 %v2253_v62  ;;  %2170 = vperm.xlu0 %3562, %v5249_v47   ;;  %v5260_v45 = vadd.f32 %v3785_v43, %v3783_v12  ;;  %v5262_v50 = vpop.eup %3786  ;;  %v2257_v37 = vpack.c.bf16 %v3757_v10, %v3785_v43  ;;  %v5825_v10 = vld [vmem:[#allocation61_spill] sm:$0xff] }
 0x315   : > { %v3789_v36 = vpop.eup %3788 }
 0x316   : > { %v3791_v49 = vpop.eup %3790  ;;  %v2258_v46 = vpack.c.bf16 %v3763_v42, %v3789_v36 }
 0x317   : > { %2180 = vperm.xlu0 %3562, %v5262_v50   ;;  %v5265_v38 = vadd.f32 %v3791_v49, %v3789_v36  ;;  %v2259_v62 = vpack.c.bf16 %v3765_v18, %v3791_v49  ;;  %v5826_v49 = vld [vmem:[#allocation62_spill] sm:$0xff]  ;;  %v2008_v18 = vld [vmem:[#allocation2 + $0x10] sm:$0xff] }
 0x31a   : > { %2479 = vmatmul.mubr.bf16.gmra.mxu1 %v2252_v33 }
 0x31b   : > { %2486 = vmatprep.mubr.bf16.mxu1 %v2255_v16 }
 0x322   : > { %2487 = vmatmul.mubr.bf16.gmra.mxu1 %v2254_v61 }
 0x323   : > { %2494 = vmatprep.mubr.bf16.mxu1 %v2257_v37  ;;  %v2010_v37 = vld [vmem:[#allocation2 + $0x20] sm:$0xff] }
 0x32a   : > { %2495 = vmatmul.mubr.bf16.gmra.mxu1 %v2256_v27 }
 0x32b   : > { %2502 = vmatprep.mubr.bf16.mxu1 %v2259_v62 }
 0x332   : > { %2503 = vmatmul.mubr.bf16.gmra.mxu1 %v2258_v46 }
 0x336   : > { %1846 = vadd.xlane.f32.xlu0 %v4929_v56  ;;  %1849 = vadd.xlane.f32.xlu1 %v4933_v0  ;;  %v5823_v0 = vld [vmem:[#allocation55_spill] sm:$0xff] }
 0x33a   : > { %1852 = vadd.xlane.f32.xlu0 %v4937_v17  ;;  %1858 = vadd.xlane.f32.xlu1 %v4945_v58 }
 0x33e   : > { %1855 = vadd.xlane.f32.xlu0 %v4941_v25  ;;  %1864 = vadd.xlane.f32.xlu1 %v4953_v14  ;;  %v5824_v25 = vld [vmem:[#allocation56_spill] sm:$0xff]  ;;  %v2006_v14 = vld [vmem:[#allocation2] sm:$0xff] }
 0x342   : > { %1861 = vadd.xlane.f32.xlu0 %v4949_v41  ;;  %1870 = vadd.xlane.f32.xlu1 %v4959_v48 }
 0x346   : > { %1867 = vadd.xlane.f32.xlu0 %v4957_v22  ;;  %1876 = vadd.xlane.f32.xlu1 %v4963_v7 }
 0x34a   : > { %1873 = vadd.xlane.f32.xlu0 %v4961_v29  ;;  %1882 = vadd.xlane.f32.xlu1 %v5131_v52 }
 0x34d   : > { %v1587_v56 = vpop.permute.xlu1 %1586 }
 0x34e   : > { %1879 = vadd.xlane.f32.xlu0 %v4965_v1  ;;  %1888 = vadd.xlane.f32.xlu1 %v5155_v11  ;;  %v1651_v17 = vsub.f32 %v5823_v0, %v1587_v56  ;;  %v1652_v58 = vsub.f32 %v5824_v25, %v1587_v56 }
 0x350   : > { %v1777_v41 = vmul.f32 1.442695, %v1651_v17  ;;  %v1779_v29 = vmul.f32 1.442695, %v1652_v58 }
 0x351   : > { %v2041_v22 = vpop.permute.xlu1 %2040 }
 0x352   : > { %1885 = vadd.xlane.f32.xlu0 %v5147_v40  ;;  %1894 = vadd.xlane.f32.xlu1 %v5162_v31  ;;  %v2198_v40 = vmul.f32 %v2041_v22, %v2006_v14  ;;  %v2007_v31 = vld [vmem:[#allocation2 + $0x8] sm:$0xff]  ;;  %3792 = vpow2.f32 %v1777_v41 }
 0x353   : > { %3794 = vpow2.f32 %v1779_v29  ;;  %v2011_v41 = vld [vmem:[#allocation2 + $0x28] sm:$0xff] }
 0x355   : > { %v2051_v4 = vpop.permute.xlu1 %2050 }
 0x356   : > { %1891 = vadd.xlane.f32.xlu0 %v5172_v55  ;;  %1900 = vadd.xlane.f32.xlu1 %v5208_v8 }
 0x359   : > { %v3412_v48 = vpop.f32.mrf.mxu1  ;;  %v2056_v46 = vpop.permute.xlu1 %2055 }
 0x35a   : > { %1897 = vadd.xlane.f32.xlu0 %v5188_v9  ;;  %1906 = vadd.xlane.f32.xlu1 %v5235_v13  ;;  %v1582_v7 = vpop.permute.xlu0 %1581  ;;  %v2201_v61 = vmul.f32 %v2056_v46, %v2009_v34  ;;  %v2015_v46 = vld [vmem:[#allocation2 + $0x48] sm:$0xff] }
 0x35b   : > { %v3413_v1 = vpop.f32.mrf.mxu1  ;;  %v1649_v52 = vsub.f32 %v5825_v10, %v1582_v7  ;;  %v1650_v43 = vsub.f32 %v5826_v49, %v1582_v7 }
 0x35c   : > { %v3414_v11 = vadd.f32 %v3413_v1, %v3412_v48 }
 0x35d   : > { %v1773_v8 = vmul.f32 1.442695, %v1649_v52  ;;  %v1775_v55 = vmul.f32 1.442695, %v1650_v43  ;;  %v3415_v57 = vpop.f32.mrf.mxu1  ;;  %v2066_v14 = vpop.permute.xlu1 %2065  ;;  %v2012_v43 = vld [vmem:[#allocation2 + $0x30] sm:$0xff] }
 0x35e   : > { %v2519_v39 = vadd.f32 %v3414_v11, %v2198_v40  ;;  %1903 = vadd.xlane.f32.xlu0 %v5226_v53  ;;  %1912 = vadd.xlane.f32.xlu1 %v5244_v35  ;;  %v2046_v9 = vpop.permute.xlu0 %2045  ;;  %v2200_v53 = vmul.f32 %v2051_v4, %v2008_v18  ;;  %v2203_v52 = vmul.f32 %v2066_v14, %v2011_v41 }
 0x35f   : > { %3796 = vpow2.f32 %v1773_v8  ;;  %v3416_v19 = vpop.f32.mrf.mxu1  ;;  %v2199_v42 = vmul.f32 %v2046_v9, %v2007_v31  ;;  %v3793_v62 = vpop.eup %3792 }
 0x360   : > { %2551 = vst.msk [vmem:[#allocation2] sm:$0xff] %vm681_vm2, %v2519_v39  ;;  %3798 = vpow2.f32 %v1775_v55  ;;  %v3417_v13 = vadd.f32 %v3416_v19, %v3415_v57  ;;  %v3795_v0 = vpop.eup %3794  ;;  %v2013_v55 = vld [vmem:[#allocation2 + $0x38] sm:$0xff] }
 0x361   : > { %v3418_v6 = vpop.f32.mrf.mxu1  ;;  %v2076_v57 = vpop.permute.xlu1 %2075 }
 0x362   : > { %v2520_v36 = vadd.f32 %v3417_v13, %v2199_v42  ;;  %1909 = vadd.xlane.f32.xlu0 %v5176_v2  ;;  %1918 = vadd.xlane.f32.xlu1 %v5252_v32  ;;  %v2061_v32 = vpop.permute.xlu0 %2060  ;;  %v2205_v19 = vmul.f32 %v2076_v57, %v2013_v55  ;;  %v2014_v13 = vld [vmem:[#allocation2 + $0x40] sm:$0xff] }
 0x363   : > { %v3419_v3 = vpop.f32.mrf.mxu1 }
 0x364   : > { %2552 = vst.msk [vmem:[#allocation2 + $0x8] sm:$0xff] %vm681_vm2, %v2520_v36  ;;  %v3420_v35 = vadd.f32 %v3419_v3, %v3418_v6  ;;  %v5828_v6 = vsub.f32 %v5061_v59, %v5075_v21  ;;  %v2016_v59 = vld [vmem:[#allocation2 + $0x50] sm:$0xff] }
 0x365   : > { %v3421_v12 = vpop.f32.mrf.mxu1 }
 0x366   : > { %v2521_v33 = vadd.f32 %v3420_v35, %v2200_v53  ;;  %1915 = vadd.xlane.f32.xlu0 %v5196_v23  ;;  %1924 = vadd.xlane.f32.xlu1 %v5260_v45  ;;  %v2202_v23 = vmul.f32 %v2061_v32, %v2010_v37  ;;  %v2071_v40 = vpop.permute.xlu0 %2070  ;;  %v1425_v36 = vmul.f32 1.442695, %v5828_v6 }
 0x367   : > { %v3422_v16 = vpop.f32.mrf.mxu1  ;;  %v2204_v8 = vmul.f32 %v2071_v40, %v2012_v43 }
 0x368   : > { %2553 = vst.msk [vmem:[#allocation2 + $0x10] sm:$0xff] %vm681_vm2, %v2521_v33  ;;  %v3423_v2 = vadd.f32 %v3422_v16, %v3421_v12  ;;  %v2086_v12 = vpop.permute.xlu1 %2085 }
 0x369   : > { %v3424_v27 = vpop.f32.mrf.mxu1  ;;  %v2207_v37 = vmul.f32 %v2086_v12, %v2015_v46  ;;  %v1782_v12 = vld [vmem:[#allocation4 + $0x8] sm:$0xff] }
 0x36a   : > { %v2522_v56 = vadd.f32 %v3423_v2, %v2201_v61  ;;  %1921 = vadd.xlane.f32.xlu0 %v5217_v28  ;;  %1930 = vadd.xlane.f32.xlu1 %v5265_v38  ;;  %v5827_v38 = vsub.f32 %v5000_v44, %v5012_v51  ;;  %v1938_v51 = vadd.f32 %v3795_v0, %v3793_v62  ;;  %v2081_v18 = vpop.permute.xlu0 %2080 }
 0x36b   : > { %v3425_v17 = vpop.f32.mrf.mxu1  ;;  %v2206_v35 = vmul.f32 %v2081_v18, %v2014_v13 }
 0x36c   : > { %v3797_v25 = vpop.eup %3796  ;;  %2554 = vst.msk [vmem:[#allocation2 + $0x18] sm:$0xff] %vm681_vm2, %v2522_v56  ;;  %v3426_v45 = vadd.f32 %v3425_v17, %v3424_v27  ;;  %v1427_v28 = vmul.f32 1.442695, %v5827_v38 }
 0x36d   : > { %v3799_v58 = vpop.eup %3798  ;;  %v3427_v22 = vpop.f32.mrf.mxu1  ;;  %v2260_v48 = vpack.c.bf16 %v3793_v62, %v3797_v25 }
 0x36e   : > { %v2523_v29 = vadd.f32 %v3426_v45, %v2202_v23  ;;  %1927 = vadd.xlane.f32.xlu0 %v5231_v24  ;;  %v2261_v7 = vpack.c.bf16 %v3795_v0, %v3799_v58  ;;  %v1935_v1 = vadd.f32 %v3799_v58, %v3797_v25  ;;  %3800 = vpow2.f32 %v1427_v28  ;;  %v2091_v21 = vpop.permute.xlu0 %2090  ;;  %v2017_v25 = vld [vmem:[#allocation2 + $0x58] sm:$0xff]  ;;  %v2096_v23 = vpop.permute.xlu1 %2095 }
 0x36f   : > { %v3428_v10 = vpop.f32.mrf.mxu1  ;;  %3802 = vpow2.f32 %v1425_v36  ;;  %v2208_v0 = vmul.f32 %v2091_v21, %v2016_v59  ;;  %v2209_v14 = vmul.f32 %v2096_v23, %v2017_v25  ;;  %v1814_v21 = vmul.f32 %v5033_v26, %v1782_v12  ;;  %v1783_v25 = vld [vmem:[#allocation4 + $0x10] sm:$0xff] }
 0x370   : > { %2555 = vst.msk [vmem:[#allocation2 + $0x20] sm:$0xff] %vm681_vm2, %v2523_v29  ;;  %v3429_v49 = vadd.f32 %v3428_v10, %v3427_v22  ;;  %2510 = vmatprep.mubr.bf16.mxu1 %v2261_v7  ;;  %1936 = vadd.xlane.f32.xlu1 %v1935_v1 }
 0x371   : > { %v3430_v11 = vpop.f32.mrf.mxu1  ;;  %2511 = vmatmul.mubr.bf16.gmra.mxu1 %v2260_v48 }
 0x372   : > { %v2524_v31 = vadd.f32 %v3429_v49, %v2203_v52  ;;  %1933 = vadd.xlane.f32.xlu0 %v5238_v63  ;;  %v2106_v7 = vpop.permute.xlu1 %2105  ;;  %v2101_v1 = vpop.permute.xlu0 %2100 }
 0x373   : > { %v3431_v24 = vpop.f32.mrf.mxu1 }
 0x374   : > { %2556 = vst.msk [vmem:[#allocation2 + $0x28] sm:$0xff] %vm681_vm2, %v2524_v31  ;;  %v3432_v44 = vadd.f32 %v3431_v24, %v3430_v11 }
 0x375   : > { %v3433_v39 = vpop.f32.mrf.mxu1 }
 0x376   : > { %v2525_v9 = vadd.f32 %v3432_v44, %v2204_v8  ;;  %1939 = vadd.xlane.f32.xlu0 %v1938_v51  ;;  %v2116_v38 = vpop.permute.xlu1 %2115  ;;  %v2111_v28 = vpop.permute.xlu0 %2110  ;;  %v2018_v51 = vld [vmem:[#allocation2 + $0x60] sm:$0xff] }
 0x377   : > { %v3434_v4 = vpop.f32.mrf.mxu1 }
 0x378   : > { %2557 = vst.msk [vmem:[#allocation2 + $0x30] sm:$0xff] %vm681_vm2, %v2525_v9  ;;  %v3435_v42 = vadd.f32 %v3434_v4, %v3433_v39  ;;  %v2210_v39 = vmul.f32 %v2101_v1, %v2018_v51  ;;  %v1787_v51 = vld [vmem:[#allocation4 + $0x30] sm:$0xff] }
 0x379   : > { %v3436_v63 = vpop.f32.mrf.mxu1 }
 0x37a   : > { %v2526_v3 = vadd.f32 %v3435_v42, %v2205_v19  ;;  %v5329_v10 = vpop.permute.xlu1 %2125  ;;  %v5331_v52 = vpop.permute.xlu0 %2120  ;;  %v2019_v42 = vld [vmem:[#allocation2 + $0x68] sm:$0xff] }
 0x37b   : > { %v3437_v53 = vpop.f32.mrf.mxu1  ;;  %v5319_v2 = vpop.eup %3800  ;;  %v2211_v6 = vmul.f32 %v2106_v7, %v2019_v42 }
 0x37c   : > { %2558 = vst.msk [vmem:[#allocation2 + $0x38] sm:$0xff] %vm681_vm2, %v2526_v3  ;;  %v3438_v34 = vadd.f32 %v3437_v53, %v3436_v63  ;;  %v5325_v29 = vpop.eup %3802  ;;  %v2020_v3 = vld [vmem:[#allocation2 + $0x70] sm:$0xff] }
 0x37d   : > { %v3439_v33 = vpop.f32.mrf.mxu1 }
 0x37e   : > { %v2527_v16 = vadd.f32 %v3438_v34, %v2206_v35  ;;  %v5333_v49 = vpop.permute.xlu1 %2135  ;;  %v5335_v43 = vpop.permute.xlu0 %2130 }
 0x37f   : > { %v3440_v61 = vpop.f32.mrf.mxu1 }
 0x380   : > { %2559 = vst.msk [vmem:[#allocation2 + $0x40] sm:$0xff] %vm681_vm2, %v2527_v16  ;;  %v3441_v32 = vadd.f32 %v3440_v61, %v3439_v33  ;;  %v1781_v33 = vld [vmem:[#allocation4] sm:$0xff]  ;;  %v2212_v61 = vmul.f32 %v2111_v28, %v2020_v3 }
 0x381   : > { %v3442_v27 = vpop.f32.mrf.mxu1  ;;  %2195 = vperm.xlu1 %3563, %v5319_v2  }
 0x382   : > { %v2528_v62 = vadd.f32 %v3441_v32, %v2207_v37  ;;  %v5337_v40 = vpop.permute.xlu1 %2145  ;;  %v5339_v11 = vpop.permute.xlu0 %2140  ;;  %v2021_v32 = vld [vmem:[#allocation2 + $0x78] sm:$0xff] }
 0x383   : > { %v3443_v56 = vpop.f32.mrf.mxu1 }
 0x384   : > { %2560 = vst.msk [vmem:[#allocation2 + $0x48] sm:$0xff] %vm681_vm2, %v2528_v62  ;;  %v3444_v17 = vadd.f32 %v3443_v56, %v3442_v27  ;;  %v1813_v27 = vmul.f32 %v5028_v5, %v1781_v33 }
 0x385   : > { %v3445_v45 = vpop.f32.mrf.mxu1 }
 0x386   : > { %v2529_v58 = vadd.f32 %v3444_v17, %v2208_v0  ;;  %v5341_v31 = vpop.permute.xlu1 %2155  ;;  %v5343_v24 = vpop.permute.xlu0 %2150  ;;  %v1785_v17 = vld [vmem:[#allocation4 + $0x20] sm:$0xff] }
 0x387   : > { %v3446_v41 = vpop.f32.mrf.mxu1  ;;  %v1817_v5 = vmul.f32 %v5049_v30, %v1785_v17  ;;  %v1791_v17 = vld [vmem:[#allocation4 + $0x50] sm:$0xff] }
 0x388   : > { %2561 = vst.msk [vmem:[#allocation2 + $0x50] sm:$0xff] %vm681_vm2, %v2529_v58  ;;  %v3447_v22 = vadd.f32 %v3446_v41, %v3445_v45  ;;  %v2213_v41 = vmul.f32 %v2116_v38, %v2021_v32  ;;  %v5830_v32 = vld [vmem:[#allocation48_spill] sm:$0xff] }
 0x38a   : > { %v2530_v48 = vadd.f32 %v3447_v22, %v2209_v14  ;;  %v5345_v8 = vpop.permute.xlu1 %2165  ;;  %v5347_v44 = vpop.permute.xlu0 %2160  ;;  %v2022_v22 = vld [vmem:[#allocation2 + $0x80] sm:$0xff] }
 0x38c   : > { %2562 = vst.msk [vmem:[#allocation2 + $0x58] sm:$0xff] %vm681_vm2, %v2530_v48  ;;  %2190 = vperm.xlu0 %3562, %v5325_v29   ;;  %v1815_v48 = vmul.f32 %v5038_v60, %v1783_v25  ;;  %v1819_v60 = vmul.f32 %v5058_v20, %v1787_v51  ;;  %v1788_v25 = vld [vmem:[#allocation4 + $0x38] sm:$0xff] }
 0x38e   : > { %v5349_v9 = vpop.permute.xlu1 %2175  ;;  %v5351_v4 = vpop.permute.xlu0 %2170 }
 0x392   : > { %v5354_v35 = vpop.permute.xlu1 %2185  ;;  %v5356_v34 = vpop.permute.xlu0 %2180 }
 0x3b2   : > { %v3448_v55 = vpop.f32.mrf.mxu1 }
 0x3b4   : > { %v3449_v57 = vpop.f32.mrf.mxu1 }
 0x3b5   : > { %v3450_v19 = vadd.f32 %v3449_v57, %v3448_v55  ;;  %v1784_v55 = vld [vmem:[#allocation4 + $0x18] sm:$0xff] }
 0x3b6   : > { %v3451_v13 = vpop.f32.mrf.mxu1 }
 0x3b7   : > { %v2531_v18 = vadd.f32 %v3450_v19, %v2210_v39  ;;  %v2214_v19 = vmul.f32 %v5331_v52, %v2022_v22 }
 0x3b8   : > { %v3452_v63 = vpop.f32.mrf.mxu1 }
 0x3b9   : > { %2563 = vst.msk [vmem:[#allocation2 + $0x60] sm:$0xff] %vm681_vm2, %v2531_v18  ;;  %v3453_v36 = vadd.f32 %v3452_v63, %v3451_v13  ;;  %v2023_v13 = vld [vmem:[#allocation2 + $0x88] sm:$0xff]  ;;  %v5829_v18 = vld [vmem:[#allocation45_spill] sm:$0xff] }
 0x3ba   : > { %v3454_v53 = vpop.f32.mrf.mxu1  ;;  %v1816_v63 = vmul.f32 %v5829_v18, %v1784_v55  ;;  %v1793_v55 = vld [vmem:[#allocation4 + $0x60] sm:$0xff] }
 0x3bb   : > { %v2532_v46 = vadd.f32 %v3453_v36, %v2211_v6 }
 0x3bc   : > { %v3455_v16 = vpop.f32.mrf.mxu1 }
 0x3bd   : > { %2564 = vst.msk [vmem:[#allocation2 + $0x68] sm:$0xff] %vm681_vm2, %v2532_v46  ;;  %v3456_v37 = vadd.f32 %v3455_v16, %v3454_v53  ;;  %v1789_v53 = vld [vmem:[#allocation4 + $0x40] sm:$0xff]  ;;  %v1786_v46 = vld [vmem:[#allocation4 + $0x28] sm:$0xff]  ;;  %v2215_v16 = vmul.f32 %v5329_v10, %v2023_v13 }
 0x3be   : > { %v3457_v59 = vpop.f32.mrf.mxu1  ;;  %v2026_v13 = vld [vmem:[#allocation2 + $0xa0] sm:$0xff] }
 0x3bf   : > { %v2533_v62 = vadd.f32 %v3456_v37, %v2212_v61  ;;  %v1850_v56 = vpop.xlane.xlu1 %1849  ;;  %v1847_v0 = vpop.xlane.xlu0 %1846  ;;  %v2024_v37 = vld [vmem:[#allocation2 + $0x90] sm:$0xff] }
 0x3c0   : > { %v1942_v23 = vadd.f32 %v1850_v56, %v1814_v21  ;;  %v3458_v45 = vpop.f32.mrf.mxu1  ;;  %v1941_v58 = vadd.f32 %v1847_v0, %v1813_v27  ;;  %v5831_v21 = vld [vmem:[#allocation46_spill] sm:$0xff] }
 0x3c1   : > { %2565 = vst.msk [vmem:[#allocation2 + $0x70] sm:$0xff] %vm681_vm2, %v2533_v62  ;;  %v3459_v14 = vadd.f32 %v3458_v45, %v3457_v59  ;;  %v1821_v59 = vmul.f32 %v5830_v32, %v1789_v53  ;;  %v1818_v27 = vmul.f32 %v5831_v21, %v1786_v46  ;;  %v1795_v46 = vld [vmem:[#allocation4 + $0x70] sm:$0xff] }
 0x3c2   : > { %1975 = vst.msk [vmem:[#allocation4 + $0x8] sm:$0xff] %vm1973_vm3, %v1942_v23  ;;  %1974 = vst.msk [vmem:[#allocation4] sm:$0xff] %vm1973_vm3, %v1941_v58  ;;  %v3460_v26 = vpop.f32.mrf.mxu1  ;;  %v2216_v58 = vmul.f32 %v5335_v43, %v2024_v37  ;;  %v2027_v37 = vld [vmem:[#allocation2 + $0xa8] sm:$0xff]  ;;  %v1827_v32 = vmul.f32 %v5101_v54, %v1795_v46 }
 0x3c3   : > { %v2534_v7 = vadd.f32 %v3459_v14, %v2213_v41  ;;  %v1859_v1 = vpop.xlane.xlu1 %1858  ;;  %v1853_v28 = vpop.xlane.xlu0 %1852  ;;  %v2025_v14 = vld [vmem:[#allocation2 + $0x98] sm:$0xff] }
 0x3c4   : > { %v1945_v57 = vadd.f32 %v1859_v1, %v1817_v5  ;;  %v3461_v38 = vpop.f32.mrf.mxu1  ;;  %v1943_v39 = vadd.f32 %v1853_v28, %v1815_v48  ;;  %v5833_v48 = vld [vmem:[#allocation47_spill] sm:$0xff] }
 0x3c5   : > { %2566 = vst.msk [vmem:[#allocation2 + $0x78] sm:$0xff] %vm681_vm2, %v2534_v7  ;;  %v3462_v42 = vadd.f32 %v3461_v38, %v3460_v26  ;;  %v5832_v26 = vld [vmem:[#allocation50_spill] sm:$0xff]  ;;  %v1820_v7 = vmul.f32 %v5833_v48, %v1788_v25 }
 0x3c6   : > { %1978 = vst.msk [vmem:[#allocation4 + $0x20] sm:$0xff] %vm1973_vm3, %v1945_v57  ;;  %1976 = vst.msk [vmem:[#allocation4 + $0x10] sm:$0xff] %vm1973_vm3, %v1943_v39  ;;  %v3463_v30 = vpop.f32.mrf.mxu1  ;;  %v1823_v5 = vmul.f32 %v5832_v26, %v1791_v17  ;;  %v1790_v57 = vld [vmem:[#allocation4 + $0x48] sm:$0xff] }
 0x3c7   : > { %v2535_v6 = vadd.f32 %v3462_v42, %v2214_v19  ;;  %v1865_v36 = vpop.xlane.xlu1 %1864  ;;  %v1856_v3 = vpop.xlane.xlu0 %1855  ;;  %v2217_v19 = vmul.f32 %v5333_v49, %v2025_v14  ;;  %v1794_v17 = vld [vmem:[#allocation4 + $0x68] sm:$0xff] }
 0x3c8   : > { %v1947_v12 = vadd.f32 %v1865_v36, %v1819_v60  ;;  %v3464_v52 = vpop.f32.mrf.mxu1  ;;  %v1944_v33 = vadd.f32 %v1856_v3, %v1816_v63  ;;  %v5834_v60 = vld [vmem:[#allocation52_spill] sm:$0xff]  ;;  %v5835_v63 = vld [vmem:[#allocation49_spill] sm:$0xff] }
 0x3c9   : > { %2567 = vst.msk [vmem:[#allocation2 + $0x80] sm:$0xff] %vm681_vm2, %v2535_v6  ;;  %v3465_v61 = vadd.f32 %v3464_v52, %v3463_v30  ;;  %v1825_v18 = vmul.f32 %v5834_v60, %v1793_v55  ;;  %v1822_v6 = vmul.f32 %v5835_v63, %v1790_v57  ;;  %v1801_v63 = vld [vmem:[#allocation4 + $0xa0] sm:$0xff] }
 0x3ca   : > { %1980 = vst.msk [vmem:[#allocation4 + $0x30] sm:$0xff] %vm1973_vm3, %v1947_v12  ;;  %1977 = vst.msk [vmem:[#allocation4 + $0x18] sm:$0xff] %vm1973_vm3, %v1944_v33  ;;  %v3466_v20 = vpop.f32.mrf.mxu1  ;;  %v1792_v12 = vld [vmem:[#allocation4 + $0x58] sm:$0xff] }
 0x3cb   : > { %v2536_v62 = vadd.f32 %v3465_v61, %v2215_v16  ;;  %v1871_v56 = vpop.xlane.xlu1 %1870  ;;  %v1862_v0 = vpop.xlane.xlu0 %1861  ;;  %v2218_v16 = vmul.f32 %v5339_v11, %v2026_v13 }
 0x3cc   : > { %v1949_v23 = vadd.f32 %v1871_v56, %v1821_v59  ;;  %v3467_v10 = vpop.f32.mrf.mxu1  ;;  %v1946_v45 = vadd.f32 %v1862_v0, %v1818_v27  ;;  %v5836_v59 = vld [vmem:[#allocation51_spill] sm:$0xff]  ;;  %v1797_v0 = vld [vmem:[#allocation4 + $0x80] sm:$0xff] }
 0x3cd   : > { %2568 = vst.msk [vmem:[#allocation2 + $0x88] sm:$0xff] %vm681_vm2, %v2536_v62  ;;  %v3468_v41 = vadd.f32 %v3467_v10, %v3466_v20  ;;  %v1824_v21 = vmul.f32 %v5836_v59, %v1792_v12  ;;  %v2219_v10 = vmul.f32 %v5337_v40, %v2027_v37  ;;  %v2030_v12 = vld [vmem:[#allocation2 + $0xc0] sm:$0xff]  ;;  %v1800_v59 = vld [vmem:[#allocation4 + $0x98] sm:$0xff] }
 0x3ce   : > { %1982 = vst.msk [vmem:[#allocation4 + $0x40] sm:$0xff] %vm1973_vm3, %v1949_v23  ;;  %1979 = vst.msk [vmem:[#allocation4 + $0x28] sm:$0xff] %vm1973_vm3, %v1946_v45  ;;  %v3469_v22 = vpop.f32.mrf.mxu1 }
 0x3cf   : > { %v2537_v1 = vadd.f32 %v3468_v41, %v2216_v58  ;;  %v1877_v28 = vpop.xlane.xlu1 %1876  ;;  %v1868_v51 = vpop.xlane.xlu0 %1867  ;;  %v2028_v58 = vld [vmem:[#allocation2 + $0xb0] sm:$0xff]  ;;  %v5837_v41 = vld [vmem:[#allocation57_spill] sm:$0xff] }
 0x3d0   : > { %v1951_v38 = vadd.f32 %v1877_v28, %v1823_v5  ;;  %v3470_v43 = vpop.f32.mrf.mxu1  ;;  %v1948_v39 = vadd.f32 %v1868_v51, %v1820_v7  ;;  %v1829_v14 = vmul.f32 %v5837_v41, %v1797_v0  ;;  %v1796_v28 = vld [vmem:[#allocation4 + $0x78] sm:$0xff]  ;;  %v2220_v57 = vmul.f32 %v5343_v24, %v2028_v58  ;;  %v2031_v0 = vld [vmem:[#allocation2 + $0xc8] sm:$0xff]  ;;  %v1805_v41 = vld [vmem:[#allocation4 + $0xc0] sm:$0xff] }
 0x3d1   : > { %2569 = vst.msk [vmem:[#allocation2 + $0x90] sm:$0xff] %vm681_vm2, %v2537_v1  ;;  %v3471_v42 = vadd.f32 %v3470_v43, %v3469_v22  ;;  %v5838_v22 = vld [vmem:[#allocation53_spill] sm:$0xff]  ;;  %v1799_v1 = vld [vmem:[#allocation4 + $0x90] sm:$0xff]  ;;  %v2029_v43 = vld [vmem:[#allocation2 + $0xb8] sm:$0xff] }
 0x3d2   : > { %1984 = vst.msk [vmem:[#allocation4 + $0x50] sm:$0xff] %vm1973_vm3, %v1951_v38  ;;  %1981 = vst.msk [vmem:[#allocation4 + $0x38] sm:$0xff] %vm1973_vm3, %v1948_v39  ;;  %v3472_v30 = vpop.f32.mrf.mxu1  ;;  %v1826_v26 = vmul.f32 %v5838_v22, %v1794_v17 }
 0x3d3   : > { %v2538_v36 = vadd.f32 %v3471_v42, %v2217_v19  ;;  %v1883_v3 = vpop.xlane.xlu1 %1882  ;;  %v1874_v53 = vpop.xlane.xlu0 %1873  ;;  %v1831_v19 = vmul.f32 %v5115_v15, %v1799_v1  ;;  %v5839_v42 = vld [vmem:[#allocation54_spill] sm:$0xff] }
 0x3d4   : > { %v1953_v52 = vadd.f32 %v1883_v3, %v1825_v18  ;;  %v3473_v49 = vpop.f32.mrf.mxu1  ;;  %v1950_v33 = vadd.f32 %v1874_v53, %v1822_v6  ;;  %v1828_v13 = vmul.f32 %v5839_v42, %v1796_v28  ;;  %v1798_v6 = vld [vmem:[#allocation4 + $0x88] sm:$0xff]  ;;  %v2221_v53 = vmul.f32 %v5341_v31, %v2029_v43  ;;  %v5844_v28 = vld [vmem:[#allocation65_spill] sm:$0xff] }
 0x3d5   : > { %2570 = vst.msk [vmem:[#allocation2 + $0x98] sm:$0xff] %vm681_vm2, %v2538_v36  ;;  %v3474_v61 = vadd.f32 %v3473_v49, %v3472_v30 }
 0x3d6   : > { %1986 = vst.msk [vmem:[#allocation4 + $0x60] sm:$0xff] %vm1973_vm3, %v1953_v52  ;;  %1983 = vst.msk [vmem:[#allocation4 + $0x48] sm:$0xff] %vm1973_vm3, %v1950_v33  ;;  %v3475_v20 = vpop.f32.mrf.mxu1  ;;  %v5840_v52 = vld [vmem:[#allocation60_spill] sm:$0xff]  ;;  %v5841_v33 = vld [vmem:[#allocation58_spill] sm:$0xff] }
 0x3d7   : > { %v2539_v27 = vadd.f32 %v3474_v61, %v2218_v16  ;;  %v1889_v62 = vpop.xlane.xlu1 %1888  ;;  %v1880_v56 = vpop.xlane.xlu0 %1879  ;;  %v1833_v49 = vmul.f32 %v5840_v52, %v1801_v63  ;;  %v1830_v16 = vmul.f32 %v5841_v33, %v1798_v6 }
 0x3d8   : > { %v1955_v25 = vadd.f32 %v1889_v62, %v1827_v32  ;;  %v3476_v11 = vpop.f32.mrf.mxu1  ;;  %v1952_v23 = vadd.f32 %v1880_v56, %v1824_v21  ;;  %v1803_v32 = vld [vmem:[#allocation4 + $0xb0] sm:$0xff]  ;;  %v2222_v62 = vmul.f32 %v5347_v44, %v2030_v12  ;;  %v1809_v12 = vld [vmem:[#allocation4 + $0xe0] sm:$0xff] }
 0x3d9   : > { %2571 = vst.msk [vmem:[#allocation2 + $0xa0] sm:$0xff] %vm681_vm2, %v2539_v27  ;;  %v3477_v45 = vadd.f32 %v3476_v11, %v3475_v20 }
 0x3da   : > { %1988 = vst.msk [vmem:[#allocation4 + $0x70] sm:$0xff] %vm1973_vm3, %v1955_v25  ;;  %1985 = vst.msk [vmem:[#allocation4 + $0x58] sm:$0xff] %vm1973_vm3, %v1952_v23  ;;  %v3478_v54 = vpop.f32.mrf.mxu1  ;;  %v5842_v25 = vld [vmem:[#allocation64_spill] sm:$0xff]  ;;  %v5843_v23 = vld [vmem:[#allocation59_spill] sm:$0xff] }
 0x3db   : > { %v2540_v5 = vadd.f32 %v3477_v45, %v2219_v10  ;;  %v1895_v48 = vpop.xlane.xlu1 %1894  ;;  %v1886_v7 = vpop.xlane.xlu0 %1885  ;;  %v1835_v11 = vmul.f32 %v5842_v25, %v1803_v32  ;;  %v1832_v10 = vmul.f32 %v5843_v23, %v1800_v59  ;;  %v1811_v25 = vld [vmem:[#allocation4 + $0xf0] sm:$0xff]  ;;  %v5848_v23 = vld [vmem:[#allocation66_spill] sm:$0xff] }
 0x3dc   : > { %v1957_v51 = vadd.f32 %v1895_v48, %v1829_v14  ;;  %v3479_v40 = vpop.f32.mrf.mxu1  ;;  %v1954_v55 = vadd.f32 %v1886_v7, %v1826_v26  ;;  %v1802_v14 = vld [vmem:[#allocation4 + $0xa8] sm:$0xff]  ;;  %v2032_v7 = vld [vmem:[#allocation2 + $0xd0] sm:$0xff] }
 0x3dd   : > { %2572 = vst.msk [vmem:[#allocation2 + $0xa8] sm:$0xff] %vm681_vm2, %v2540_v5  ;;  %v3480_v38 = vadd.f32 %v3479_v40, %v3478_v54  ;;  %v2223_v5 = vmul.f32 %v5345_v8, %v2031_v0  ;;  %v5845_v40 = vld [vmem:[#allocation63_spill] sm:$0xff] }
 0x3de   : > { %1990 = vst.msk [vmem:[#allocation4 + $0x80] sm:$0xff] %vm1973_vm3, %v1957_v51  ;;  %1987 = vst.msk [vmem:[#allocation4 + $0x68] sm:$0xff] %vm1973_vm3, %v1954_v55  ;;  %v3481_v39 = vpop.f32.mrf.mxu1  ;;  %v1837_v51 = vmul.f32 %v5844_v28, %v1805_v41  ;;  %v1834_v55 = vmul.f32 %v5845_v40, %v1802_v14 }
 0x3df   : > { %v2541_v30 = vadd.f32 %v3480_v38, %v2220_v57  ;;  %v1901_v60 = vpop.xlane.xlu1 %1900  ;;  %v1892_v18 = vpop.xlane.xlu0 %1891 }
 0x3e0   : > { %v1959_v36 = vadd.f32 %v1901_v60, %v1831_v19  ;;  %v3482_v24 = vpop.f32.mrf.mxu1  ;;  %v1956_v3 = vadd.f32 %v1892_v18, %v1828_v13  ;;  %v1804_v19 = vld [vmem:[#allocation4 + $0xb8] sm:$0xff] }
 0x3e1   : > { %2573 = vst.msk [vmem:[#allocation2 + $0xb0] sm:$0xff] %vm681_vm2, %v2541_v30  ;;  %v3483_v46 = vadd.f32 %v3482_v24, %v3481_v39  ;;  %v1807_v39 = vld [vmem:[#allocation4 + $0xd0] sm:$0xff]  ;;  %v2224_v30 = vmul.f32 %v5351_v4, %v2032_v7  ;;  %v2033_v18 = vld [vmem:[#allocation2 + $0xd8] sm:$0xff] }
 0x3e2   : > { %1992 = vst.msk [vmem:[#allocation4 + $0x90] sm:$0xff] %vm1973_vm3, %v1959_v36  ;;  %1989 = vst.msk [vmem:[#allocation4 + $0x78] sm:$0xff] %vm1973_vm3, %v1956_v3  ;;  %v3484_v15 = vpop.f32.mrf.mxu1  ;;  %v1839_v6 = vmul.f32 %v5249_v47, %v1807_v39  ;;  %v5846_v36 = vld [vmem:[#allocation9_spill] sm:$0xff]  ;;  %v2225_v33 = vmul.f32 %v5349_v9, %v2033_v18 }
 0x3e3   : > { %v2542_v61 = vadd.f32 %v3483_v46, %v2221_v53  ;;  %v1907_v37 = vpop.xlane.xlu1 %1906  ;;  %v1898_v20 = vpop.xlane.xlu0 %1897  ;;  %v1836_v24 = vmul.f32 %v5846_v36, %v1804_v19 }
 0x3e4   : > { %v1961_v21 = vadd.f32 %v1907_v37, %v1833_v49  ;;  %v3485_v31 = vpop.f32.mrf.mxu1  ;;  %v1958_v27 = vadd.f32 %v1898_v20, %v1830_v16  ;;  %v1841_v37 = vmul.f32 %v5262_v50, %v1809_v12  ;;  %v5847_v20 = vld [vmem:[#allocation10_spill] sm:$0xff] }
 0x3e5   : > { %2574 = vst.msk [vmem:[#allocation2 + $0xb8] sm:$0xff] %vm681_vm2, %v2542_v61  ;;  %v3486_v56 = vadd.f32 %v3485_v31, %v3484_v15  ;;  %v1806_v15 = vld [vmem:[#allocation4 + $0xc8] sm:$0xff]  ;;  %v2034_v61 = vld [vmem:[#allocation2 + $0xe0] sm:$0xff] }
 0x3e6   : > { %1994 = vst.msk [vmem:[#allocation4 + $0xa0] sm:$0xff] %vm1973_vm3, %v1961_v21  ;;  %1991 = vst.msk [vmem:[#allocation4 + $0x88] sm:$0xff] %vm1973_vm3, %v1958_v27  ;;  %v3487_v17 = vpop.f32.mrf.mxu1  ;;  %v1838_v32 = vmul.f32 %v5847_v20, %v1806_v15  ;;  %v1808_v27 = vld [vmem:[#allocation4 + $0xd8] sm:$0xff]  ;;  %v2226_v0 = vmul.f32 %v5356_v34, %v2034_v61 }
 0x3e7   : > { %v2543_v45 = vadd.f32 %v3486_v56, %v2222_v62  ;;  %v1913_v58 = vpop.xlane.xlu1 %1912  ;;  %v1904_v54 = vpop.xlane.xlu0 %1903 }
 0x3e8   : > { %v1963_v22 = vadd.f32 %v1913_v58, %v1835_v11  ;;  %v3488_v44 = vpop.f32.mrf.mxu1  ;;  %v1960_v26 = vadd.f32 %v1904_v54, %v1832_v10  ;;  %v2035_v11 = vld [vmem:[#allocation2 + $0xe8] sm:$0xff]  ;;  %v1840_v10 = vmul.f32 %v5848_v23, %v1808_v27 }
 0x3e9   : > { %2575 = vst.msk [vmem:[#allocation2 + $0xc0] sm:$0xff] %vm681_vm2, %v2543_v45  ;;  %v3489_v48 = vadd.f32 %v3488_v44, %v3487_v17  ;;  %v1810_v54 = vld [vmem:[#allocation4 + $0xe8] sm:$0xff]  ;;  %v2227_v34 = vmul.f32 %v5354_v35, %v2035_v11 }
 0x3ea   : > { %1996 = vst.msk [vmem:[#allocation4 + $0xb0] sm:$0xff] %vm1973_vm3, %v1963_v22  ;;  %1993 = vst.msk [vmem:[#allocation4 + $0x98] sm:$0xff] %vm1973_vm3, %v1960_v26  ;;  %v3490_v1 = vpop.f32.mrf.mxu1  ;;  %v1843_v22 = vmul.f32 %v5325_v29, %v1811_v25 }
 0x3eb   : > { %v2544_v57 = vadd.f32 %v3489_v48, %v2223_v5  ;;  %v1919_v38 = vpop.xlane.xlu1 %1918  ;;  %v1910_v43 = vpop.xlane.xlu0 %1909  ;;  %v5849_v48 = vld [vmem:[#allocation67_spill] sm:$0xff] }
 0x3ec   : > { %v1965_v42 = vadd.f32 %v1919_v38, %v1837_v51  ;;  %v3491_v8 = vpop.f32.mrf.mxu1  ;;  %v1962_v13 = vadd.f32 %v1910_v43, %v1834_v55  ;;  %v1842_v7 = vmul.f32 %v5849_v48, %v1810_v54  ;;  %v1812_v51 = vld [vmem:[#allocation4 + $0xf8] sm:$0xff] }
 0x3ed   : > { %2576 = vst.msk [vmem:[#allocation2 + $0xc8] sm:$0xff] %vm681_vm2, %v2544_v57  ;;  %v3492_v60 = vadd.f32 %v3491_v8, %v3490_v1  ;;  %v1844_v29 = vmul.f32 %v5319_v2, %v1812_v51  ;;  %v2036_v57 = vld [vmem:[#allocation2 + $0xf0] sm:$0xff]  ;;  %v2037_v8 = vld [vmem:[#allocation2 + $0xf8] sm:$0xff] }
 0x3ee   : > { %1998 = vst.msk [vmem:[#allocation4 + $0xc0] sm:$0xff] %vm1973_vm3, %v1965_v42  ;;  %1995 = vst.msk [vmem:[#allocation4 + $0xa8] sm:$0xff] %vm1973_vm3, %v1962_v13  ;;  %v3493_v63 = vpop.f32.mrf.mxu1 }
 0x3ef   : > { %v2545_v3 = vadd.f32 %v3492_v60, %v2224_v30  ;;  %v1925_v53 = vpop.xlane.xlu1 %1924  ;;  %v1916_v46 = vpop.xlane.xlu0 %1915 }
 0x3f0   : > { %v3494_v52 = vpop.f32.mrf.mxu1  ;;  %v1967_v4 = vadd.f32 %v1925_v53, %v1839_v6  ;;  %v1964_v49 = vadd.f32 %v1916_v46, %v1836_v24 }
 0x3f1   : > { %2577 = vst.msk [vmem:[#allocation2 + $0xd0] sm:$0xff] %vm681_vm2, %v2545_v3  ;;  %v3495_v16 = vadd.f32 %v3494_v52, %v3493_v63 }
 0x3f2   : > { %2000 = vst.msk [vmem:[#allocation4 + $0xd0] sm:$0xff] %vm1973_vm3, %v1967_v4  ;;  %1997 = vst.msk [vmem:[#allocation4 + $0xb8] sm:$0xff] %vm1973_vm3, %v1964_v49  ;;  %v3496_v47 = vpop.f32.mrf.mxu1 }
 0x3f3   : > { %v2546_v59 = vadd.f32 %v3495_v16, %v2225_v33  ;;  %v1931_v21 = vpop.xlane.xlu1 %1930  ;;  %v1922_v31 = vpop.xlane.xlu0 %1921 }
 0x3f4   : > { %v3497_v62 = vpop.f32.mrf.mxu1  ;;  %v1969_v56 = vadd.f32 %v1931_v21, %v1841_v37  ;;  %v1966_v9 = vadd.f32 %v1922_v31, %v1838_v32 }
 0x3f5   : > { %2578 = vst.msk [vmem:[#allocation2 + $0xd8] sm:$0xff] %vm681_vm2, %v2546_v59  ;;  %v3498_v17 = vadd.f32 %v3497_v62, %v3496_v47 }
 0x3f6   : > { %2002 = vst.msk [vmem:[#allocation4 + $0xe0] sm:$0xff] %vm1973_vm3, %v1969_v56  ;;  %1999 = vst.msk [vmem:[#allocation4 + $0xc8] sm:$0xff] %vm1973_vm3, %v1966_v9  ;;  %v3499_v50 = vpop.f32.mrf.mxu1 }
 0x3f7   : > { %v2547_v45 = vadd.f32 %v3498_v17, %v2226_v0  ;;  %v1928_v58 = vpop.xlane.xlu0 %1927 }
 0x3f8   : > { %v3500_v41 = vpop.f32.mrf.mxu1  ;;  %v1968_v14 = vadd.f32 %v1928_v58, %v1840_v10 }
 0x3f9   : > { %2579 = vst.msk [vmem:[#allocation2 + $0xe0] sm:$0xff] %vm681_vm2, %v2547_v45  ;;  %v3501_v44 = vadd.f32 %v3500_v41, %v3499_v50  ;;  %v1937_v26 = vpop.xlane.xlu1 %1936 }
 0x3fa   : > { %2001 = vst.msk [vmem:[#allocation4 + $0xd8] sm:$0xff] %vm1973_vm3, %v1968_v14  ;;  %v1971_v5 = vadd.f32 %v1937_v26, %v1843_v22 }
 0x3fb   : > { %v2548_v1 = vadd.f32 %v3501_v44, %v2227_v34  ;;  %v1934_v28 = vpop.xlane.xlu0 %1933 }
 0x3fc   : > { %2004 = vst.msk [vmem:[#allocation4 + $0xf0] sm:$0xff] %vm1973_vm3, %v1971_v5  ;;  %v1970_v40 = vadd.f32 %v1934_v28, %v1842_v7 }
 0x3fd   : > { %2580 = vst.msk [vmem:[#allocation2 + $0xe8] sm:$0xff] %vm681_vm2, %v2548_v1  ;;  %v2196_v13 = vpop.permute.xlu1 %2195 }
 0x3fe   : > { %2003 = vst.msk [vmem:[#allocation4 + $0xe8] sm:$0xff] %vm1973_vm3, %v1970_v40  ;;  %v2229_v63 = vmul.f32 %v2196_v13, %v2037_v8 }
 0x3ff   : > { %v1940_v35 = vpop.xlane.xlu0 %1939 }
 0x400   : > { %v1972_v55 = vadd.f32 %v1940_v35, %v1844_v29 }
 0x402   : > { %2005 = vst.msk [vmem:[#allocation4 + $0xf8] sm:$0xff] %vm1973_vm3, %v1972_v55 }
 0x407   : > { %v2191_v38 = vpop.permute.xlu0 %2190 }
 0x408   : > { %v2228_v19 = vmul.f32 %v2191_v38, %v2036_v57 }
 0x431   : > { %v3502_v43 = vpop.f32.mrf.mxu1 }
 0x433   : > { %v3503_v39 = vpop.f32.mrf.mxu1 }
 0x434   : > { %v3504_v42 = vadd.f32 %v3503_v39, %v3502_v43 }
 0x435   : > { %v3505_v30 = vpop.f32.mrf.mxu1 }
 0x436   : > { %v2549_v60 = vadd.f32 %v3504_v42, %v2228_v19 }
 0x437   : > { %v3506_v18 = vpop.f32.mrf.mxu1 }
 0x438   : > { %2581 = vst.msk [vmem:[#allocation2 + $0xf0] sm:$0xff] %vm681_vm2, %v2549_v60  ;;  %v3507_v6 = vadd.f32 %v3506_v18, %v3505_v30  ;;  %2618 = sbr.rel (%p3281_p7) target bundleno = 1291 (0x50b), region = 40 }
 0x43a   : > { %v2550_v2 = vadd.f32 %v3507_v6, %v2229_v63 }
 0x43c   : > { %2582 = vst.msk [vmem:[#allocation2 + $0xf8] sm:$0xff] %vm681_vm2, %v2550_v2 }
 0x43d   : > { %v2653_v36 = vld [vmem:[#allocation4 + $0x10] sm:$0xff]  ;;  %v2651_v24 = vld [vmem:[#allocation4] sm:$0xff]  ;;  %v3941_v3 = vmov 0   ;;  %v2654_v53 = vld [vmem:[#allocation4 + $0x18] sm:$0xff]  ;;  %vm3035_vm2 = vcmask 125952  }
 0x43e   : > { %3805 = vset.pattern.permute.xlu1 %v3941_v3  ;;  %3804 = vset.pattern.permute.xlu0 %v3941_v3  ;;  %v2652_v46 = vld [vmem:[#allocation4 + $0x8] sm:$0xff]  ;;  %v2655_v15 = vld [vmem:[#allocation4 + $0x20] sm:$0xff]  ;;  %v2658_v52 = vld [vmem:[#allocation4 + $0x38] sm:$0xff] }
 0x43f   : > { %2695 = vperm.xlu1 %3805, %v2653_v36   ;;  %2685 = vperm.xlu0 %3804, %v2651_v24   ;;  %v2656_v12 = vld [vmem:[#allocation4 + $0x28] sm:$0xff]  ;;  %v2657_v4 = vld [vmem:[#allocation4 + $0x30] sm:$0xff]  ;;  %v2659_v33 = vld [vmem:[#allocation4 + $0x40] sm:$0xff] }
 0x440   : > { %v2660_v49 = vld [vmem:[#allocation4 + $0x48] sm:$0xff]  ;;  %v2662_v16 = vld [vmem:[#allocation4 + $0x58] sm:$0xff]  ;;  %v2661_v61 = vld [vmem:[#allocation4 + $0x50] sm:$0xff] }
 0x441   : > { %v2664_v47 = vld [vmem:[#allocation4 + $0x68] sm:$0xff]  ;;  %v2663_v37 = vld [vmem:[#allocation4 + $0x60] sm:$0xff]  ;;  %v2666_v20 = vld [vmem:[#allocation4 + $0x78] sm:$0xff] }
 0x442   : > { %v2665_v32 = vld [vmem:[#allocation4 + $0x70] sm:$0xff]  ;;  %v2668_v59 = vld [vmem:[#allocation4 + $0x88] sm:$0xff]  ;;  %v2667_v21 = vld [vmem:[#allocation4 + $0x80] sm:$0xff] }
 0x443   : > { %2700 = vperm.xlu1 %3805, %v2654_v53   ;;  %2690 = vperm.xlu0 %3804, %v2652_v46   ;;  %v2670_v31 = vld [vmem:[#allocation4 + $0x98] sm:$0xff]  ;;  %v2669_v27 = vld [vmem:[#allocation4 + $0x90] sm:$0xff]  ;;  %v2672_v62 = vld [vmem:[#allocation4 + $0xa8] sm:$0xff] }
 0x444   : > { %v2671_v56 = vld [vmem:[#allocation4 + $0xa0] sm:$0xff]  ;;  %v2674_v9 = vld [vmem:[#allocation4 + $0xb8] sm:$0xff]  ;;  %v2673_v0 = vld [vmem:[#allocation4 + $0xb0] sm:$0xff] }
 0x445   : > { %v2676_v17 = vld [vmem:[#allocation4 + $0xc8] sm:$0xff]  ;;  %v2675_v25 = vld [vmem:[#allocation4 + $0xc0] sm:$0xff]  ;;  %v2678_v11 = vld [vmem:[#allocation4 + $0xd8] sm:$0xff] }
 0x446   : > { %v2677_v50 = vld [vmem:[#allocation4 + $0xd0] sm:$0xff]  ;;  %v2680_v23 = vld [vmem:[#allocation4 + $0xe8] sm:$0xff]  ;;  %v2679_v10 = vld [vmem:[#allocation4 + $0xe0] sm:$0xff] }
 0x447   : > { %2710 = vperm.xlu1 %3805, %v2656_v12   ;;  %2705 = vperm.xlu0 %3804, %v2655_v15   ;;  %v2682_v45 = vld [vmem:[#allocation4 + $0xf8] sm:$0xff]  ;;  %v2681_v58 = vld [vmem:[#allocation4 + $0xf0] sm:$0xff]  ;;  %v2619_v7 = vld [vmem:[#allocation2] sm:$0xff] }
 0x448   : > { %v2621_v26 = vld [vmem:[#allocation2 + $0x10] sm:$0xff]  ;;  %v2622_v29 = vld [vmem:[#allocation2 + $0x18] sm:$0xff]  ;;  %v2620_v38 = vld [vmem:[#allocation2 + $0x8] sm:$0xff] }
 0x449   : > { %v2624_v13 = vld [vmem:[#allocation2 + $0x28] sm:$0xff]  ;;  %v2623_v63 = vld [vmem:[#allocation2 + $0x20] sm:$0xff]  ;;  %v2626_v53 = vld [vmem:[#allocation2 + $0x38] sm:$0xff] }
 0x44b   : > { %2720 = vperm.xlu1 %3805, %v2658_v52   ;;  %2715 = vperm.xlu0 %3804, %v2657_v4   ;;  %v2625_v52 = vld [vmem:[#allocation2 + $0x30] sm:$0xff] }
 0x44f   : > { %2730 = vperm.xlu1 %3805, %v2660_v49   ;;  %2725 = vperm.xlu0 %3804, %v2659_v33  }
 0x453   : > { %2740 = vperm.xlu1 %3805, %v2662_v16   ;;  %2735 = vperm.xlu0 %3804, %v2661_v61  }
 0x457   : > { %2750 = vperm.xlu1 %3805, %v2664_v47   ;;  %2745 = vperm.xlu0 %3804, %v2663_v37   ;;  %v2628_v47 = vld [vmem:[#allocation2 + $0x48] sm:$0xff] }
 0x45b   : > { %2760 = vperm.xlu1 %3805, %v2666_v20   ;;  %2755 = vperm.xlu0 %3804, %v2665_v32  }
 0x45f   : > { %2770 = vperm.xlu1 %3805, %v2668_v59   ;;  %2765 = vperm.xlu0 %3804, %v2667_v21   ;;  %v2627_v59 = vld [vmem:[#allocation2 + $0x40] sm:$0xff] }
 0x463   : > { %2780 = vperm.xlu1 %3805, %v2670_v31   ;;  %2775 = vperm.xlu0 %3804, %v2669_v27  }
 0x467   : > { %2790 = vperm.xlu1 %3805, %v2672_v62   ;;  %2785 = vperm.xlu0 %3804, %v2671_v56  }
 0x46b   : > { %2800 = vperm.xlu1 %3805, %v2674_v9   ;;  %2795 = vperm.xlu0 %3804, %v2673_v0   ;;  %v2630_v9 = vld [vmem:[#allocation2 + $0x58] sm:$0xff] }
 0x46f   : > { %2810 = vperm.xlu1 %3805, %v2676_v17   ;;  %2805 = vperm.xlu0 %3804, %v2675_v25  }
 0x473   : > { %2820 = vperm.xlu1 %3805, %v2678_v11   ;;  %2815 = vperm.xlu0 %3804, %v2677_v50   ;;  %v2629_v11 = vld [vmem:[#allocation2 + $0x50] sm:$0xff] }
 0x477   : > { %2830 = vperm.xlu1 %3805, %v2680_v23   ;;  %2825 = vperm.xlu0 %3804, %v2679_v10  }
 0x47b   : > { %2840 = vperm.xlu1 %3805, %v2682_v45   ;;  %2835 = vperm.xlu0 %3804, %v2681_v58  }
 0x4ba   : > { %v2696_v54 = vpop.permute.xlu1 %2695  ;;  %v2686_v41 = vpop.permute.xlu0 %2685 }
 0x4bb   : > { %3806 = vrcp.f32 %v2696_v54  ;;  %v2632_v54 = vld [vmem:[#allocation2 + $0x68] sm:$0xff] }
 0x4bc   : > { %3808 = vrcp.f32 %v2686_v41 }
 0x4be   : > { %v2701_v14 = vpop.permute.xlu1 %2700  ;;  %v2691_v22 = vpop.permute.xlu0 %2690 }
 0x4bf   : > { %3810 = vrcp.f32 %v2701_v14 }
 0x4c0   : > { %3812 = vrcp.f32 %v2691_v22 }
 0x4c2   : > { %v2711_v34 = vpop.permute.xlu1 %2710  ;;  %v2706_v44 = vpop.permute.xlu0 %2705 }
 0x4c3   : > { %3814 = vrcp.f32 %v2711_v34  ;;  %v2631_v34 = vld [vmem:[#allocation2 + $0x60] sm:$0xff] }
 0x4c4   : > { %3816 = vrcp.f32 %v2706_v44 }
 0x4c6   : > { %v2721_v5 = vpop.permute.xlu1 %2720  ;;  %v2716_v48 = vpop.permute.xlu0 %2715 }
 0x4c7   : > { %3818 = vrcp.f32 %v2721_v5 }
 0x4c8   : > { %v3807_v1 = vpop.eup %3806  ;;  %3820 = vrcp.f32 %v2716_v48 }
 0x4c9   : > { %v3809_v28 = vpop.eup %3808  ;;  %v2848_v51 = vmul.f32 %v3807_v1, %v2621_v26  ;;  %v2634_v1 = vld [vmem:[#allocation2 + $0x78] sm:$0xff] }
 0x4ca   : > { %v2844_v40 = vmul.f32 %v3809_v28, %v2619_v7  ;;  %v2731_v35 = vpop.permute.xlu1 %2730  ;;  %v2726_v55 = vpop.permute.xlu0 %2725 }
 0x4cb   : > { %v3318_v57 = vpack.c.bf16 %v2848_v51, %v2848_v51  ;;  %3822 = vrcp.f32 %v2731_v35 }
 0x4cc   : > { %v3811_v43 = vpop.eup %3810  ;;  %v3316_v39 = vpack.c.bf16 %v2844_v40, %v2844_v40  ;;  %3824 = vrcp.f32 %v2726_v55 }
 0x4cd   : > { %v3813_v19 = vpop.eup %3812  ;;  %3038 = vst.msk [vmem:[%s4030_s21 + $0x8] sm:$0xf] %vm3035_vm2, %v3318_v57  ;;  %v2850_v42 = vmul.f32 %v3811_v43, %v2622_v29  ;;  %v2633_v29 = vld [vmem:[#allocation2 + $0x70] sm:$0xff] }
 0x4ce   : > { %3036 = vst.msk [vmem:[%s4030_s21] sm:$0xf] %vm3035_vm2, %v3316_v39  ;;  %v2846_v8 = vmul.f32 %v3813_v19, %v2620_v38  ;;  %v2741_v30 = vpop.permute.xlu1 %2740  ;;  %v2736_v60 = vpop.permute.xlu0 %2735  ;;  %v2636_v39 = vld [vmem:[#allocation2 + $0x88] sm:$0xff] }
 0x4cf   : > { %v3319_v18 = vpack.c.bf16 %v2850_v42, %v2850_v42  ;;  %3826 = vrcp.f32 %v2741_v30 }
 0x4d0   : > { %v3815_v6 = vpop.eup %3814  ;;  %v3317_v2 = vpack.c.bf16 %v2846_v8, %v2846_v8  ;;  %3828 = vrcp.f32 %v2736_v60 }
 0x4d1   : > { %v3817_v36 = vpop.eup %3816  ;;  %3039 = vst.msk [vmem:[%s4030_s21 + $0xc] sm:$0xf] %vm3035_vm2, %v3319_v18  ;;  %v2854_v24 = vmul.f32 %v3815_v6, %v2624_v13  ;;  %v2635_v13 = vld [vmem:[#allocation2 + $0x80] sm:$0xff] }
 0x4d2   : > { %3037 = vst.msk [vmem:[%s4030_s21 + $0x4] sm:$0xf] %vm3035_vm2, %v3317_v2  ;;  %v2852_v3 = vmul.f32 %v3817_v36, %v2623_v63  ;;  %v2751_v46 = vpop.permute.xlu1 %2750  ;;  %v2746_v12 = vpop.permute.xlu0 %2745  ;;  %v2638_v2 = vld [vmem:[#allocation2 + $0x98] sm:$0xff] }
 0x4d3   : > { %v3321_v15 = vpack.c.bf16 %v2854_v24, %v2854_v24  ;;  %3830 = vrcp.f32 %v2751_v46 }
 0x4d4   : > { %v3819_v4 = vpop.eup %3818  ;;  %v3320_v49 = vpack.c.bf16 %v2852_v3, %v2852_v3  ;;  %3832 = vrcp.f32 %v2746_v12 }
 0x4d5   : > { %v3821_v33 = vpop.eup %3820  ;;  %3041 = vst.msk [vmem:[%s4030_s21 + $0x14] sm:$0xf] %vm3035_vm2, %v3321_v15  ;;  %v2858_v16 = vmul.f32 %v3819_v4, %v2626_v53  ;;  %v2637_v53 = vld [vmem:[#allocation2 + $0x90] sm:$0xff] }
 0x4d6   : > { %3040 = vst.msk [vmem:[%s4030_s21 + $0x10] sm:$0xf] %vm3035_vm2, %v3320_v49  ;;  %v2856_v61 = vmul.f32 %v3821_v33, %v2625_v52  ;;  %v2761_v37 = vpop.permute.xlu1 %2760  ;;  %v2756_v20 = vpop.permute.xlu0 %2755  ;;  %v2640_v49 = vld [vmem:[#allocation2 + $0xa8] sm:$0xff] }
 0x4d7   : > { %v3323_v32 = vpack.c.bf16 %v2858_v16, %v2858_v16  ;;  %3834 = vrcp.f32 %v2761_v37 }
 0x4d8   : > { %v3823_v21 = vpop.eup %3822  ;;  %v3322_v31 = vpack.c.bf16 %v2856_v61, %v2856_v61  ;;  %3836 = vrcp.f32 %v2756_v20 }
 0x4d9   : > { %v3825_v27 = vpop.eup %3824  ;;  %3043 = vst.msk [vmem:[%s4030_s21 + $0x1c] sm:$0xf] %vm3035_vm2, %v3323_v32  ;;  %v2862_v62 = vmul.f32 %v3823_v21, %v2628_v47  ;;  %v2639_v47 = vld [vmem:[#allocation2 + $0xa0] sm:$0xff] }
 0x4da   : > { %3042 = vst.msk [vmem:[%s4030_s21 + $0x18] sm:$0xf] %vm3035_vm2, %v3322_v31  ;;  %v2860_v56 = vmul.f32 %v3825_v27, %v2627_v59  ;;  %v2771_v0 = vpop.permute.xlu1 %2770  ;;  %v2766_v17 = vpop.permute.xlu0 %2765  ;;  %v2642_v31 = vld [vmem:[#allocation2 + $0xb8] sm:$0xff] }
 0x4db   : > { %v3325_v25 = vpack.c.bf16 %v2862_v62, %v2862_v62  ;;  %3838 = vrcp.f32 %v2771_v0 }
 0x4dc   : > { %v3827_v50 = vpop.eup %3826  ;;  %v3324_v23 = vpack.c.bf16 %v2860_v56, %v2860_v56  ;;  %3840 = vrcp.f32 %v2766_v17 }
 0x4dd   : > { %v3829_v10 = vpop.eup %3828  ;;  %3045 = vst.msk [vmem:[%s4030_s21 + $0x24] sm:$0xf] %vm3035_vm2, %v3325_v25  ;;  %v2866_v45 = vmul.f32 %v3827_v50, %v2630_v9  ;;  %v2641_v9 = vld [vmem:[#allocation2 + $0xb0] sm:$0xff] }
 0x4de   : > { %3044 = vst.msk [vmem:[%s4030_s21 + $0x20] sm:$0xf] %vm3035_vm2, %v3324_v23  ;;  %v2864_v58 = vmul.f32 %v3829_v10, %v2629_v11  ;;  %v2781_v41 = vpop.permute.xlu1 %2780  ;;  %v2776_v14 = vpop.permute.xlu0 %2775  ;;  %v2644_v23 = vld [vmem:[#allocation2 + $0xc8] sm:$0xff] }
 0x4df   : > { %v3327_v22 = vpack.c.bf16 %v2866_v45, %v2866_v45  ;;  %3842 = vrcp.f32 %v2781_v41 }
 0x4e0   : > { %v3831_v44 = vpop.eup %3830  ;;  %v3326_v26 = vpack.c.bf16 %v2864_v58, %v2864_v58  ;;  %3844 = vrcp.f32 %v2776_v14 }
 0x4e1   : > { %v3833_v5 = vpop.eup %3832  ;;  %3047 = vst.msk [vmem:[%s4030_s21 + $0x2c] sm:$0xf] %vm3035_vm2, %v3327_v22  ;;  %v2870_v48 = vmul.f32 %v3831_v44, %v2632_v54  ;;  %v2643_v54 = vld [vmem:[#allocation2 + $0xc0] sm:$0xff] }
 0x4e2   : > { %3046 = vst.msk [vmem:[%s4030_s21 + $0x28] sm:$0xf] %vm3035_vm2, %v3326_v26  ;;  %v2868_v7 = vmul.f32 %v3833_v5, %v2631_v34  ;;  %v2791_v28 = vpop.permute.xlu1 %2790  ;;  %v2786_v51 = vpop.permute.xlu0 %2785  ;;  %v2646_v26 = vld [vmem:[#allocation2 + $0xd8] sm:$0xff] }
 0x4e3   : > { %v3329_v40 = vpack.c.bf16 %v2870_v48, %v2870_v48  ;;  %3846 = vrcp.f32 %v2791_v28  ;;  %v2645_v48 = vld [vmem:[#allocation2 + $0xd0] sm:$0xff] }
 0x4e4   : > { %v3835_v35 = vpop.eup %3834  ;;  %v3328_v55 = vpack.c.bf16 %v2868_v7, %v2868_v7  ;;  %3848 = vrcp.f32 %v2786_v51 }
 0x4e5   : > { %v3837_v57 = vpop.eup %3836  ;;  %3049 = vst.msk [vmem:[%s4030_s21 + $0x34] sm:$0xf] %vm3035_vm2, %v3329_v40  ;;  %v2874_v38 = vmul.f32 %v3835_v35, %v2634_v1 }
 0x4e6   : > { %3048 = vst.msk [vmem:[%s4030_s21 + $0x30] sm:$0xf] %vm3035_vm2, %v3328_v55  ;;  %v2872_v43 = vmul.f32 %v3837_v57, %v2633_v29  ;;  %v2801_v19 = vpop.permute.xlu1 %2800  ;;  %v2796_v42 = vpop.permute.xlu0 %2795  ;;  %v2648_v29 = vld [vmem:[#allocation2 + $0xe8] sm:$0xff]  ;;  %v2647_v55 = vld [vmem:[#allocation2 + $0xe0] sm:$0xff] }
 0x4e7   : > { %v3331_v8 = vpack.c.bf16 %v2874_v38, %v2874_v38  ;;  %3850 = vrcp.f32 %v2801_v19 }
 0x4e8   : > { %v3839_v30 = vpop.eup %3838  ;;  %v3330_v60 = vpack.c.bf16 %v2872_v43, %v2872_v43  ;;  %3852 = vrcp.f32 %v2796_v42  ;;  %v2650_v42 = vld [vmem:[#allocation2 + $0xf8] sm:$0xff] }
 0x4e9   : > { %v3841_v18 = vpop.eup %3840  ;;  %3051 = vst.msk [vmem:[%s4030_s21 + $0x3c] sm:$0xf] %vm3035_vm2, %v3331_v8  ;;  %v2878_v63 = vmul.f32 %v3839_v30, %v2636_v39 }
 0x4ea   : > { %3050 = vst.msk [vmem:[%s4030_s21 + $0x38] sm:$0xf] %vm3035_vm2, %v3330_v60  ;;  %v2876_v6 = vmul.f32 %v3841_v18, %v2635_v13  ;;  %v2811_v36 = vpop.permute.xlu1 %2810  ;;  %v2806_v24 = vpop.permute.xlu0 %2805  ;;  %v2649_v13 = vld [vmem:[#allocation2 + $0xf0] sm:$0xff] }
 0x4eb   : > { %v3333_v3 = vpack.c.bf16 %v2878_v63, %v2878_v63  ;;  %3854 = vrcp.f32 %v2811_v36 }
 0x4ec   : > { %v3843_v46 = vpop.eup %3842  ;;  %v3332_v12 = vpack.c.bf16 %v2876_v6, %v2876_v6  ;;  %3856 = vrcp.f32 %v2806_v24 }
 0x4ed   : > { %v3845_v15 = vpop.eup %3844  ;;  %3053 = vst.msk [vmem:[%s4030_s21 + $0x44] sm:$0xf] %vm3035_vm2, %v3333_v3  ;;  %v2882_v52 = vmul.f32 %v3843_v46, %v2638_v2 }
 0x4ee   : > { %3052 = vst.msk [vmem:[%s4030_s21 + $0x40] sm:$0xf] %vm3035_vm2, %v3332_v12  ;;  %v2880_v4 = vmul.f32 %v3845_v15, %v2637_v53  ;;  %v2821_v33 = vpop.permute.xlu1 %2820  ;;  %v2816_v16 = vpop.permute.xlu0 %2815 }
 0x4ef   : > { %v3335_v61 = vpack.c.bf16 %v2882_v52, %v2882_v52  ;;  %3858 = vrcp.f32 %v2821_v33 }
 0x4f0   : > { %v3847_v37 = vpop.eup %3846  ;;  %v3334_v20 = vpack.c.bf16 %v2880_v4, %v2880_v4  ;;  %3860 = vrcp.f32 %v2816_v16 }
 0x4f1   : > { %v3849_v32 = vpop.eup %3848  ;;  %3055 = vst.msk [vmem:[%s4030_s21 + $0x4c] sm:$0xf] %vm3035_vm2, %v3335_v61  ;;  %v2886_v59 = vmul.f32 %v3847_v37, %v2640_v49 }
 0x4f2   : > { %3054 = vst.msk [vmem:[%s4030_s21 + $0x48] sm:$0xf] %vm3035_vm2, %v3334_v20  ;;  %v2884_v21 = vmul.f32 %v3849_v32, %v2639_v47  ;;  %v2831_v27 = vpop.permute.xlu1 %2830  ;;  %v2826_v62 = vpop.permute.xlu0 %2825 }
 0x4f3   : > { %v3337_v56 = vpack.c.bf16 %v2886_v59, %v2886_v59  ;;  %3862 = vrcp.f32 %v2831_v27 }
 0x4f4   : > { %v3851_v0 = vpop.eup %3850  ;;  %v3336_v17 = vpack.c.bf16 %v2884_v21, %v2884_v21  ;;  %3864 = vrcp.f32 %v2826_v62 }
 0x4f5   : > { %v3853_v25 = vpop.eup %3852  ;;  %3057 = vst.msk [vmem:[%s4030_s21 + $0x54] sm:$0xf] %vm3035_vm2, %v3337_v56  ;;  %v2890_v11 = vmul.f32 %v3851_v0, %v2642_v31 }
 0x4f6   : > { %3056 = vst.msk [vmem:[%s4030_s21 + $0x50] sm:$0xf] %vm3035_vm2, %v3336_v17  ;;  %v2888_v50 = vmul.f32 %v3853_v25, %v2641_v9  ;;  %v2841_v10 = vpop.permute.xlu1 %2840  ;;  %v2836_v45 = vpop.permute.xlu0 %2835 }
 0x4f7   : > { %v3339_v58 = vpack.c.bf16 %v2890_v11, %v2890_v11  ;;  %3866 = vrcp.f32 %v2841_v10 }
 0x4f8   : > { %v3855_v41 = vpop.eup %3854  ;;  %v3338_v14 = vpack.c.bf16 %v2888_v50, %v2888_v50  ;;  %3868 = vrcp.f32 %v2836_v45 }
 0x4f9   : > { %v3857_v22 = vpop.eup %3856  ;;  %3059 = vst.msk [vmem:[%s4030_s21 + $0x5c] sm:$0xf] %vm3035_vm2, %v3339_v58  ;;  %v2894_v34 = vmul.f32 %v3855_v41, %v2644_v23 }
 0x4fa   : > { %3058 = vst.msk [vmem:[%s4030_s21 + $0x58] sm:$0xf] %vm3035_vm2, %v3338_v14  ;;  %v2892_v44 = vmul.f32 %v3857_v22, %v2643_v54 }
 0x4fb   : > { %v3341_v5 = vpack.c.bf16 %v2894_v34, %v2894_v34 }
 0x4fc   : > { %v3859_v7 = vpop.eup %3858  ;;  %v3340_v1 = vpack.c.bf16 %v2892_v44, %v2892_v44 }
 0x4fd   : > { %v3861_v28 = vpop.eup %3860  ;;  %3061 = vst.msk [vmem:[%s4030_s21 + $0x64] sm:$0xf] %vm3035_vm2, %v3341_v5  ;;  %v2898_v51 = vmul.f32 %v3859_v7, %v2646_v26 }
 0x4fe   : > { %3060 = vst.msk [vmem:[%s4030_s21 + $0x60] sm:$0xf] %vm3035_vm2, %v3340_v1  ;;  %v2896_v40 = vmul.f32 %v3861_v28, %v2645_v48 }
 0x4ff   : > { %v3343_v35 = vpack.c.bf16 %v2898_v51, %v2898_v51 }
 0x500   : > { %v3863_v57 = vpop.eup %3862  ;;  %v3342_v38 = vpack.c.bf16 %v2896_v40, %v2896_v40 }
 0x501   : > { %v3865_v43 = vpop.eup %3864  ;;  %3063 = vst.msk [vmem:[%s4030_s21 + $0x6c] sm:$0xf] %vm3035_vm2, %v3343_v35  ;;  %v2902_v39 = vmul.f32 %v3863_v57, %v2648_v29 }
 0x502   : > { %3062 = vst.msk [vmem:[%s4030_s21 + $0x68] sm:$0xf] %vm3035_vm2, %v3342_v38  ;;  %v2900_v19 = vmul.f32 %v3865_v43, %v2647_v55 }
 0x503   : > { %v3345_v8 = vpack.c.bf16 %v2902_v39, %v2902_v39 }
 0x504   : > { %v3867_v30 = vpop.eup %3866  ;;  %v3344_v60 = vpack.c.bf16 %v2900_v19, %v2900_v19 }
 0x505   : > { %v3869_v18 = vpop.eup %3868  ;;  %3065 = vst.msk [vmem:[%s4030_s21 + $0x74] sm:$0xf] %vm3035_vm2, %v3345_v8  ;;  %v2906_v63 = vmul.f32 %v3867_v30, %v2650_v42 }
 0x506   : > { %3064 = vst.msk [vmem:[%s4030_s21 + $0x70] sm:$0xf] %vm3035_vm2, %v3344_v60  ;;  %v2904_v6 = vmul.f32 %v3869_v18, %v2649_v13 }
 0x507   : > { %v3347_v2 = vpack.c.bf16 %v2906_v63, %v2906_v63 }
 0x508   : > { %v3346_v36 = vpack.c.bf16 %v2904_v6, %v2904_v6 }
 0x509   : > { %3067 = vst.msk [vmem:[%s4030_s21 + $0x7c] sm:$0xf] %vm3035_vm2, %v3347_v2 }
 0x50a   : > { %3066 = vst.msk [vmem:[%s4030_s21 + $0x78] sm:$0xf] %vm3035_vm2, %v3346_v36 }
 0x50b PF: > { %s25_s30 = sadd.s32 1, %s3934_s30   ;;  %s5850_s1 = smov %s3926_s28 }
 0x50c   : > { %p22_p8 = scmp.ge.s32.totalorder %s25_s30, 26   ;;  %s5851_s27 = smov %s3930_s29 }
 0x50d   : > { %s5852_s28 = smov %s5855_s6  ;;  %s5853_s29 = smov %s5859_s7 }
 0x50e   :  { %24 = sbr.rel (!%p22_p8) target bundleno = 28 (0x1c), region = 76 }

// kernel: causal_self_attention_forward.5
= control target key start
LH: loop header
LB: loop body
LE: loop exit
PB: predicated region body
PF: predicated region fallthrough
CT: control target
= control target key end

     0   :  { %s1212_s12 = smov 0   ;;  %s1510_s0 = inlined_call_operand.vmem [shape: bf16[1024,64], index: 0, kind: input, shape index: {}]   ;;  %s1511_s1 = inlined_call_operand.vmem [shape: bf16[64,64], index: 1, kind: input, shape index: {}]   ;;  %s1512_s2 = inlined_call_operand.vmem [shape: f32[1,64], index: 2, kind: input, shape index: {}]   ;;  %s1513_s3 = inlined_call_operand.vmem [shape: f32[1024,64], index: 3, kind: output, shape index: {}]  }
   0x1 LB: > { %s944_s13 = sadd.s32 4294967295, %s1190_s12   ;;  %p948_p0 = scmp.ge.s32.totalorder %s1190_s12, 1  ;;  %s1190_s12 = sphi %s1212_s12, %s13_s12  }
   0x2   : > { %p138_p1 = scmp.lt.s32.totalorder %s1190_s12, 3 }
   0x4   : > { %p139_p2 = pnand %p948_p0, %p138_p1 }
   0x5   : > { %s949_s16 = sshll.u32 (!%p139_p2), %s944_s13, 6 }
   0x6   : > { %142 = sbr.rel (%p139_p2) target bundleno = 286 (0x11e), region = 32  ;;  %p163_p3 = scmp.lt.s32.totalorder (!%p139_p2), %s949_s16, 127 }
   0xb   : > { %v1148_v0 = vld [vmem:[%s1511_s1 + $0x18] sm:$0xff]   ;;  %v1149_v1 = vld [vmem:[%s1511_s1 + $0x10] sm:$0xff]   ;;  %s1515_s16 = smov (!%p163_p3, %s949_s16), 127  ;;  %v1150_v2 = vld [vmem:[%s1511_s1 + $0x8] sm:$0xff]   ;;  %vm438_vm0 = vcmask 523264  }
   0xc   : > { %1060 = vmatprep.subr.bf16.mxu0 %v1148_v0  ;;  %1132 = vmatprep.subr.bf16.mxu1 %v1148_v0  ;;  %s950_s21 = sshll.u32 %s1515_s16, 2  ;;  %v1151_v3 = vld [vmem:[%s1511_s1] sm:$0xff]   ;;  %s952_s27 = sshll.u32 %s1515_s16, 3 }
   0xd   : > { %1061 = vmatpush3.bf16.msra.mxu0 %v1148_v0  ;;  %1136 = vmatpush3.bf16.msra.mxu1 %v1148_v0  ;;  %s1238_s26 = scalar_lea.vmem %s1510_s0, %s950_s21  ;;  %v1308_v36 = vld [vmem:[%s1512_s2] ss:$0 sm:$0xff]  ;;  %s1313_s5 = scalar_lea.vmem %s1513_s3, %s952_s27 }
   0xe   : > { %1062 = vmatprep.subr.bf16.mxu0 %v1149_v1  ;;  %1133 = vmatprep.subr.bf16.mxu1 %v1149_v1  ;;  %v1152_v4 = vld [vmem:[%s1238_s26] sm:$0xff]   ;;  %v1154_v6 = vld [vmem:[%s1238_s26 + $0x8] sm:$0xff]   ;;  %v1156_v8 = vld [vmem:[%s1238_s26 + $0x10] sm:$0xff]  }
   0xf   : > { %v1153_v5 = vld [vmem:[%s1238_s26 + $0x80] sm:$0xff]   ;;  %1068 = vmatprep.mubr.msk.bf16.mxu0 %vm438_vm0, %v1152_v4  ;;  %v1155_v7 = vld [vmem:[%s1238_s26 + $0x88] sm:$0xff]   ;;  %v1157_v9 = vld [vmem:[%s1238_s26 + $0x90] sm:$0xff]  }
  0x10   : > { %1100 = vmatprep.mubr.msk.bf16.mxu1 %vm438_vm0, %v1153_v5  ;;  %v1158_v10 = vld [vmem:[%s1238_s26 + $0x18] sm:$0xff]   ;;  %v1160_v12 = vld [vmem:[%s1238_s26 + $0x20] sm:$0xff]   ;;  %v1162_v14 = vld [vmem:[%s1238_s26 + $0x28] sm:$0xff]  }
  0x11   : > { %1063 = vmatpush3.bf16.msra.mxu0 %v1149_v1  ;;  %1137 = vmatpush3.bf16.msra.mxu1 %v1149_v1  ;;  %v1159_v11 = vld [vmem:[%s1238_s26 + $0x98] sm:$0xff]   ;;  %v1161_v13 = vld [vmem:[%s1238_s26 + $0xa0] sm:$0xff]   ;;  %v1163_v15 = vld [vmem:[%s1238_s26 + $0xa8] sm:$0xff]  }
  0x12   : > { %1064 = vmatprep.subr.bf16.mxu0 %v1150_v2  ;;  %1134 = vmatprep.subr.bf16.mxu1 %v1150_v2  ;;  %v1164_v16 = vld [vmem:[%s1238_s26 + $0x30] sm:$0xff]   ;;  %v1166_v18 = vld [vmem:[%s1238_s26 + $0x38] sm:$0xff]   ;;  %v1168_v20 = vld [vmem:[%s1238_s26 + $0x40] sm:$0xff]  }
  0x13   : > { %v1165_v17 = vld [vmem:[%s1238_s26 + $0xb0] sm:$0xff]   ;;  %v1167_v19 = vld [vmem:[%s1238_s26 + $0xb8] sm:$0xff]   ;;  %v1169_v21 = vld [vmem:[%s1238_s26 + $0xc0] sm:$0xff]  }
  0x14   : > { %v1170_v22 = vld [vmem:[%s1238_s26 + $0x48] sm:$0xff]   ;;  %v1172_v24 = vld [vmem:[%s1238_s26 + $0x50] sm:$0xff]   ;;  %v1174_v26 = vld [vmem:[%s1238_s26 + $0x58] sm:$0xff]  }
  0x15   : > { %1065 = vmatpush3.bf16.msra.mxu0 %v1150_v2  ;;  %1138 = vmatpush3.bf16.msra.mxu1 %v1150_v2  ;;  %v1171_v23 = vld [vmem:[%s1238_s26 + $0xc8] sm:$0xff]   ;;  %v1173_v25 = vld [vmem:[%s1238_s26 + $0xd0] sm:$0xff]   ;;  %v1175_v27 = vld [vmem:[%s1238_s26 + $0xd8] sm:$0xff]  }
  0x16   : > { %1066 = vmatprep.subr.bf16.mxu0 %v1151_v3  ;;  %1135 = vmatprep.subr.bf16.mxu1 %v1151_v3  ;;  %v1176_v28 = vld [vmem:[%s1238_s26 + $0x60] sm:$0xff]   ;;  %v1178_v30 = vld [vmem:[%s1238_s26 + $0x68] sm:$0xff]   ;;  %v1180_v32 = vld [vmem:[%s1238_s26 + $0x70] sm:$0xff]  }
  0x17   : > { %v1177_v29 = vld [vmem:[%s1238_s26 + $0xe0] sm:$0xff]   ;;  %v1179_v31 = vld [vmem:[%s1238_s26 + $0xe8] sm:$0xff]   ;;  %v1181_v33 = vld [vmem:[%s1238_s26 + $0xf0] sm:$0xff]  }
  0x18   : > { %v1182_v34 = vld [vmem:[%s1238_s26 + $0x78] sm:$0xff]  }
  0x19   : > { %1067 = vmatpush3.bf16.msra.mxu0 %v1151_v3  ;;  %1139 = vmatpush3.bf16.msra.mxu1 %v1151_v3  ;;  %v1183_v35 = vld [vmem:[%s1238_s26 + $0xf8] sm:$0xff]  }
  0x1c   : > { %1069 = vmatmul.mubr.msk.bf16.vlgmr.msra.gmra.mxu0 %vm438_vm0, %v1154_v6  ;;  %1101 = vmatmul.mubr.msk.bf16.vlgmr.msra.gmra.mxu1 %vm438_vm0, %v1155_v7 }
  0x1d   : > { %1072 = vmatprep.mubr.msk.bf16.mxu0 %vm438_vm0, %v1156_v8  ;;  %1104 = vmatprep.mubr.msk.bf16.mxu1 %vm438_vm0, %v1157_v9 }
  0x24   : > { %1073 = vmatmul.mubr.msk.bf16.gmra.mxu0 %vm438_vm0, %v1158_v10  ;;  %1105 = vmatmul.mubr.msk.bf16.gmra.mxu1 %vm438_vm0, %v1159_v11 }
  0x25   : > { %1076 = vmatprep.mubr.msk.bf16.mxu0 %vm438_vm0, %v1160_v12  ;;  %1108 = vmatprep.mubr.msk.bf16.mxu1 %vm438_vm0, %v1161_v13 }
  0x2c   : > { %1077 = vmatmul.mubr.msk.bf16.gmra.mxu0 %vm438_vm0, %v1162_v14  ;;  %1109 = vmatmul.mubr.msk.bf16.gmra.mxu1 %vm438_vm0, %v1163_v15 }
  0x2d   : > { %1080 = vmatprep.mubr.msk.bf16.mxu0 %vm438_vm0, %v1164_v16  ;;  %1112 = vmatprep.mubr.msk.bf16.mxu1 %vm438_vm0, %v1165_v17 }
  0x34   : > { %1081 = vmatmul.mubr.msk.bf16.gmra.mxu0 %vm438_vm0, %v1166_v18  ;;  %1113 = vmatmul.mubr.msk.bf16.gmra.mxu1 %vm438_vm0, %v1167_v19 }
  0x35   : > { %1084 = vmatprep.mubr.msk.bf16.mxu0 %vm438_vm0, %v1168_v20  ;;  %1116 = vmatprep.mubr.msk.bf16.mxu1 %vm438_vm0, %v1169_v21 }
  0x3c   : > { %1085 = vmatmul.mubr.msk.bf16.gmra.mxu0 %vm438_vm0, %v1170_v22  ;;  %1117 = vmatmul.mubr.msk.bf16.gmra.mxu1 %vm438_vm0, %v1171_v23 }
  0x3d   : > { %1088 = vmatprep.mubr.msk.bf16.mxu0 %vm438_vm0, %v1172_v24  ;;  %1120 = vmatprep.mubr.msk.bf16.mxu1 %vm438_vm0, %v1173_v25 }
  0x44   : > { %1089 = vmatmul.mubr.msk.bf16.gmra.mxu0 %vm438_vm0, %v1174_v26  ;;  %1121 = vmatmul.mubr.msk.bf16.gmra.mxu1 %vm438_vm0, %v1175_v27 }
  0x45   : > { %1092 = vmatprep.mubr.msk.bf16.mxu0 %vm438_vm0, %v1176_v28  ;;  %1124 = vmatprep.mubr.msk.bf16.mxu1 %vm438_vm0, %v1177_v29 }
  0x4c   : > { %1093 = vmatmul.mubr.msk.bf16.gmra.mxu0 %vm438_vm0, %v1178_v30  ;;  %1125 = vmatmul.mubr.msk.bf16.gmra.mxu1 %vm438_vm0, %v1179_v31 }
  0x4d   : > { %1096 = vmatprep.mubr.msk.bf16.mxu0 %vm438_vm0, %v1180_v32  ;;  %1128 = vmatprep.mubr.msk.bf16.mxu1 %vm438_vm0, %v1181_v33 }
  0x54   : > { %1097 = vmatmul.mubr.msk.bf16.gmra.mxu0 %vm438_vm0, %v1182_v34  ;;  %1129 = vmatmul.mubr.msk.bf16.gmra.mxu1 %vm438_vm0, %v1183_v35 }
  0xdc   : > { %v1070_v37 = vpop.f32.mrf.mxu0  ;;  %v1102_v38 = vpop.f32.mrf.mxu1 }
  0xdd   : > { %v578_v39 = vadd.f32 %v1070_v37, %v1308_v36  ;;  %v706_v40 = vadd.f32 %v1102_v38, %v1308_v36 }
  0xde   : > { %v569_v41 = vpop.f32.mrf.mxu0  ;;  %v697_v42 = vpop.f32.mrf.mxu1 }
  0xdf   : > { %826 = vst.msk [vmem:[%s1313_s5 + $0x10] sm:$0xff] %vm438_vm0, %v578_v39  ;;  %858 = vst.msk [vmem:[%s1313_s5 + $0x110] sm:$0xff] %vm438_vm0, %v706_v40  ;;  %v570_v43 = vadd.f32 %v1308_v36, %v569_v41  ;;  %v698_v44 = vadd.f32 %v1308_v36, %v697_v42 }
  0xe0   : > { %v1071_v45 = vpop.f32.mrf.mxu0  ;;  %v1103_v46 = vpop.f32.mrf.mxu1 }
  0xe1   : > { %824 = vst.msk [vmem:[%s1313_s5] sm:$0xff] %vm438_vm0, %v570_v43  ;;  %856 = vst.msk [vmem:[%s1313_s5 + $0x100] sm:$0xff] %vm438_vm0, %v698_v44  ;;  %v581_v47 = vadd.f32 %v1071_v45, %v1308_v36  ;;  %v709_v48 = vadd.f32 %v1103_v46, %v1308_v36 }
  0xe2   : > { %v572_v49 = vpop.f32.mrf.mxu0  ;;  %v700_v50 = vpop.f32.mrf.mxu1 }
  0xe3   : > { %827 = vst.msk [vmem:[%s1313_s5 + $0x18] sm:$0xff] %vm438_vm0, %v581_v47  ;;  %859 = vst.msk [vmem:[%s1313_s5 + $0x118] sm:$0xff] %vm438_vm0, %v709_v48  ;;  %v573_v51 = vadd.f32 %v1308_v36, %v572_v49  ;;  %v701_v52 = vadd.f32 %v1308_v36, %v700_v50 }
  0xe4   : > { %v1074_v53 = vpop.f32.mrf.mxu0  ;;  %v1106_v54 = vpop.f32.mrf.mxu1 }
  0xe5   : > { %825 = vst.msk [vmem:[%s1313_s5 + $0x8] sm:$0xff] %vm438_vm0, %v573_v51  ;;  %857 = vst.msk [vmem:[%s1313_s5 + $0x108] sm:$0xff] %vm438_vm0, %v701_v52  ;;  %v594_v55 = vadd.f32 %v1074_v53, %v1308_v36  ;;  %v722_v56 = vadd.f32 %v1106_v54, %v1308_v36 }
  0xe6   : > { %v585_v57 = vpop.f32.mrf.mxu0  ;;  %v713_v58 = vpop.f32.mrf.mxu1 }
  0xe7   : > { %830 = vst.msk [vmem:[%s1313_s5 + $0x30] sm:$0xff] %vm438_vm0, %v594_v55  ;;  %862 = vst.msk [vmem:[%s1313_s5 + $0x130] sm:$0xff] %vm438_vm0, %v722_v56  ;;  %v586_v59 = vadd.f32 %v1308_v36, %v585_v57  ;;  %v714_v60 = vadd.f32 %v1308_v36, %v713_v58 }
  0xe8   : > { %v1075_v61 = vpop.f32.mrf.mxu0  ;;  %v1107_v62 = vpop.f32.mrf.mxu1 }
  0xe9   : > { %828 = vst.msk [vmem:[%s1313_s5 + $0x20] sm:$0xff] %vm438_vm0, %v586_v59  ;;  %860 = vst.msk [vmem:[%s1313_s5 + $0x120] sm:$0xff] %vm438_vm0, %v714_v60  ;;  %v597_v63 = vadd.f32 %v1075_v61, %v1308_v36  ;;  %v725_v0 = vadd.f32 %v1107_v62, %v1308_v36 }
  0xea   : > { %v588_v1 = vpop.f32.mrf.mxu0  ;;  %v716_v2 = vpop.f32.mrf.mxu1 }
  0xeb   : > { %831 = vst.msk [vmem:[%s1313_s5 + $0x38] sm:$0xff] %vm438_vm0, %v597_v63  ;;  %863 = vst.msk [vmem:[%s1313_s5 + $0x138] sm:$0xff] %vm438_vm0, %v725_v0  ;;  %v589_v3 = vadd.f32 %v1308_v36, %v588_v1  ;;  %v717_v4 = vadd.f32 %v1308_v36, %v716_v2 }
  0xec   : > { %v1078_v5 = vpop.f32.mrf.mxu0  ;;  %v1110_v6 = vpop.f32.mrf.mxu1 }
  0xed   : > { %829 = vst.msk [vmem:[%s1313_s5 + $0x28] sm:$0xff] %vm438_vm0, %v589_v3  ;;  %861 = vst.msk [vmem:[%s1313_s5 + $0x128] sm:$0xff] %vm438_vm0, %v717_v4  ;;  %v610_v7 = vadd.f32 %v1078_v5, %v1308_v36  ;;  %v738_v8 = vadd.f32 %v1110_v6, %v1308_v36 }
  0xee   : > { %v601_v9 = vpop.f32.mrf.mxu0  ;;  %v729_v10 = vpop.f32.mrf.mxu1 }
  0xef   : > { %834 = vst.msk [vmem:[%s1313_s5 + $0x50] sm:$0xff] %vm438_vm0, %v610_v7  ;;  %866 = vst.msk [vmem:[%s1313_s5 + $0x150] sm:$0xff] %vm438_vm0, %v738_v8  ;;  %v602_v11 = vadd.f32 %v1308_v36, %v601_v9  ;;  %v730_v12 = vadd.f32 %v1308_v36, %v729_v10 }
  0xf0   : > { %v1079_v13 = vpop.f32.mrf.mxu0  ;;  %v1111_v14 = vpop.f32.mrf.mxu1 }
  0xf1   : > { %832 = vst.msk [vmem:[%s1313_s5 + $0x40] sm:$0xff] %vm438_vm0, %v602_v11  ;;  %864 = vst.msk [vmem:[%s1313_s5 + $0x140] sm:$0xff] %vm438_vm0, %v730_v12  ;;  %v613_v15 = vadd.f32 %v1079_v13, %v1308_v36  ;;  %v741_v16 = vadd.f32 %v1111_v14, %v1308_v36 }
  0xf2   : > { %v604_v17 = vpop.f32.mrf.mxu0  ;;  %v732_v18 = vpop.f32.mrf.mxu1 }
  0xf3   : > { %835 = vst.msk [vmem:[%s1313_s5 + $0x58] sm:$0xff] %vm438_vm0, %v613_v15  ;;  %867 = vst.msk [vmem:[%s1313_s5 + $0x158] sm:$0xff] %vm438_vm0, %v741_v16  ;;  %v605_v19 = vadd.f32 %v1308_v36, %v604_v17  ;;  %v733_v20 = vadd.f32 %v1308_v36, %v732_v18 }
  0xf4   : > { %v1082_v21 = vpop.f32.mrf.mxu0  ;;  %v1114_v22 = vpop.f32.mrf.mxu1 }
  0xf5   : > { %833 = vst.msk [vmem:[%s1313_s5 + $0x48] sm:$0xff] %vm438_vm0, %v605_v19  ;;  %865 = vst.msk [vmem:[%s1313_s5 + $0x148] sm:$0xff] %vm438_vm0, %v733_v20  ;;  %v626_v23 = vadd.f32 %v1082_v21, %v1308_v36  ;;  %v754_v24 = vadd.f32 %v1114_v22, %v1308_v36 }
  0xf6   : > { %v617_v25 = vpop.f32.mrf.mxu0  ;;  %v745_v26 = vpop.f32.mrf.mxu1 }
  0xf7   : > { %838 = vst.msk [vmem:[%s1313_s5 + $0x70] sm:$0xff] %vm438_vm0, %v626_v23  ;;  %870 = vst.msk [vmem:[%s1313_s5 + $0x170] sm:$0xff] %vm438_vm0, %v754_v24  ;;  %v618_v27 = vadd.f32 %v1308_v36, %v617_v25  ;;  %v746_v28 = vadd.f32 %v1308_v36, %v745_v26 }
  0xf8   : > { %v1083_v29 = vpop.f32.mrf.mxu0  ;;  %v1115_v30 = vpop.f32.mrf.mxu1 }
  0xf9   : > { %836 = vst.msk [vmem:[%s1313_s5 + $0x60] sm:$0xff] %vm438_vm0, %v618_v27  ;;  %868 = vst.msk [vmem:[%s1313_s5 + $0x160] sm:$0xff] %vm438_vm0, %v746_v28  ;;  %v629_v31 = vadd.f32 %v1083_v29, %v1308_v36  ;;  %v757_v32 = vadd.f32 %v1115_v30, %v1308_v36 }
  0xfa   : > { %v620_v33 = vpop.f32.mrf.mxu0  ;;  %v748_v34 = vpop.f32.mrf.mxu1 }
  0xfb   : > { %839 = vst.msk [vmem:[%s1313_s5 + $0x78] sm:$0xff] %vm438_vm0, %v629_v31  ;;  %871 = vst.msk [vmem:[%s1313_s5 + $0x178] sm:$0xff] %vm438_vm0, %v757_v32  ;;  %v621_v35 = vadd.f32 %v1308_v36, %v620_v33  ;;  %v749_v37 = vadd.f32 %v1308_v36, %v748_v34 }
  0xfc   : > { %v1086_v38 = vpop.f32.mrf.mxu0  ;;  %v1118_v39 = vpop.f32.mrf.mxu1 }
  0xfd   : > { %837 = vst.msk [vmem:[%s1313_s5 + $0x68] sm:$0xff] %vm438_vm0, %v621_v35  ;;  %869 = vst.msk [vmem:[%s1313_s5 + $0x168] sm:$0xff] %vm438_vm0, %v749_v37  ;;  %v642_v40 = vadd.f32 %v1086_v38, %v1308_v36  ;;  %v770_v41 = vadd.f32 %v1118_v39, %v1308_v36 }
  0xfe   : > { %v633_v42 = vpop.f32.mrf.mxu0  ;;  %v761_v43 = vpop.f32.mrf.mxu1 }
  0xff   : > { %842 = vst.msk [vmem:[%s1313_s5 + $0x90] sm:$0xff] %vm438_vm0, %v642_v40  ;;  %874 = vst.msk [vmem:[%s1313_s5 + $0x190] sm:$0xff] %vm438_vm0, %v770_v41  ;;  %v634_v44 = vadd.f32 %v1308_v36, %v633_v42  ;;  %v762_v45 = vadd.f32 %v1308_v36, %v761_v43 }
 0x100   : > { %v1087_v46 = vpop.f32.mrf.mxu0  ;;  %v1119_v47 = vpop.f32.mrf.mxu1 }
 0x101   : > { %840 = vst.msk [vmem:[%s1313_s5 + $0x80] sm:$0xff] %vm438_vm0, %v634_v44  ;;  %872 = vst.msk [vmem:[%s1313_s5 + $0x180] sm:$0xff] %vm438_vm0, %v762_v45  ;;  %v645_v48 = vadd.f32 %v1087_v46, %v1308_v36  ;;  %v773_v49 = vadd.f32 %v1119_v47, %v1308_v36 }
 0x102   : > { %v636_v50 = vpop.f32.mrf.mxu0  ;;  %v764_v51 = vpop.f32.mrf.mxu1 }
 0x103   : > { %843 = vst.msk [vmem:[%s1313_s5 + $0x98] sm:$0xff] %vm438_vm0, %v645_v48  ;;  %875 = vst.msk [vmem:[%s1313_s5 + $0x198] sm:$0xff] %vm438_vm0, %v773_v49  ;;  %v637_v52 = vadd.f32 %v1308_v36, %v636_v50  ;;  %v765_v53 = vadd.f32 %v1308_v36, %v764_v51 }
 0x104   : > { %v1090_v54 = vpop.f32.mrf.mxu0  ;;  %v1122_v55 = vpop.f32.mrf.mxu1 }
 0x105   : > { %841 = vst.msk [vmem:[%s1313_s5 + $0x88] sm:$0xff] %vm438_vm0, %v637_v52  ;;  %873 = vst.msk [vmem:[%s1313_s5 + $0x188] sm:$0xff] %vm438_vm0, %v765_v53  ;;  %v658_v56 = vadd.f32 %v1090_v54, %v1308_v36  ;;  %v786_v57 = vadd.f32 %v1122_v55, %v1308_v36 }
 0x106   : > { %v649_v58 = vpop.f32.mrf.mxu0  ;;  %v777_v59 = vpop.f32.mrf.mxu1 }
 0x107   : > { %846 = vst.msk [vmem:[%s1313_s5 + $0xb0] sm:$0xff] %vm438_vm0, %v658_v56  ;;  %878 = vst.msk [vmem:[%s1313_s5 + $0x1b0] sm:$0xff] %vm438_vm0, %v786_v57  ;;  %v650_v60 = vadd.f32 %v1308_v36, %v649_v58  ;;  %v778_v61 = vadd.f32 %v1308_v36, %v777_v59 }
 0x108   : > { %v1091_v62 = vpop.f32.mrf.mxu0  ;;  %v1123_v63 = vpop.f32.mrf.mxu1 }
 0x109   : > { %844 = vst.msk [vmem:[%s1313_s5 + $0xa0] sm:$0xff] %vm438_vm0, %v650_v60  ;;  %876 = vst.msk [vmem:[%s1313_s5 + $0x1a0] sm:$0xff] %vm438_vm0, %v778_v61  ;;  %v661_v0 = vadd.f32 %v1091_v62, %v1308_v36  ;;  %v789_v1 = vadd.f32 %v1123_v63, %v1308_v36 }
 0x10a   : > { %v652_v2 = vpop.f32.mrf.mxu0  ;;  %v780_v3 = vpop.f32.mrf.mxu1 }
 0x10b   : > { %847 = vst.msk [vmem:[%s1313_s5 + $0xb8] sm:$0xff] %vm438_vm0, %v661_v0  ;;  %879 = vst.msk [vmem:[%s1313_s5 + $0x1b8] sm:$0xff] %vm438_vm0, %v789_v1  ;;  %v653_v4 = vadd.f32 %v1308_v36, %v652_v2  ;;  %v781_v5 = vadd.f32 %v1308_v36, %v780_v3 }
 0x10c   : > { %v1094_v6 = vpop.f32.mrf.mxu0  ;;  %v1126_v7 = vpop.f32.mrf.mxu1 }
 0x10d   : > { %845 = vst.msk [vmem:[%s1313_s5 + $0xa8] sm:$0xff] %vm438_vm0, %v653_v4  ;;  %877 = vst.msk [vmem:[%s1313_s5 + $0x1a8] sm:$0xff] %vm438_vm0, %v781_v5  ;;  %v674_v8 = vadd.f32 %v1094_v6, %v1308_v36  ;;  %v802_v9 = vadd.f32 %v1126_v7, %v1308_v36 }
 0x10e   : > { %v665_v10 = vpop.f32.mrf.mxu0  ;;  %v793_v11 = vpop.f32.mrf.mxu1 }
 0x10f   : > { %850 = vst.msk [vmem:[%s1313_s5 + $0xd0] sm:$0xff] %vm438_vm0, %v674_v8  ;;  %882 = vst.msk [vmem:[%s1313_s5 + $0x1d0] sm:$0xff] %vm438_vm0, %v802_v9  ;;  %v666_v12 = vadd.f32 %v1308_v36, %v665_v10  ;;  %v794_v13 = vadd.f32 %v1308_v36, %v793_v11 }
 0x110   : > { %v1095_v14 = vpop.f32.mrf.mxu0  ;;  %v1127_v15 = vpop.f32.mrf.mxu1 }
 0x111   : > { %848 = vst.msk [vmem:[%s1313_s5 + $0xc0] sm:$0xff] %vm438_vm0, %v666_v12  ;;  %880 = vst.msk [vmem:[%s1313_s5 + $0x1c0] sm:$0xff] %vm438_vm0, %v794_v13  ;;  %v677_v16 = vadd.f32 %v1095_v14, %v1308_v36  ;;  %v805_v17 = vadd.f32 %v1127_v15, %v1308_v36 }
 0x112   : > { %v668_v18 = vpop.f32.mrf.mxu0  ;;  %v796_v19 = vpop.f32.mrf.mxu1 }
 0x113   : > { %851 = vst.msk [vmem:[%s1313_s5 + $0xd8] sm:$0xff] %vm438_vm0, %v677_v16  ;;  %883 = vst.msk [vmem:[%s1313_s5 + $0x1d8] sm:$0xff] %vm438_vm0, %v805_v17  ;;  %v669_v20 = vadd.f32 %v1308_v36, %v668_v18  ;;  %v797_v21 = vadd.f32 %v1308_v36, %v796_v19 }
 0x114   : > { %v1098_v22 = vpop.f32.mrf.mxu0  ;;  %v1130_v23 = vpop.f32.mrf.mxu1 }
 0x115   : > { %849 = vst.msk [vmem:[%s1313_s5 + $0xc8] sm:$0xff] %vm438_vm0, %v669_v20  ;;  %881 = vst.msk [vmem:[%s1313_s5 + $0x1c8] sm:$0xff] %vm438_vm0, %v797_v21  ;;  %v690_v24 = vadd.f32 %v1098_v22, %v1308_v36  ;;  %v818_v25 = vadd.f32 %v1130_v23, %v1308_v36 }
 0x116   : > { %v681_v26 = vpop.f32.mrf.mxu0  ;;  %v809_v27 = vpop.f32.mrf.mxu1 }
 0x117   : > { %854 = vst.msk [vmem:[%s1313_s5 + $0xf0] sm:$0xff] %vm438_vm0, %v690_v24  ;;  %886 = vst.msk [vmem:[%s1313_s5 + $0x1f0] sm:$0xff] %vm438_vm0, %v818_v25  ;;  %v682_v28 = vadd.f32 %v1308_v36, %v681_v26  ;;  %v810_v29 = vadd.f32 %v1308_v36, %v809_v27 }
 0x118   : > { %v1099_v30 = vpop.f32.mrf.mxu0  ;;  %v1131_v31 = vpop.f32.mrf.mxu1 }
 0x119   : > { %852 = vst.msk [vmem:[%s1313_s5 + $0xe0] sm:$0xff] %vm438_vm0, %v682_v28  ;;  %884 = vst.msk [vmem:[%s1313_s5 + $0x1e0] sm:$0xff] %vm438_vm0, %v810_v29  ;;  %v693_v32 = vadd.f32 %v1099_v30, %v1308_v36  ;;  %v821_v33 = vadd.f32 %v1131_v31, %v1308_v36 }
 0x11a   : > { %v684_v34 = vpop.f32.mrf.mxu0  ;;  %v812_v35 = vpop.f32.mrf.mxu1 }
 0x11b   : > { %855 = vst.msk [vmem:[%s1313_s5 + $0xf8] sm:$0xff] %vm438_vm0, %v693_v32  ;;  %887 = vst.msk [vmem:[%s1313_s5 + $0x1f8] sm:$0xff] %vm438_vm0, %v821_v33  ;;  %v685_v37 = vadd.f32 %v1308_v36, %v684_v34  ;;  %v813_v38 = vadd.f32 %v1308_v36, %v812_v35 }
 0x11d   : > { %853 = vst.msk [vmem:[%s1313_s5 + $0xe8] sm:$0xff] %vm438_vm0, %v685_v37  ;;  %885 = vst.msk [vmem:[%s1313_s5 + $0x1e8] sm:$0xff] %vm438_vm0, %v813_v38 }
 0x11e PF: > { %s13_s12 = sadd.s32 1, %s1190_s12  }
 0x11f   : > { %p10_p4 = scmp.ge.s32.totalorder %s13_s12, 4  }
 0x121   :  { %12 = sbr.rel (!%p10_p4) target bundleno = 1 (0x1), region = 62 }

</bundles_post_ra>
